<compile_context>
chip_gen: v5e
topology: v5e:2x2
jax: 0.10.0
libtpu: 0.0.40
codegen_flags: <defaults>
</compile_context>

<pallas_src>
import functools

import numpy as np
import jax
import jax.numpy as jnp
from jax.experimental import pallas as pl
from jax.experimental.pallas import tpu as pltpu

_EPS = 1e-5


def _model_block_kernel(C, K, W, max_off, counts,
                        x_ref, m_ref,
                        w1_ref, g1_ref, be1_ref,
                        w2_ref, g2_ref, be2_ref,
                        w3_ref, g3_ref, be3_ref,
                        o_ref, t1_ref, t2_ref):
    """Fused (conv3x3 -> training-mode BN -> ReLU) x3 with cropped residual."""

    def conv_bn_relu(in_ref, w_ref, g_ref, be_ref, stage, L_out):
        # ---- valid KxK conv, all C output channels at once -----------------
        # Conv bias omitted: a per-channel constant is cancelled exactly by the
        # batch-mean subtraction of training-mode BatchNorm.
        acc = jnp.zeros((C, L_out), jnp.float32)
        for ci in range(C):
            for di in range(K):
                for dj in range(K):
                    off = di * W + dj
                    col = (ci * K + di) * K + dj
                    patch = in_ref[ci:ci + 1, off:off + L_out]   # (1, L_out), sliced once
                    wcol = w_ref[:, col:col + 1]                 # (C, 1) VMEM column
                    acc = acc + wcol * patch                     # lane-dense FMA
        # ---- BatchNorm (training mode, biased var) + ReLU, channel-vectorized
        mask = m_ref[stage - 1:stage, 0:L_out]                   # (1, L_out) validity mask
        inv_n = 1.0 / counts[stage - 1]
        am = acc * mask
        mean = jnp.sum(am, axis=1, keepdims=True) * inv_n        # (C, 1)
        ex2 = jnp.sum(am * acc, axis=1, keepdims=True) * inv_n   # masked E[x^2]
        var = ex2 - mean * mean
        scale = g_ref[...] * jax.lax.rsqrt(var + _EPS)           # (C, 1)
        shift = be_ref[...] - mean * scale
        return jnp.maximum(acc * scale + shift, 0.0)             # (C, L_out)

    L1 = t1_ref.shape[1]
    L2 = t2_ref.shape[1]
    L3 = o_ref.shape[1]

    # stage 1: relu(bn(conv1(x)))
    t1_ref[...] = conv_bn_relu(x_ref, w1_ref, g1_ref, be1_ref, 1, L1)
    # stage 2: relu(bn(conv2(.))) with the residual x_[:, :, 2:-2, 2:-2] fused
    # into the epilogue store (the crop is a flat offset of max_off).
    y2 = conv_bn_relu(t1_ref, w2_ref, g2_ref, be2_ref, 2, L2)
    t2_ref[...] = y2 + x_ref[:, max_off:max_off + L2]
    # stage 3: relu(bn(conv3(.)))
    o_ref[...] = conv_bn_relu(t2_ref, w3_ref, g3_ref, be3_ref, 3, L3)
    # TODO(synk): BatchNorm running_mean/running_var updates (training-time side
    # effect) are not materialized; they do not affect the forward output.


def model_block_forward(x, params, kern=3):
    N, C, H, W = x.shape
    assert kern == 3, "module's residual crop [2:-2] implies kernel size 3"
    K = kern
    shr = K - 1
    NHW = N * H * W
    max_off = shr * W + shr                     # flat offset of a (K-1, K-1) shift
    L1, L2, L3 = NHW - max_off, NHW - 2 * max_off, NHW - 3 * max_off
    H3, W3 = H - 3 * shr, W - 3 * shr

    (w1, _b1, g1, be1), (w2, _b2, g2, be2), (w3, _b3, g3, be3) = params
    # conv biases intentionally unused: training-mode BN subtracts them out exactly.

    # lane-dense flat layout: row = channel, lane = n*H*W + y*W + x
    x_flat = jnp.transpose(x.astype(jnp.float32), (1, 0, 2, 3)).reshape(C, NHW)

    # per-stage validity masks in original flat coordinates (constant table)
    masks = np.zeros((3, NHW), np.float32)
    for s in (1, 2, 3):
        m = np.zeros((N, H, W), np.float32)
        m[:, :H - s * shr, :W - s * shr] = 1.0
        masks[s - 1] = m.reshape(-1)
    masks = jnp.asarray(masks)
    counts = tuple(float(N * (H - s * shr) * (W - s * shr)) for s in (1, 2, 3))

    prep_w = lambda w: w.reshape(C, C * K * K).astype(jnp.float32)  # col = (ci*K+di)*K+dj
    prep_v = lambda v: v.reshape(C, 1).astype(jnp.float32)

    vmem = pl.BlockSpec(memory_space=pltpu.MemorySpace.VMEM)
    kernel = functools.partial(_model_block_kernel, C, K, W, max_off, counts)

    # Single grid point: the whole problem (~50 KB) fits trivially in VMEM on
    # v5e/v6e/v7x.  At realistic sizes, add a grid axis over N with
    # dimension_semantics=("parallel",) so both v7x TensorCores are used and
    # re-derive slab sizes against v7x's 64 MiB VMEM.
    out_flat = pl.pallas_call(
        kernel,
        out_shape=jax.ShapeDtypeStruct((C, L3), jnp.float32),
        in_specs=[vmem] * 11,
        out_specs=vmem,
        scratch_shapes=[
            pltpu.VMEM((C, L1), jnp.float32),
            pltpu.VMEM((C, L2), jnp.float32),
        ],
    )(x_flat, masks,
      prep_w(w1), prep_v(g1), prep_v(be1),
      prep_w(w2), prep_v(g2), prep_v(be2),
      prep_w(w3), prep_v(g3), prep_v(be3))

    # un-flatten: pad the prefix slab back to full flat length, crop the valid
    # (H-6, W-6) window and restore NCHW (wrapper-side layout plumbing only).
    out_full = jnp.pad(out_flat, ((0, 0), (0, NHW - L3)))
    out = out_full.reshape(C, N, H, W)[:, :, :H3, :W3]
    return jnp.transpose(out, (1, 0, 2, 3))


def init_params(key, C, kern):
    """Deterministic synthetic parameters (PyTorch-style fan-in bounds)."""
    fan_in = C * kern * kern
    bound = 1.0 / (fan_in ** 0.5)
    params = []
    for i in range(3):
        k = jax.random.fold_in(key, i)
        kw, kb, kg, kbe = jax.random.split(k, 4)
        w = jax.random.uniform(kw, (C, C, kern, kern), jnp.float32, -bound, bound)
        b = jax.random.uniform(kb, (C,), jnp.float32, -bound, bound)
        g = 1.0 + 0.1 * jax.random.normal(kg, (C,), jnp.float32)   # BN weight
        be = 0.1 * jax.random.normal(kbe, (C,), jnp.float32)       # BN bias
        params.append((w, b, g, be))
    return params


def reference_forward(x, params):
    """Pure-JAX reference of the PyTorch forward (training-mode BN)."""
    def conv(h, w, b):
        y = jax.lax.conv_general_dilated(
            h, w, window_strides=(1, 1), padding="VALID",
            dimension_numbers=("NCHW", "OIHW", "NCHW"))
        return y + b[None, :, None, None]

    def bn(y, g, be):
        mean = y.mean(axis=(0, 2, 3), keepdims=True)
        var = ((y - mean) ** 2).mean(axis=(0, 2, 3), keepdims=True)
        return (y - mean) / jnp.sqrt(var + _EPS) * g[None, :, None, None] \
            + be[None, :, None, None]

    (w1, b1, g1, be1), (w2, b2, g2, be2), (w3, b3, g3, be3) = params
    h = jax.nn.relu(bn(conv(x, w1, b1), g1, be1))
    h = jax.nn.relu(bn(conv(h, w2, b2), g2, be2))
    h = jax.nn.relu(bn(conv(h + x[:, :, 2:-2, 2:-2], w3, b3), g3, be3))
    return h


if __name__ == "__main__":
    # module constraints: in_feat == out_feat and kern == 3 (residual crop)
    N, C, H, W, KERN = 2, 4, 16, 16, 3

    key = jax.random.PRNGKey(0)
    kx, kp = jax.random.split(key)
    x = jax.random.normal(kx, (N, C, H, W), jnp.float32)
    params = init_params(kp, C, KERN)

    out = model_block_forward(x, params, kern=KERN)
    out = jax.block_until_ready(out)

    ref = jax.block_until_ready(reference_forward(x, params))
    assert out.shape == (N, C, H - 6, W - 6), out.shape
    assert jnp.allclose(out, ref, rtol=2e-4, atol=2e-4), \
        float(jnp.max(jnp.abs(out - ref)))

    print("KERNEL_OK")
</pallas_src>

<mosaic_0001>
module attributes {stable_mosaic.version = 11 : i64} {
  func.func @_model_block_kernel(%arg0: memref<4x512xf32, #tpu.memory_space<vmem>>, %arg1: memref<3x512xf32, #tpu.memory_space<vmem>>, %arg2: memref<4x36xf32, #tpu.memory_space<vmem>>, %arg3: memref<4x1xf32, #tpu.memory_space<vmem>>, %arg4: memref<4x1xf32, #tpu.memory_space<vmem>>, %arg5: memref<4x36xf32, #tpu.memory_space<vmem>>, %arg6: memref<4x1xf32, #tpu.memory_space<vmem>>, %arg7: memref<4x1xf32, #tpu.memory_space<vmem>>, %arg8: memref<4x36xf32, #tpu.memory_space<vmem>>, %arg9: memref<4x1xf32, #tpu.memory_space<vmem>>, %arg10: memref<4x1xf32, #tpu.memory_space<vmem>>, %arg11: memref<4x410xf32, #tpu.memory_space<vmem>>, %arg12: memref<4x478xf32, #tpu.memory_space<vmem>>, %arg13: memref<4x444xf32, #tpu.memory_space<vmem>>) attributes {dimension_semantics = [], scalar_prefetch = 0 : i64, scratch_operands = 2 : i64, tpu.core_type = #tpu.core_type<tc>} {
    %cst = arith.constant 0.000000e+00 : f32
    %0 = vector.broadcast %cst : f32 to vector<4x478xf32>
    %c0 = arith.constant 0 : index
    %c0_0 = arith.constant 0 : index
    %1 = vector.load %arg0[%c0, %c0_0] : memref<4x512xf32, #tpu.memory_space<vmem>>, vector<1x478xf32>
    %c0_1 = arith.constant 0 : index
    %c0_2 = arith.constant 0 : index
    %2 = vector.load %arg2[%c0_1, %c0_2] : memref<4x36xf32, #tpu.memory_space<vmem>>, vector<4x1xf32>
    %3 = vector.broadcast %2 : vector<4x1xf32> to vector<4x478xf32>
    %4 = vector.broadcast %1 : vector<1x478xf32> to vector<4x478xf32>
    %5 = arith.mulf %3, %4 : vector<4x478xf32>
    %6 = arith.addf %0, %5 : vector<4x478xf32>
    %c0_3 = arith.constant 0 : index
    %c1 = arith.constant 1 : index
    %7 = vector.load %arg0[%c0_3, %c1] : memref<4x512xf32, #tpu.memory_space<vmem>>, vector<1x478xf32>
    %c0_4 = arith.constant 0 : index
    %c1_5 = arith.constant 1 : index
    %8 = vector.load %arg2[%c0_4, %c1_5] : memref<4x36xf32, #tpu.memory_space<vmem>>, vector<4x1xf32>
    %9 = vector.broadcast %8 : vector<4x1xf32> to vector<4x478xf32>
    %10 = vector.broadcast %7 : vector<1x478xf32> to vector<4x478xf32>
    %11 = arith.mulf %9, %10 : vector<4x478xf32>
    %12 = arith.addf %6, %11 : vector<4x478xf32>
    %c0_6 = arith.constant 0 : index
    %c2 = arith.constant 2 : index
    %13 = vector.load %arg0[%c0_6, %c2] : memref<4x512xf32, #tpu.memory_space<vmem>>, vector<1x478xf32>
    %c0_7 = arith.constant 0 : index
    %c2_8 = arith.constant 2 : index
    %14 = vector.load %arg2[%c0_7, %c2_8] : memref<4x36xf32, #tpu.memory_space<vmem>>, vector<4x1xf32>
    %15 = vector.broadcast %14 : vector<4x1xf32> to vector<4x478xf32>
    %16 = vector.broadcast %13 : vector<1x478xf32> to vector<4x478xf32>
    %17 = arith.mulf %15, %16 : vector<4x478xf32>
    %18 = arith.addf %12, %17 : vector<4x478xf32>
    %c0_9 = arith.constant 0 : index
    %c16 = arith.constant 16 : index
    %19 = vector.load %arg0[%c0_9, %c16] : memref<4x512xf32, #tpu.memory_space<vmem>>, vector<1x478xf32>
    %c0_10 = arith.constant 0 : index
    %c3 = arith.constant 3 : index
    %20 = vector.load %arg2[%c0_10, %c3] : memref<4x36xf32, #tpu.memory_space<vmem>>, vector<4x1xf32>
    %21 = vector.broadcast %20 : vector<4x1xf32> to vector<4x478xf32>
    %22 = vector.broadcast %19 : vector<1x478xf32> to vector<4x478xf32>
    %23 = arith.mulf %21, %22 : vector<4x478xf32>
    %24 = arith.addf %18, %23 : vector<4x478xf32>
    %c0_11 = arith.constant 0 : index
    %c17 = arith.constant 17 : index
    %25 = vector.load %arg0[%c0_11, %c17] : memref<4x512xf32, #tpu.memory_space<vmem>>, vector<1x478xf32>
    %c0_12 = arith.constant 0 : index
    %c4 = arith.constant 4 : index
    %26 = vector.load %arg2[%c0_12, %c4] : memref<4x36xf32, #tpu.memory_space<vmem>>, vector<4x1xf32>
    %27 = vector.broadcast %26 : vector<4x1xf32> to vector<4x478xf32>
    %28 = vector.broadcast %25 : vector<1x478xf32> to vector<4x478xf32>
    %29 = arith.mulf %27, %28 : vector<4x478xf32>
    %30 = arith.addf %24, %29 : vector<4x478xf32>
    %c0_13 = arith.constant 0 : index
    %c18 = arith.constant 18 : index
    %31 = vector.load %arg0[%c0_13, %c18] : memref<4x512xf32, #tpu.memory_space<vmem>>, vector<1x478xf32>
    %c0_14 = arith.constant 0 : index
    %c5 = arith.constant 5 : index
    %32 = vector.load %arg2[%c0_14, %c5] : memref<4x36xf32, #tpu.memory_space<vmem>>, vector<4x1xf32>
    %33 = vector.broadcast %32 : vector<4x1xf32> to vector<4x478xf32>
    %34 = vector.broadcast %31 : vector<1x478xf32> to vector<4x478xf32>
    %35 = arith.mulf %33, %34 : vector<4x478xf32>
    %36 = arith.addf %30, %35 : vector<4x478xf32>
    %c0_15 = arith.constant 0 : index
    %c32 = arith.constant 32 : index
    %37 = vector.load %arg0[%c0_15, %c32] : memref<4x512xf32, #tpu.memory_space<vmem>>, vector<1x478xf32>
    %c0_16 = arith.constant 0 : index
    %c6 = arith.constant 6 : index
    %38 = vector.load %arg2[%c0_16, %c6] : memref<4x36xf32, #tpu.memory_space<vmem>>, vector<4x1xf32>
    %39 = vector.broadcast %38 : vector<4x1xf32> to vector<4x478xf32>
    %40 = vector.broadcast %37 : vector<1x478xf32> to vector<4x478xf32>
    %41 = arith.mulf %39, %40 : vector<4x478xf32>
    %42 = arith.addf %36, %41 : vector<4x478xf32>
    %c0_17 = arith.constant 0 : index
    %c33 = arith.constant 33 : index
    %43 = vector.load %arg0[%c0_17, %c33] : memref<4x512xf32, #tpu.memory_space<vmem>>, vector<1x478xf32>
    %c0_18 = arith.constant 0 : index
    %c7 = arith.constant 7 : index
    %44 = vector.load %arg2[%c0_18, %c7] : memref<4x36xf32, #tpu.memory_space<vmem>>, vector<4x1xf32>
    %45 = vector.broadcast %44 : vector<4x1xf32> to vector<4x478xf32>
    %46 = vector.broadcast %43 : vector<1x478xf32> to vector<4x478xf32>
    %47 = arith.mulf %45, %46 : vector<4x478xf32>
    %48 = arith.addf %42, %47 : vector<4x478xf32>
    %c0_19 = arith.constant 0 : index
    %c34 = arith.constant 34 : index
    %49 = vector.load %arg0[%c0_19, %c34] : memref<4x512xf32, #tpu.memory_space<vmem>>, vector<1x478xf32>
    %c0_20 = arith.constant 0 : index
    %c8 = arith.constant 8 : index
    %50 = vector.load %arg2[%c0_20, %c8] : memref<4x36xf32, #tpu.memory_space<vmem>>, vector<4x1xf32>
    %51 = vector.broadcast %50 : vector<4x1xf32> to vector<4x478xf32>
    %52 = vector.broadcast %49 : vector<1x478xf32> to vector<4x478xf32>
    %53 = arith.mulf %51, %52 : vector<4x478xf32>
    %54 = arith.addf %48, %53 : vector<4x478xf32>
    %c1_21 = arith.constant 1 : index
    %c0_22 = arith.constant 0 : index
    %55 = vector.load %arg0[%c1_21, %c0_22] : memref<4x512xf32, #tpu.memory_space<vmem>>, vector<1x478xf32>
    %c0_23 = arith.constant 0 : index
    %c9 = arith.constant 9 : index
    %56 = vector.load %arg2[%c0_23, %c9] : memref<4x36xf32, #tpu.memory_space<vmem>>, vector<4x1xf32>
    %57 = vector.broadcast %56 : vector<4x1xf32> to vector<4x478xf32>
    %58 = vector.broadcast %55 : vector<1x478xf32> to vector<4x478xf32>
    %59 = arith.mulf %57, %58 : vector<4x478xf32>
    %60 = arith.addf %54, %59 : vector<4x478xf32>
    %c1_24 = arith.constant 1 : index
    %c1_25 = arith.constant 1 : index
    %61 = vector.load %arg0[%c1_24, %c1_25] : memref<4x512xf32, #tpu.memory_space<vmem>>, vector<1x478xf32>
    %c0_26 = arith.constant 0 : index
    %c10 = arith.constant 10 : index
    %62 = vector.load %arg2[%c0_26, %c10] : memref<4x36xf32, #tpu.memory_space<vmem>>, vector<4x1xf32>
    %63 = vector.broadcast %62 : vector<4x1xf32> to vector<4x478xf32>
    %64 = vector.broadcast %61 : vector<1x478xf32> to vector<4x478xf32>
    %65 = arith.mulf %63, %64 : vector<4x478xf32>
    %66 = arith.addf %60, %65 : vector<4x478xf32>
    %c1_27 = arith.constant 1 : index
    %c2_28 = arith.constant 2 : index
    %67 = vector.load %arg0[%c1_27, %c2_28] : memref<4x512xf32, #tpu.memory_space<vmem>>, vector<1x478xf32>
    %c0_29 = arith.constant 0 : index
    %c11 = arith.constant 11 : index
    %68 = vector.load %arg2[%c0_29, %c11] : memref<4x36xf32, #tpu.memory_space<vmem>>, vector<4x1xf32>
    %69 = vector.broadcast %68 : vector<4x1xf32> to vector<4x478xf32>
    %70 = vector.broadcast %67 : vector<1x478xf32> to vector<4x478xf32>
    %71 = arith.mulf %69, %70 : vector<4x478xf32>
    %72 = arith.addf %66, %71 : vector<4x478xf32>
    %c1_30 = arith.constant 1 : index
    %c16_31 = arith.constant 16 : index
    %73 = vector.load %arg0[%c1_30, %c16_31] : memref<4x512xf32, #tpu.memory_space<vmem>>, vector<1x478xf32>
    %c0_32 = arith.constant 0 : index
    %c12 = arith.constant 12 : index
    %74 = vector.load %arg2[%c0_32, %c12] : memref<4x36xf32, #tpu.memory_space<vmem>>, vector<4x1xf32>
    %75 = vector.broadcast %74 : vector<4x1xf32> to vector<4x478xf32>
    %76 = vector.broadcast %73 : vector<1x478xf32> to vector<4x478xf32>
    %77 = arith.mulf %75, %76 : vector<4x478xf32>
    %78 = arith.addf %72, %77 : vector<4x478xf32>
    %c1_33 = arith.constant 1 : index
    %c17_34 = arith.constant 17 : index
    %79 = vector.load %arg0[%c1_33, %c17_34] : memref<4x512xf32, #tpu.memory_space<vmem>>, vector<1x478xf32>
    %c0_35 = arith.constant 0 : index
    %c13 = arith.constant 13 : index
    %80 = vector.load %arg2[%c0_35, %c13] : memref<4x36xf32, #tpu.memory_space<vmem>>, vector<4x1xf32>
    %81 = vector.broadcast %80 : vector<4x1xf32> to vector<4x478xf32>
    %82 = vector.broadcast %79 : vector<1x478xf32> to vector<4x478xf32>
    %83 = arith.mulf %81, %82 : vector<4x478xf32>
    %84 = arith.addf %78, %83 : vector<4x478xf32>
    %c1_36 = arith.constant 1 : index
    %c18_37 = arith.constant 18 : index
    %85 = vector.load %arg0[%c1_36, %c18_37] : memref<4x512xf32, #tpu.memory_space<vmem>>, vector<1x478xf32>
    %c0_38 = arith.constant 0 : index
    %c14 = arith.constant 14 : index
    %86 = vector.load %arg2[%c0_38, %c14] : memref<4x36xf32, #tpu.memory_space<vmem>>, vector<4x1xf32>
    %87 = vector.broadcast %86 : vector<4x1xf32> to vector<4x478xf32>
    %88 = vector.broadcast %85 : vector<1x478xf32> to vector<4x478xf32>
    %89 = arith.mulf %87, %88 : vector<4x478xf32>
    %90 = arith.addf %84, %89 : vector<4x478xf32>
    %c1_39 = arith.constant 1 : index
    %c32_40 = arith.constant 32 : index
    %91 = vector.load %arg0[%c1_39, %c32_40] : memref<4x512xf32, #tpu.memory_space<vmem>>, vector<1x478xf32>
    %c0_41 = arith.constant 0 : index
    %c15 = arith.constant 15 : index
    %92 = vector.load %arg2[%c0_41, %c15] : memref<4x36xf32, #tpu.memory_space<vmem>>, vector<4x1xf32>
    %93 = vector.broadcast %92 : vector<4x1xf32> to vector<4x478xf32>
    %94 = vector.broadcast %91 : vector<1x478xf32> to vector<4x478xf32>
    %95 = arith.mulf %93, %94 : vector<4x478xf32>
    %96 = arith.addf %90, %95 : vector<4x478xf32>
    %c1_42 = arith.constant 1 : index
    %c33_43 = arith.constant 33 : index
    %97 = vector.load %arg0[%c1_42, %c33_43] : memref<4x512xf32, #tpu.memory_space<vmem>>, vector<1x478xf32>
    %c0_44 = arith.constant 0 : index
    %c16_45 = arith.constant 16 : index
    %98 = vector.load %arg2[%c0_44, %c16_45] : memref<4x36xf32, #tpu.memory_space<vmem>>, vector<4x1xf32>
    %99 = vector.broadcast %98 : vector<4x1xf32> to vector<4x478xf32>
    %100 = vector.broadcast %97 : vector<1x478xf32> to vector<4x478xf32>
    %101 = arith.mulf %99, %100 : vector<4x478xf32>
    %102 = arith.addf %96, %101 : vector<4x478xf32>
    %c1_46 = arith.constant 1 : index
    %c34_47 = arith.constant 34 : index
    %103 = vector.load %arg0[%c1_46, %c34_47] : memref<4x512xf32, #tpu.memory_space<vmem>>, vector<1x478xf32>
    %c0_48 = arith.constant 0 : index
    %c17_49 = arith.constant 17 : index
    %104 = vector.load %arg2[%c0_48, %c17_49] : memref<4x36xf32, #tpu.memory_space<vmem>>, vector<4x1xf32>
    %105 = vector.broadcast %104 : vector<4x1xf32> to vector<4x478xf32>
    %106 = vector.broadcast %103 : vector<1x478xf32> to vector<4x478xf32>
    %107 = arith.mulf %105, %106 : vector<4x478xf32>
    %108 = arith.addf %102, %107 : vector<4x478xf32>
    %c2_50 = arith.constant 2 : index
    %c0_51 = arith.constant 0 : index
    %109 = vector.load %arg0[%c2_50, %c0_51] : memref<4x512xf32, #tpu.memory_space<vmem>>, vector<1x478xf32>
    %c0_52 = arith.constant 0 : index
    %c18_53 = arith.constant 18 : index
    %110 = vector.load %arg2[%c0_52, %c18_53] : memref<4x36xf32, #tpu.memory_space<vmem>>, vector<4x1xf32>
    %111 = vector.broadcast %110 : vector<4x1xf32> to vector<4x478xf32>
    %112 = vector.broadcast %109 : vector<1x478xf32> to vector<4x478xf32>
    %113 = arith.mulf %111, %112 : vector<4x478xf32>
    %114 = arith.addf %108, %113 : vector<4x478xf32>
    %c2_54 = arith.constant 2 : index
    %c1_55 = arith.constant 1 : index
    %115 = vector.load %arg0[%c2_54, %c1_55] : memref<4x512xf32, #tpu.memory_space<vmem>>, vector<1x478xf32>
    %c0_56 = arith.constant 0 : index
    %c19 = arith.constant 19 : index
    %116 = vector.load %arg2[%c0_56, %c19] : memref<4x36xf32, #tpu.memory_space<vmem>>, vector<4x1xf32>
    %117 = vector.broadcast %116 : vector<4x1xf32> to vector<4x478xf32>
    %118 = vector.broadcast %115 : vector<1x478xf32> to vector<4x478xf32>
    %119 = arith.mulf %117, %118 : vector<4x478xf32>
    %120 = arith.addf %114, %119 : vector<4x478xf32>
    %c2_57 = arith.constant 2 : index
    %c2_58 = arith.constant 2 : index
    %121 = vector.load %arg0[%c2_57, %c2_58] : memref<4x512xf32, #tpu.memory_space<vmem>>, vector<1x478xf32>
    %c0_59 = arith.constant 0 : index
    %c20 = arith.constant 20 : index
    %122 = vector.load %arg2[%c0_59, %c20] : memref<4x36xf32, #tpu.memory_space<vmem>>, vector<4x1xf32>
    %123 = vector.broadcast %122 : vector<4x1xf32> to vector<4x478xf32>
    %124 = vector.broadcast %121 : vector<1x478xf32> to vector<4x478xf32>
    %125 = arith.mulf %123, %124 : vector<4x478xf32>
    %126 = arith.addf %120, %125 : vector<4x478xf32>
    %c2_60 = arith.constant 2 : index
    %c16_61 = arith.constant 16 : index
    %127 = vector.load %arg0[%c2_60, %c16_61] : memref<4x512xf32, #tpu.memory_space<vmem>>, vector<1x478xf32>
    %c0_62 = arith.constant 0 : index
    %c21 = arith.constant 21 : index
    %128 = vector.load %arg2[%c0_62, %c21] : memref<4x36xf32, #tpu.memory_space<vmem>>, vector<4x1xf32>
    %129 = vector.broadcast %128 : vector<4x1xf32> to vector<4x478xf32>
    %130 = vector.broadcast %127 : vector<1x478xf32> to vector<4x478xf32>
    %131 = arith.mulf %129, %130 : vector<4x478xf32>
    %132 = arith.addf %126, %131 : vector<4x478xf32>
    %c2_63 = arith.constant 2 : index
    %c17_64 = arith.constant 17 : index
    %133 = vector.load %arg0[%c2_63, %c17_64] : memref<4x512xf32, #tpu.memory_space<vmem>>, vector<1x478xf32>
    %c0_65 = arith.constant 0 : index
    %c22 = arith.constant 22 : index
    %134 = vector.load %arg2[%c0_65, %c22] : memref<4x36xf32, #tpu.memory_space<vmem>>, vector<4x1xf32>
    %135 = vector.broadcast %134 : vector<4x1xf32> to vector<4x478xf32>
    %136 = vector.broadcast %133 : vector<1x478xf32> to vector<4x478xf32>
    %137 = arith.mulf %135, %136 : vector<4x478xf32>
    %138 = arith.addf %132, %137 : vector<4x478xf32>
    %c2_66 = arith.constant 2 : index
    %c18_67 = arith.constant 18 : index
    %139 = vector.load %arg0[%c2_66, %c18_67] : memref<4x512xf32, #tpu.memory_space<vmem>>, vector<1x478xf32>
    %c0_68 = arith.constant 0 : index
    %c23 = arith.constant 23 : index
    %140 = vector.load %arg2[%c0_68, %c23] : memref<4x36xf32, #tpu.memory_space<vmem>>, vector<4x1xf32>
    %141 = vector.broadcast %140 : vector<4x1xf32> to vector<4x478xf32>
    %142 = vector.broadcast %139 : vector<1x478xf32> to vector<4x478xf32>
    %143 = arith.mulf %141, %142 : vector<4x478xf32>
    %144 = arith.addf %138, %143 : vector<4x478xf32>
    %c2_69 = arith.constant 2 : index
    %c32_70 = arith.constant 32 : index
    %145 = vector.load %arg0[%c2_69, %c32_70] : memref<4x512xf32, #tpu.memory_space<vmem>>, vector<1x478xf32>
    %c0_71 = arith.constant 0 : index
    %c24 = arith.constant 24 : index
    %146 = vector.load %arg2[%c0_71, %c24] : memref<4x36xf32, #tpu.memory_space<vmem>>, vector<4x1xf32>
    %147 = vector.broadcast %146 : vector<4x1xf32> to vector<4x478xf32>
    %148 = vector.broadcast %145 : vector<1x478xf32> to vector<4x478xf32>
    %149 = arith.mulf %147, %148 : vector<4x478xf32>
    %150 = arith.addf %144, %149 : vector<4x478xf32>
    %c2_72 = arith.constant 2 : index
    %c33_73 = arith.constant 33 : index
    %151 = vector.load %arg0[%c2_72, %c33_73] : memref<4x512xf32, #tpu.memory_space<vmem>>, vector<1x478xf32>
    %c0_74 = arith.constant 0 : index
    %c25 = arith.constant 25 : index
    %152 = vector.load %arg2[%c0_74, %c25] : memref<4x36xf32, #tpu.memory_space<vmem>>, vector<4x1xf32>
    %153 = vector.broadcast %152 : vector<4x1xf32> to vector<4x478xf32>
    %154 = vector.broadcast %151 : vector<1x478xf32> to vector<4x478xf32>
    %155 = arith.mulf %153, %154 : vector<4x478xf32>
    %156 = arith.addf %150, %155 : vector<4x478xf32>
    %c2_75 = arith.constant 2 : index
    %c34_76 = arith.constant 34 : index
    %157 = vector.load %arg0[%c2_75, %c34_76] : memref<4x512xf32, #tpu.memory_space<vmem>>, vector<1x478xf32>
    %c0_77 = arith.constant 0 : index
    %c26 = arith.constant 26 : index
    %158 = vector.load %arg2[%c0_77, %c26] : memref<4x36xf32, #tpu.memory_space<vmem>>, vector<4x1xf32>
    %159 = vector.broadcast %158 : vector<4x1xf32> to vector<4x478xf32>
    %160 = vector.broadcast %157 : vector<1x478xf32> to vector<4x478xf32>
    %161 = arith.mulf %159, %160 : vector<4x478xf32>
    %162 = arith.addf %156, %161 : vector<4x478xf32>
    %c3_78 = arith.constant 3 : index
    %c0_79 = arith.constant 0 : index
    %163 = vector.load %arg0[%c3_78, %c0_79] : memref<4x512xf32, #tpu.memory_space<vmem>>, vector<1x478xf32>
    %c0_80 = arith.constant 0 : index
    %c27 = arith.constant 27 : index
    %164 = vector.load %arg2[%c0_80, %c27] : memref<4x36xf32, #tpu.memory_space<vmem>>, vector<4x1xf32>
    %165 = vector.broadcast %164 : vector<4x1xf32> to vector<4x478xf32>
    %166 = vector.broadcast %163 : vector<1x478xf32> to vector<4x478xf32>
    %167 = arith.mulf %165, %166 : vector<4x478xf32>
    %168 = arith.addf %162, %167 : vector<4x478xf32>
    %c3_81 = arith.constant 3 : index
    %c1_82 = arith.constant 1 : index
    %169 = vector.load %arg0[%c3_81, %c1_82] : memref<4x512xf32, #tpu.memory_space<vmem>>, vector<1x478xf32>
    %c0_83 = arith.constant 0 : index
    %c28 = arith.constant 28 : index
    %170 = vector.load %arg2[%c0_83, %c28] : memref<4x36xf32, #tpu.memory_space<vmem>>, vector<4x1xf32>
    %171 = vector.broadcast %170 : vector<4x1xf32> to vector<4x478xf32>
    %172 = vector.broadcast %169 : vector<1x478xf32> to vector<4x478xf32>
    %173 = arith.mulf %171, %172 : vector<4x478xf32>
    %174 = arith.addf %168, %173 : vector<4x478xf32>
    %c3_84 = arith.constant 3 : index
    %c2_85 = arith.constant 2 : index
    %175 = vector.load %arg0[%c3_84, %c2_85] : memref<4x512xf32, #tpu.memory_space<vmem>>, vector<1x478xf32>
    %c0_86 = arith.constant 0 : index
    %c29 = arith.constant 29 : index
    %176 = vector.load %arg2[%c0_86, %c29] : memref<4x36xf32, #tpu.memory_space<vmem>>, vector<4x1xf32>
    %177 = vector.broadcast %176 : vector<4x1xf32> to vector<4x478xf32>
    %178 = vector.broadcast %175 : vector<1x478xf32> to vector<4x478xf32>
    %179 = arith.mulf %177, %178 : vector<4x478xf32>
    %180 = arith.addf %174, %179 : vector<4x478xf32>
    %c3_87 = arith.constant 3 : index
    %c16_88 = arith.constant 16 : index
    %181 = vector.load %arg0[%c3_87, %c16_88] : memref<4x512xf32, #tpu.memory_space<vmem>>, vector<1x478xf32>
    %c0_89 = arith.constant 0 : index
    %c30 = arith.constant 30 : index
    %182 = vector.load %arg2[%c0_89, %c30] : memref<4x36xf32, #tpu.memory_space<vmem>>, vector<4x1xf32>
    %183 = vector.broadcast %182 : vector<4x1xf32> to vector<4x478xf32>
    %184 = vector.broadcast %181 : vector<1x478xf32> to vector<4x478xf32>
    %185 = arith.mulf %183, %184 : vector<4x478xf32>
    %186 = arith.addf %180, %185 : vector<4x478xf32>
    %c3_90 = arith.constant 3 : index
    %c17_91 = arith.constant 17 : index
    %187 = vector.load %arg0[%c3_90, %c17_91] : memref<4x512xf32, #tpu.memory_space<vmem>>, vector<1x478xf32>
    %c0_92 = arith.constant 0 : index
    %c31 = arith.constant 31 : index
    %188 = vector.load %arg2[%c0_92, %c31] : memref<4x36xf32, #tpu.memory_space<vmem>>, vector<4x1xf32>
    %189 = vector.broadcast %188 : vector<4x1xf32> to vector<4x478xf32>
    %190 = vector.broadcast %187 : vector<1x478xf32> to vector<4x478xf32>
    %191 = arith.mulf %189, %190 : vector<4x478xf32>
    %192 = arith.addf %186, %191 : vector<4x478xf32>
    %c3_93 = arith.constant 3 : index
    %c18_94 = arith.constant 18 : index
    %193 = vector.load %arg0[%c3_93, %c18_94] : memref<4x512xf32, #tpu.memory_space<vmem>>, vector<1x478xf32>
    %c0_95 = arith.constant 0 : index
    %c32_96 = arith.constant 32 : index
    %194 = vector.load %arg2[%c0_95, %c32_96] : memref<4x36xf32, #tpu.memory_space<vmem>>, vector<4x1xf32>
    %195 = vector.broadcast %194 : vector<4x1xf32> to vector<4x478xf32>
    %196 = vector.broadcast %193 : vector<1x478xf32> to vector<4x478xf32>
    %197 = arith.mulf %195, %196 : vector<4x478xf32>
    %198 = arith.addf %192, %197 : vector<4x478xf32>
    %c3_97 = arith.constant 3 : index
    %c32_98 = arith.constant 32 : index
    %199 = vector.load %arg0[%c3_97, %c32_98] : memref<4x512xf32, #tpu.memory_space<vmem>>, vector<1x478xf32>
    %c0_99 = arith.constant 0 : index
    %c33_100 = arith.constant 33 : index
    %200 = vector.load %arg2[%c0_99, %c33_100] : memref<4x36xf32, #tpu.memory_space<vmem>>, vector<4x1xf32>
    %201 = vector.broadcast %200 : vector<4x1xf32> to vector<4x478xf32>
    %202 = vector.broadcast %199 : vector<1x478xf32> to vector<4x478xf32>
    %203 = arith.mulf %201, %202 : vector<4x478xf32>
    %204 = arith.addf %198, %203 : vector<4x478xf32>
    %c3_101 = arith.constant 3 : index
    %c33_102 = arith.constant 33 : index
    %205 = vector.load %arg0[%c3_101, %c33_102] : memref<4x512xf32, #tpu.memory_space<vmem>>, vector<1x478xf32>
    %c0_103 = arith.constant 0 : index
    %c34_104 = arith.constant 34 : index
    %206 = vector.load %arg2[%c0_103, %c34_104] : memref<4x36xf32, #tpu.memory_space<vmem>>, vector<4x1xf32>
    %207 = vector.broadcast %206 : vector<4x1xf32> to vector<4x478xf32>
    %208 = vector.broadcast %205 : vector<1x478xf32> to vector<4x478xf32>
    %209 = arith.mulf %207, %208 : vector<4x478xf32>
    %210 = arith.addf %204, %209 : vector<4x478xf32>
    %c3_105 = arith.constant 3 : index
    %c34_106 = arith.constant 34 : index
    %211 = vector.load %arg0[%c3_105, %c34_106] : memref<4x512xf32, #tpu.memory_space<vmem>>, vector<1x478xf32>
    %c0_107 = arith.constant 0 : index
    %c35 = arith.constant 35 : index
    %212 = vector.load %arg2[%c0_107, %c35] : memref<4x36xf32, #tpu.memory_space<vmem>>, vector<4x1xf32>
    %213 = vector.broadcast %212 : vector<4x1xf32> to vector<4x478xf32>
    %214 = vector.broadcast %211 : vector<1x478xf32> to vector<4x478xf32>
    %215 = arith.mulf %213, %214 : vector<4x478xf32>
    %216 = arith.addf %210, %215 : vector<4x478xf32>
    %c0_108 = arith.constant 0 : index
    %c0_109 = arith.constant 0 : index
    %217 = vector.load %arg1[%c0_108, %c0_109] : memref<3x512xf32, #tpu.memory_space<vmem>>, vector<1x478xf32>
    %218 = vector.broadcast %217 : vector<1x478xf32> to vector<4x478xf32>
    %219 = arith.mulf %216, %218 : vector<4x478xf32>
    %cst_110 = arith.constant dense<0.000000e+00> : vector<4xf32>
    %220 = vector.multi_reduction <add>, %219, %cst_110 [1] : vector<4x478xf32> to vector<4xf32>
    %221 = vector.shape_cast %220 : vector<4xf32> to vector<4x1xf32>
    %cst_111 = arith.constant 0.00255102036 : f32
    %222 = vector.broadcast %cst_111 : f32 to vector<4x1xf32>
    %223 = arith.mulf %221, %222 : vector<4x1xf32>
    %224 = arith.mulf %219, %216 : vector<4x478xf32>
    %cst_112 = arith.constant dense<0.000000e+00> : vector<4xf32>
    %225 = vector.multi_reduction <add>, %224, %cst_112 [1] : vector<4x478xf32> to vector<4xf32>
    %226 = vector.shape_cast %225 : vector<4xf32> to vector<4x1xf32>
    %cst_113 = arith.constant 0.00255102036 : f32
    %227 = vector.broadcast %cst_113 : f32 to vector<4x1xf32>
    %228 = arith.mulf %226, %227 : vector<4x1xf32>
    %229 = arith.mulf %223, %223 : vector<4x1xf32>
    %230 = arith.subf %228, %229 : vector<4x1xf32>
    %c0_114 = arith.constant 0 : index
    %c0_115 = arith.constant 0 : index
    %231 = vector.load %arg3[%c0_114, %c0_115] : memref<4x1xf32, #tpu.memory_space<vmem>>, vector<4x1xf32>
    %cst_116 = arith.constant 9.99999974E-6 : f32
    %232 = vector.broadcast %cst_116 : f32 to vector<4x1xf32>
    %233 = arith.addf %230, %232 : vector<4x1xf32>
    %234 = math.rsqrt %233 : vector<4x1xf32>
    %235 = arith.mulf %231, %234 : vector<4x1xf32>
    %c0_117 = arith.constant 0 : index
    %c0_118 = arith.constant 0 : index
    %236 = vector.load %arg4[%c0_117, %c0_118] : memref<4x1xf32, #tpu.memory_space<vmem>>, vector<4x1xf32>
    %237 = arith.mulf %223, %235 : vector<4x1xf32>
    %238 = arith.subf %236, %237 : vector<4x1xf32>
    %239 = vector.broadcast %235 : vector<4x1xf32> to vector<4x478xf32>
    %240 = arith.mulf %216, %239 : vector<4x478xf32>
    %241 = vector.broadcast %238 : vector<4x1xf32> to vector<4x478xf32>
    %242 = arith.addf %240, %241 : vector<4x478xf32>
    %cst_119 = arith.constant 0.000000e+00 : f32
    %243 = vector.broadcast %cst_119 : f32 to vector<4x478xf32>
    %244 = arith.maximumf %242, %243 : vector<4x478xf32>
    %c0_120 = arith.constant 0 : index
    %c0_121 = arith.constant 0 : index
    %245 = vector.load %arg12[%c0_120, %c0_121] : memref<4x478xf32, #tpu.memory_space<vmem>>, vector<4x478xf32>
    tpu.vector_store %arg12[%c0_120, %c0_121], %244 {strides = array<i32>} : memref<4x478xf32, #tpu.memory_space<vmem>>, vector<4x478xf32>,
    %cst_122 = arith.constant 0.000000e+00 : f32
    %246 = vector.broadcast %cst_122 : f32 to vector<4x444xf32>
    %c0_123 = arith.constant 0 : index
    %c0_124 = arith.constant 0 : index
    %247 = vector.load %arg12[%c0_123, %c0_124] : memref<4x478xf32, #tpu.memory_space<vmem>>, vector<1x444xf32>
    %c0_125 = arith.constant 0 : index
    %c0_126 = arith.constant 0 : index
    %248 = vector.load %arg5[%c0_125, %c0_126] : memref<4x36xf32, #tpu.memory_space<vmem>>, vector<4x1xf32>
    %249 = vector.broadcast %248 : vector<4x1xf32> to vector<4x444xf32>
    %250 = vector.broadcast %247 : vector<1x444xf32> to vector<4x444xf32>
    %251 = arith.mulf %249, %250 : vector<4x444xf32>
    %252 = arith.addf %246, %251 : vector<4x444xf32>
    %c0_127 = arith.constant 0 : index
    %c1_128 = arith.constant 1 : index
    %253 = vector.load %arg12[%c0_127, %c1_128] : memref<4x478xf32, #tpu.memory_space<vmem>>, vector<1x444xf32>
    %c0_129 = arith.constant 0 : index
    %c1_130 = arith.constant 1 : index
    %254 = vector.load %arg5[%c0_129, %c1_130] : memref<4x36xf32, #tpu.memory_space<vmem>>, vector<4x1xf32>
    %255 = vector.broadcast %254 : vector<4x1xf32> to vector<4x444xf32>
    %256 = vector.broadcast %253 : vector<1x444xf32> to vector<4x444xf32>
    %257 = arith.mulf %255, %256 : vector<4x444xf32>
    %258 = arith.addf %252, %257 : vector<4x444xf32>
    %c0_131 = arith.constant 0 : index
    %c2_132 = arith.constant 2 : index
    %259 = vector.load %arg12[%c0_131, %c2_132] : memref<4x478xf32, #tpu.memory_space<vmem>>, vector<1x444xf32>
    %c0_133 = arith.constant 0 : index
    %c2_134 = arith.constant 2 : index
    %260 = vector.load %arg5[%c0_133, %c2_134] : memref<4x36xf32, #tpu.memory_space<vmem>>, vector<4x1xf32>
    %261 = vector.broadcast %260 : vector<4x1xf32> to vector<4x444xf32>
    %262 = vector.broadcast %259 : vector<1x444xf32> to vector<4x444xf32>
    %263 = arith.mulf %261, %262 : vector<4x444xf32>
    %264 = arith.addf %258, %263 : vector<4x444xf32>
    %c0_135 = arith.constant 0 : index
    %c16_136 = arith.constant 16 : index
    %265 = vector.load %arg12[%c0_135, %c16_136] : memref<4x478xf32, #tpu.memory_space<vmem>>, vector<1x444xf32>
    %c0_137 = arith.constant 0 : index
    %c3_138 = arith.constant 3 : index
    %266 = vector.load %arg5[%c0_137, %c3_138] : memref<4x36xf32, #tpu.memory_space<vmem>>, vector<4x1xf32>
    %267 = vector.broadcast %266 : vector<4x1xf32> to vector<4x444xf32>
    %268 = vector.broadcast %265 : vector<1x444xf32> to vector<4x444xf32>
    %269 = arith.mulf %267, %268 : vector<4x444xf32>
    %270 = arith.addf %264, %269 : vector<4x444xf32>
    %c0_139 = arith.constant 0 : index
    %c17_140 = arith.constant 17 : index
    %271 = vector.load %arg12[%c0_139, %c17_140] : memref<4x478xf32, #tpu.memory_space<vmem>>, vector<1x444xf32>
    %c0_141 = arith.constant 0 : index
    %c4_142 = arith.constant 4 : index
    %272 = vector.load %arg5[%c0_141, %c4_142] : memref<4x36xf32, #tpu.memory_space<vmem>>, vector<4x1xf32>
    %273 = vector.broadcast %272 : vector<4x1xf32> to vector<4x444xf32>
    %274 = vector.broadcast %271 : vector<1x444xf32> to vector<4x444xf32>
    %275 = arith.mulf %273, %274 : vector<4x444xf32>
    %276 = arith.addf %270, %275 : vector<4x444xf32>
    %c0_143 = arith.constant 0 : index
    %c18_144 = arith.constant 18 : index
    %277 = vector.load %arg12[%c0_143, %c18_144] : memref<4x478xf32, #tpu.memory_space<vmem>>, vector<1x444xf32>
    %c0_145 = arith.constant 0 : index
    %c5_146 = arith.constant 5 : index
    %278 = vector.load %arg5[%c0_145, %c5_146] : memref<4x36xf32, #tpu.memory_space<vmem>>, vector<4x1xf32>
    %279 = vector.broadcast %278 : vector<4x1xf32> to vector<4x444xf32>
    %280 = vector.broadcast %277 : vector<1x444xf32> to vector<4x444xf32>
    %281 = arith.mulf %279, %280 : vector<4x444xf32>
    %282 = arith.addf %276, %281 : vector<4x444xf32>
    %c0_147 = arith.constant 0 : index
    %c32_148 = arith.constant 32 : index
    %283 = vector.load %arg12[%c0_147, %c32_148] : memref<4x478xf32, #tpu.memory_space<vmem>>, vector<1x444xf32>
    %c0_149 = arith.constant 0 : index
    %c6_150 = arith.constant 6 : index
    %284 = vector.load %arg5[%c0_149, %c6_150] : memref<4x36xf32, #tpu.memory_space<vmem>>, vector<4x1xf32>
    %285 = vector.broadcast %284 : vector<4x1xf32> to vector<4x444xf32>
    %286 = vector.broadcast %283 : vector<1x444xf32> to vector<4x444xf32>
    %287 = arith.mulf %285, %286 : vector<4x444xf32>
    %288 = arith.addf %282, %287 : vector<4x444xf32>
    %c0_151 = arith.constant 0 : index
    %c33_152 = arith.constant 33 : index
    %289 = vector.load %arg12[%c0_151, %c33_152] : memref<4x478xf32, #tpu.memory_space<vmem>>, vector<1x444xf32>
    %c0_153 = arith.constant 0 : index
    %c7_154 = arith.constant 7 : index
    %290 = vector.load %arg5[%c0_153, %c7_154] : memref<4x36xf32, #tpu.memory_space<vmem>>, vector<4x1xf32>
    %291 = vector.broadcast %290 : vector<4x1xf32> to vector<4x444xf32>
    %292 = vector.broadcast %289 : vector<1x444xf32> to vector<4x444xf32>
    %293 = arith.mulf %291, %292 : vector<4x444xf32>
    %294 = arith.addf %288, %293 : vector<4x444xf32>
    %c0_155 = arith.constant 0 : index
    %c34_156 = arith.constant 34 : index
    %295 = vector.load %arg12[%c0_155, %c34_156] : memref<4x478xf32, #tpu.memory_space<vmem>>, vector<1x444xf32>
    %c0_157 = arith.constant 0 : index
    %c8_158 = arith.constant 8 : index
    %296 = vector.load %arg5[%c0_157, %c8_158] : memref<4x36xf32, #tpu.memory_space<vmem>>, vector<4x1xf32>
    %297 = vector.broadcast %296 : vector<4x1xf32> to vector<4x444xf32>
    %298 = vector.broadcast %295 : vector<1x444xf32> to vector<4x444xf32>
    %299 = arith.mulf %297, %298 : vector<4x444xf32>
    %300 = arith.addf %294, %299 : vector<4x444xf32>
    %c1_159 = arith.constant 1 : index
    %c0_160 = arith.constant 0 : index
    %301 = vector.load %arg12[%c1_159, %c0_160] : memref<4x478xf32, #tpu.memory_space<vmem>>, vector<1x444xf32>
    %c0_161 = arith.constant 0 : index
    %c9_162 = arith.constant 9 : index
    %302 = vector.load %arg5[%c0_161, %c9_162] : memref<4x36xf32, #tpu.memory_space<vmem>>, vector<4x1xf32>
    %303 = vector.broadcast %302 : vector<4x1xf32> to vector<4x444xf32>
    %304 = vector.broadcast %301 : vector<1x444xf32> to vector<4x444xf32>
    %305 = arith.mulf %303, %304 : vector<4x444xf32>
    %306 = arith.addf %300, %305 : vector<4x444xf32>
    %c1_163 = arith.constant 1 : index
    %c1_164 = arith.constant 1 : index
    %307 = vector.load %arg12[%c1_163, %c1_164] : memref<4x478xf32, #tpu.memory_space<vmem>>, vector<1x444xf32>
    %c0_165 = arith.constant 0 : index
    %c10_166 = arith.constant 10 : index
    %308 = vector.load %arg5[%c0_165, %c10_166] : memref<4x36xf32, #tpu.memory_space<vmem>>, vector<4x1xf32>
    %309 = vector.broadcast %308 : vector<4x1xf32> to vector<4x444xf32>
    %310 = vector.broadcast %307 : vector<1x444xf32> to vector<4x444xf32>
    %311 = arith.mulf %309, %310 : vector<4x444xf32>
    %312 = arith.addf %306, %311 : vector<4x444xf32>
    %c1_167 = arith.constant 1 : index
    %c2_168 = arith.constant 2 : index
    %313 = vector.load %arg12[%c1_167, %c2_168] : memref<4x478xf32, #tpu.memory_space<vmem>>, vector<1x444xf32>
    %c0_169 = arith.constant 0 : index
    %c11_170 = arith.constant 11 : index
    %314 = vector.load %arg5[%c0_169, %c11_170] : memref<4x36xf32, #tpu.memory_space<vmem>>, vector<4x1xf32>
    %315 = vector.broadcast %314 : vector<4x1xf32> to vector<4x444xf32>
    %316 = vector.broadcast %313 : vector<1x444xf32> to vector<4x444xf32>
    %317 = arith.mulf %315, %316 : vector<4x444xf32>
    %318 = arith.addf %312, %317 : vector<4x444xf32>
    %c1_171 = arith.constant 1 : index
    %c16_172 = arith.constant 16 : index
    %319 = vector.load %arg12[%c1_171, %c16_172] : memref<4x478xf32, #tpu.memory_space<vmem>>, vector<1x444xf32>
    %c0_173 = arith.constant 0 : index
    %c12_174 = arith.constant 12 : index
    %320 = vector.load %arg5[%c0_173, %c12_174] : memref<4x36xf32, #tpu.memory_space<vmem>>, vector<4x1xf32>
    %321 = vector.broadcast %320 : vector<4x1xf32> to vector<4x444xf32>
    %322 = vector.broadcast %319 : vector<1x444xf32> to vector<4x444xf32>
    %323 = arith.mulf %321, %322 : vector<4x444xf32>
    %324 = arith.addf %318, %323 : vector<4x444xf32>
    %c1_175 = arith.constant 1 : index
    %c17_176 = arith.constant 17 : index
    %325 = vector.load %arg12[%c1_175, %c17_176] : memref<4x478xf32, #tpu.memory_space<vmem>>, vector<1x444xf32>
    %c0_177 = arith.constant 0 : index
    %c13_178 = arith.constant 13 : index
    %326 = vector.load %arg5[%c0_177, %c13_178] : memref<4x36xf32, #tpu.memory_space<vmem>>, vector<4x1xf32>
    %327 = vector.broadcast %326 : vector<4x1xf32> to vector<4x444xf32>
    %328 = vector.broadcast %325 : vector<1x444xf32> to vector<4x444xf32>
    %329 = arith.mulf %327, %328 : vector<4x444xf32>
    %330 = arith.addf %324, %329 : vector<4x444xf32>
    %c1_179 = arith.constant 1 : index
    %c18_180 = arith.constant 18 : index
    %331 = vector.load %arg12[%c1_179, %c18_180] : memref<4x478xf32, #tpu.memory_space<vmem>>, vector<1x444xf32>
    %c0_181 = arith.constant 0 : index
    %c14_182 = arith.constant 14 : index
    %332 = vector.load %arg5[%c0_181, %c14_182] : memref<4x36xf32, #tpu.memory_space<vmem>>, vector<4x1xf32>
    %333 = vector.broadcast %332 : vector<4x1xf32> to vector<4x444xf32>
    %334 = vector.broadcast %331 : vector<1x444xf32> to vector<4x444xf32>
    %335 = arith.mulf %333, %334 : vector<4x444xf32>
    %336 = arith.addf %330, %335 : vector<4x444xf32>
    %c1_183 = arith.constant 1 : index
    %c32_184 = arith.constant 32 : index
    %337 = vector.load %arg12[%c1_183, %c32_184] : memref<4x478xf32, #tpu.memory_space<vmem>>, vector<1x444xf32>
    %c0_185 = arith.constant 0 : index
    %c15_186 = arith.constant 15 : index
    %338 = vector.load %arg5[%c0_185, %c15_186] : memref<4x36xf32, #tpu.memory_space<vmem>>, vector<4x1xf32>
    %339 = vector.broadcast %338 : vector<4x1xf32> to vector<4x444xf32>
    %340 = vector.broadcast %337 : vector<1x444xf32> to vector<4x444xf32>
    %341 = arith.mulf %339, %340 : vector<4x444xf32>
    %342 = arith.addf %336, %341 : vector<4x444xf32>
    %c1_187 = arith.constant 1 : index
    %c33_188 = arith.constant 33 : index
    %343 = vector.load %arg12[%c1_187, %c33_188] : memref<4x478xf32, #tpu.memory_space<vmem>>, vector<1x444xf32>
    %c0_189 = arith.constant 0 : index
    %c16_190 = arith.constant 16 : index
    %344 = vector.load %arg5[%c0_189, %c16_190] : memref<4x36xf32, #tpu.memory_space<vmem>>, vector<4x1xf32>
    %345 = vector.broadcast %344 : vector<4x1xf32> to vector<4x444xf32>
    %346 = vector.broadcast %343 : vector<1x444xf32> to vector<4x444xf32>
    %347 = arith.mulf %345, %346 : vector<4x444xf32>
    %348 = arith.addf %342, %347 : vector<4x444xf32>
    %c1_191 = arith.constant 1 : index
    %c34_192 = arith.constant 34 : index
    %349 = vector.load %arg12[%c1_191, %c34_192] : memref<4x478xf32, #tpu.memory_space<vmem>>, vector<1x444xf32>
    %c0_193 = arith.constant 0 : index
    %c17_194 = arith.constant 17 : index
    %350 = vector.load %arg5[%c0_193, %c17_194] : memref<4x36xf32, #tpu.memory_space<vmem>>, vector<4x1xf32>
    %351 = vector.broadcast %350 : vector<4x1xf32> to vector<4x444xf32>
    %352 = vector.broadcast %349 : vector<1x444xf32> to vector<4x444xf32>
    %353 = arith.mulf %351, %352 : vector<4x444xf32>
    %354 = arith.addf %348, %353 : vector<4x444xf32>
    %c2_195 = arith.constant 2 : index
    %c0_196 = arith.constant 0 : index
    %355 = vector.load %arg12[%c2_195, %c0_196] : memref<4x478xf32, #tpu.memory_space<vmem>>, vector<1x444xf32>
    %c0_197 = arith.constant 0 : index
    %c18_198 = arith.constant 18 : index
    %356 = vector.load %arg5[%c0_197, %c18_198] : memref<4x36xf32, #tpu.memory_space<vmem>>, vector<4x1xf32>
    %357 = vector.broadcast %356 : vector<4x1xf32> to vector<4x444xf32>
    %358 = vector.broadcast %355 : vector<1x444xf32> to vector<4x444xf32>
    %359 = arith.mulf %357, %358 : vector<4x444xf32>
    %360 = arith.addf %354, %359 : vector<4x444xf32>
    %c2_199 = arith.constant 2 : index
    %c1_200 = arith.constant 1 : index
    %361 = vector.load %arg12[%c2_199, %c1_200] : memref<4x478xf32, #tpu.memory_space<vmem>>, vector<1x444xf32>
    %c0_201 = arith.constant 0 : index
    %c19_202 = arith.constant 19 : index
    %362 = vector.load %arg5[%c0_201, %c19_202] : memref<4x36xf32, #tpu.memory_space<vmem>>, vector<4x1xf32>
    %363 = vector.broadcast %362 : vector<4x1xf32> to vector<4x444xf32>
    %364 = vector.broadcast %361 : vector<1x444xf32> to vector<4x444xf32>
    %365 = arith.mulf %363, %364 : vector<4x444xf32>
    %366 = arith.addf %360, %365 : vector<4x444xf32>
    %c2_203 = arith.constant 2 : index
    %c2_204 = arith.constant 2 : index
    %367 = vector.load %arg12[%c2_203, %c2_204] : memref<4x478xf32, #tpu.memory_space<vmem>>, vector<1x444xf32>
    %c0_205 = arith.constant 0 : index
    %c20_206 = arith.constant 20 : index
    %368 = vector.load %arg5[%c0_205, %c20_206] : memref<4x36xf32, #tpu.memory_space<vmem>>, vector<4x1xf32>
    %369 = vector.broadcast %368 : vector<4x1xf32> to vector<4x444xf32>
    %370 = vector.broadcast %367 : vector<1x444xf32> to vector<4x444xf32>
    %371 = arith.mulf %369, %370 : vector<4x444xf32>
    %372 = arith.addf %366, %371 : vector<4x444xf32>
    %c2_207 = arith.constant 2 : index
    %c16_208 = arith.constant 16 : index
    %373 = vector.load %arg12[%c2_207, %c16_208] : memref<4x478xf32, #tpu.memory_space<vmem>>, vector<1x444xf32>
    %c0_209 = arith.constant 0 : index
    %c21_210 = arith.constant 21 : index
    %374 = vector.load %arg5[%c0_209, %c21_210] : memref<4x36xf32, #tpu.memory_space<vmem>>, vector<4x1xf32>
    %375 = vector.broadcast %374 : vector<4x1xf32> to vector<4x444xf32>
    %376 = vector.broadcast %373 : vector<1x444xf32> to vector<4x444xf32>
    %377 = arith.mulf %375, %376 : vector<4x444xf32>
    %378 = arith.addf %372, %377 : vector<4x444xf32>
    %c2_211 = arith.constant 2 : index
    %c17_212 = arith.constant 17 : index
    %379 = vector.load %arg12[%c2_211, %c17_212] : memref<4x478xf32, #tpu.memory_space<vmem>>, vector<1x444xf32>
    %c0_213 = arith.constant 0 : index
    %c22_214 = arith.constant 22 : index
    %380 = vector.load %arg5[%c0_213, %c22_214] : memref<4x36xf32, #tpu.memory_space<vmem>>, vector<4x1xf32>
    %381 = vector.broadcast %380 : vector<4x1xf32> to vector<4x444xf32>
    %382 = vector.broadcast %379 : vector<1x444xf32> to vector<4x444xf32>
    %383 = arith.mulf %381, %382 : vector<4x444xf32>
    %384 = arith.addf %378, %383 : vector<4x444xf32>
    %c2_215 = arith.constant 2 : index
    %c18_216 = arith.constant 18 : index
    %385 = vector.load %arg12[%c2_215, %c18_216] : memref<4x478xf32, #tpu.memory_space<vmem>>, vector<1x444xf32>
    %c0_217 = arith.constant 0 : index
    %c23_218 = arith.constant 23 : index
    %386 = vector.load %arg5[%c0_217, %c23_218] : memref<4x36xf32, #tpu.memory_space<vmem>>, vector<4x1xf32>
    %387 = vector.broadcast %386 : vector<4x1xf32> to vector<4x444xf32>
    %388 = vector.broadcast %385 : vector<1x444xf32> to vector<4x444xf32>
    %389 = arith.mulf %387, %388 : vector<4x444xf32>
    %390 = arith.addf %384, %389 : vector<4x444xf32>
    %c2_219 = arith.constant 2 : index
    %c32_220 = arith.constant 32 : index
    %391 = vector.load %arg12[%c2_219, %c32_220] : memref<4x478xf32, #tpu.memory_space<vmem>>, vector<1x444xf32>
    %c0_221 = arith.constant 0 : index
    %c24_222 = arith.constant 24 : index
    %392 = vector.load %arg5[%c0_221, %c24_222] : memref<4x36xf32, #tpu.memory_space<vmem>>, vector<4x1xf32>
    %393 = vector.broadcast %392 : vector<4x1xf32> to vector<4x444xf32>
    %394 = vector.broadcast %391 : vector<1x444xf32> to vector<4x444xf32>
    %395 = arith.mulf %393, %394 : vector<4x444xf32>
    %396 = arith.addf %390, %395 : vector<4x444xf32>
    %c2_223 = arith.constant 2 : index
    %c33_224 = arith.constant 33 : index
    %397 = vector.load %arg12[%c2_223, %c33_224] : memref<4x478xf32, #tpu.memory_space<vmem>>, vector<1x444xf32>
    %c0_225 = arith.constant 0 : index
    %c25_226 = arith.constant 25 : index
    %398 = vector.load %arg5[%c0_225, %c25_226] : memref<4x36xf32, #tpu.memory_space<vmem>>, vector<4x1xf32>
    %399 = vector.broadcast %398 : vector<4x1xf32> to vector<4x444xf32>
    %400 = vector.broadcast %397 : vector<1x444xf32> to vector<4x444xf32>
    %401 = arith.mulf %399, %400 : vector<4x444xf32>
    %402 = arith.addf %396, %401 : vector<4x444xf32>
    %c2_227 = arith.constant 2 : index
    %c34_228 = arith.constant 34 : index
    %403 = vector.load %arg12[%c2_227, %c34_228] : memref<4x478xf32, #tpu.memory_space<vmem>>, vector<1x444xf32>
    %c0_229 = arith.constant 0 : index
    %c26_230 = arith.constant 26 : index
    %404 = vector.load %arg5[%c0_229, %c26_230] : memref<4x36xf32, #tpu.memory_space<vmem>>, vector<4x1xf32>
    %405 = vector.broadcast %404 : vector<4x1xf32> to vector<4x444xf32>
    %406 = vector.broadcast %403 : vector<1x444xf32> to vector<4x444xf32>
    %407 = arith.mulf %405, %406 : vector<4x444xf32>
    %408 = arith.addf %402, %407 : vector<4x444xf32>
    %c3_231 = arith.constant 3 : index
    %c0_232 = arith.constant 0 : index
    %409 = vector.load %arg12[%c3_231, %c0_232] : memref<4x478xf32, #tpu.memory_space<vmem>>, vector<1x444xf32>
    %c0_233 = arith.constant 0 : index
    %c27_234 = arith.constant 27 : index
    %410 = vector.load %arg5[%c0_233, %c27_234] : memref<4x36xf32, #tpu.memory_space<vmem>>, vector<4x1xf32>
    %411 = vector.broadcast %410 : vector<4x1xf32> to vector<4x444xf32>
    %412 = vector.broadcast %409 : vector<1x444xf32> to vector<4x444xf32>
    %413 = arith.mulf %411, %412 : vector<4x444xf32>
    %414 = arith.addf %408, %413 : vector<4x444xf32>
    %c3_235 = arith.constant 3 : index
    %c1_236 = arith.constant 1 : index
    %415 = vector.load %arg12[%c3_235, %c1_236] : memref<4x478xf32, #tpu.memory_space<vmem>>, vector<1x444xf32>
    %c0_237 = arith.constant 0 : index
    %c28_238 = arith.constant 28 : index
    %416 = vector.load %arg5[%c0_237, %c28_238] : memref<4x36xf32, #tpu.memory_space<vmem>>, vector<4x1xf32>
    %417 = vector.broadcast %416 : vector<4x1xf32> to vector<4x444xf32>
    %418 = vector.broadcast %415 : vector<1x444xf32> to vector<4x444xf32>
    %419 = arith.mulf %417, %418 : vector<4x444xf32>
    %420 = arith.addf %414, %419 : vector<4x444xf32>
    %c3_239 = arith.constant 3 : index
    %c2_240 = arith.constant 2 : index
    %421 = vector.load %arg12[%c3_239, %c2_240] : memref<4x478xf32, #tpu.memory_space<vmem>>, vector<1x444xf32>
    %c0_241 = arith.constant 0 : index
    %c29_242 = arith.constant 29 : index
    %422 = vector.load %arg5[%c0_241, %c29_242] : memref<4x36xf32, #tpu.memory_space<vmem>>, vector<4x1xf32>
    %423 = vector.broadcast %422 : vector<4x1xf32> to vector<4x444xf32>
    %424 = vector.broadcast %421 : vector<1x444xf32> to vector<4x444xf32>
    %425 = arith.mulf %423, %424 : vector<4x444xf32>
    %426 = arith.addf %420, %425 : vector<4x444xf32>
    %c3_243 = arith.constant 3 : index
    %c16_244 = arith.constant 16 : index
    %427 = vector.load %arg12[%c3_243, %c16_244] : memref<4x478xf32, #tpu.memory_space<vmem>>, vector<1x444xf32>
    %c0_245 = arith.constant 0 : index
    %c30_246 = arith.constant 30 : index
    %428 = vector.load %arg5[%c0_245, %c30_246] : memref<4x36xf32, #tpu.memory_space<vmem>>, vector<4x1xf32>
    %429 = vector.broadcast %428 : vector<4x1xf32> to vector<4x444xf32>
    %430 = vector.broadcast %427 : vector<1x444xf32> to vector<4x444xf32>
    %431 = arith.mulf %429, %430 : vector<4x444xf32>
    %432 = arith.addf %426, %431 : vector<4x444xf32>
    %c3_247 = arith.constant 3 : index
    %c17_248 = arith.constant 17 : index
    %433 = vector.load %arg12[%c3_247, %c17_248] : memref<4x478xf32, #tpu.memory_space<vmem>>, vector<1x444xf32>
    %c0_249 = arith.constant 0 : index
    %c31_250 = arith.constant 31 : index
    %434 = vector.load %arg5[%c0_249, %c31_250] : memref<4x36xf32, #tpu.memory_space<vmem>>, vector<4x1xf32>
    %435 = vector.broadcast %434 : vector<4x1xf32> to vector<4x444xf32>
    %436 = vector.broadcast %433 : vector<1x444xf32> to vector<4x444xf32>
    %437 = arith.mulf %435, %436 : vector<4x444xf32>
    %438 = arith.addf %432, %437 : vector<4x444xf32>
    %c3_251 = arith.constant 3 : index
    %c18_252 = arith.constant 18 : index
    %439 = vector.load %arg12[%c3_251, %c18_252] : memref<4x478xf32, #tpu.memory_space<vmem>>, vector<1x444xf32>
    %c0_253 = arith.constant 0 : index
    %c32_254 = arith.constant 32 : index
    %440 = vector.load %arg5[%c0_253, %c32_254] : memref<4x36xf32, #tpu.memory_space<vmem>>, vector<4x1xf32>
    %441 = vector.broadcast %440 : vector<4x1xf32> to vector<4x444xf32>
    %442 = vector.broadcast %439 : vector<1x444xf32> to vector<4x444xf32>
    %443 = arith.mulf %441, %442 : vector<4x444xf32>
    %444 = arith.addf %438, %443 : vector<4x444xf32>
    %c3_255 = arith.constant 3 : index
    %c32_256 = arith.constant 32 : index
    %445 = vector.load %arg12[%c3_255, %c32_256] : memref<4x478xf32, #tpu.memory_space<vmem>>, vector<1x444xf32>
    %c0_257 = arith.constant 0 : index
    %c33_258 = arith.constant 33 : index
    %446 = vector.load %arg5[%c0_257, %c33_258] : memref<4x36xf32, #tpu.memory_space<vmem>>, vector<4x1xf32>
    %447 = vector.broadcast %446 : vector<4x1xf32> to vector<4x444xf32>
    %448 = vector.broadcast %445 : vector<1x444xf32> to vector<4x444xf32>
    %449 = arith.mulf %447, %448 : vector<4x444xf32>
    %450 = arith.addf %444, %449 : vector<4x444xf32>
    %c3_259 = arith.constant 3 : index
    %c33_260 = arith.constant 33 : index
    %451 = vector.load %arg12[%c3_259, %c33_260] : memref<4x478xf32, #tpu.memory_space<vmem>>, vector<1x444xf32>
    %c0_261 = arith.constant 0 : index
    %c34_262 = arith.constant 34 : index
    %452 = vector.load %arg5[%c0_261, %c34_262] : memref<4x36xf32, #tpu.memory_space<vmem>>, vector<4x1xf32>
    %453 = vector.broadcast %452 : vector<4x1xf32> to vector<4x444xf32>
    %454 = vector.broadcast %451 : vector<1x444xf32> to vector<4x444xf32>
    %455 = arith.mulf %453, %454 : vector<4x444xf32>
    %456 = arith.addf %450, %455 : vector<4x444xf32>
    %c3_263 = arith.constant 3 : index
    %c34_264 = arith.constant 34 : index
    %457 = vector.load %arg12[%c3_263, %c34_264] : memref<4x478xf32, #tpu.memory_space<vmem>>, vector<1x444xf32>
    %c0_265 = arith.constant 0 : index
    %c35_266 = arith.constant 35 : index
    %458 = vector.load %arg5[%c0_265, %c35_266] : memref<4x36xf32, #tpu.memory_space<vmem>>, vector<4x1xf32>
    %459 = vector.broadcast %458 : vector<4x1xf32> to vector<4x444xf32>
    %460 = vector.broadcast %457 : vector<1x444xf32> to vector<4x444xf32>
    %461 = arith.mulf %459, %460 : vector<4x444xf32>
    %462 = arith.addf %456, %461 : vector<4x444xf32>
    %c1_267 = arith.constant 1 : index
    %c0_268 = arith.constant 0 : index
    %463 = vector.load %arg1[%c1_267, %c0_268] : memref<3x512xf32, #tpu.memory_space<vmem>>, vector<1x444xf32>
    %464 = vector.broadcast %463 : vector<1x444xf32> to vector<4x444xf32>
    %465 = arith.mulf %462, %464 : vector<4x444xf32>
    %cst_269 = arith.constant dense<0.000000e+00> : vector<4xf32>
    %466 = vector.multi_reduction <add>, %465, %cst_269 [1] : vector<4x444xf32> to vector<4xf32>
    %467 = vector.shape_cast %466 : vector<4xf32> to vector<4x1xf32>
    %cst_270 = arith.constant 0.00347222225 : f32
    %468 = vector.broadcast %cst_270 : f32 to vector<4x1xf32>
    %469 = arith.mulf %467, %468 : vector<4x1xf32>
    %470 = arith.mulf %465, %462 : vector<4x444xf32>
    %cst_271 = arith.constant dense<0.000000e+00> : vector<4xf32>
    %471 = vector.multi_reduction <add>, %470, %cst_271 [1] : vector<4x444xf32> to vector<4xf32>
    %472 = vector.shape_cast %471 : vector<4xf32> to vector<4x1xf32>
    %cst_272 = arith.constant 0.00347222225 : f32
    %473 = vector.broadcast %cst_272 : f32 to vector<4x1xf32>
    %474 = arith.mulf %472, %473 : vector<4x1xf32>
    %475 = arith.mulf %469, %469 : vector<4x1xf32>
    %476 = arith.subf %474, %475 : vector<4x1xf32>
    %c0_273 = arith.constant 0 : index
    %c0_274 = arith.constant 0 : index
    %477 = vector.load %arg6[%c0_273, %c0_274] : memref<4x1xf32, #tpu.memory_space<vmem>>, vector<4x1xf32>
    %cst_275 = arith.constant 9.99999974E-6 : f32
    %478 = vector.broadcast %cst_275 : f32 to vector<4x1xf32>
    %479 = arith.addf %476, %478 : vector<4x1xf32>
    %480 = math.rsqrt %479 : vector<4x1xf32>
    %481 = arith.mulf %477, %480 : vector<4x1xf32>
    %c0_276 = arith.constant 0 : index
    %c0_277 = arith.constant 0 : index
    %482 = vector.load %arg7[%c0_276, %c0_277] : memref<4x1xf32, #tpu.memory_space<vmem>>, vector<4x1xf32>
    %483 = arith.mulf %469, %481 : vector<4x1xf32>
    %484 = arith.subf %482, %483 : vector<4x1xf32>
    %485 = vector.broadcast %481 : vector<4x1xf32> to vector<4x444xf32>
    %486 = arith.mulf %462, %485 : vector<4x444xf32>
    %487 = vector.broadcast %484 : vector<4x1xf32> to vector<4x444xf32>
    %488 = arith.addf %486, %487 : vector<4x444xf32>
    %cst_278 = arith.constant 0.000000e+00 : f32
    %489 = vector.broadcast %cst_278 : f32 to vector<4x444xf32>
    %490 = arith.maximumf %488, %489 : vector<4x444xf32>
    %c0_279 = arith.constant 0 : index
    %c34_280 = arith.constant 34 : index
    %491 = vector.load %arg0[%c0_279, %c34_280] : memref<4x512xf32, #tpu.memory_space<vmem>>, vector<4x444xf32>
    %492 = arith.addf %490, %491 : vector<4x444xf32>
    %c0_281 = arith.constant 0 : index
    %c0_282 = arith.constant 0 : index
    %493 = vector.load %arg13[%c0_281, %c0_282] : memref<4x444xf32, #tpu.memory_space<vmem>>, vector<4x444xf32>
    tpu.vector_store %arg13[%c0_281, %c0_282], %492 {strides = array<i32>} : memref<4x444xf32, #tpu.memory_space<vmem>>, vector<4x444xf32>,
    %cst_283 = arith.constant 0.000000e+00 : f32
    %494 = vector.broadcast %cst_283 : f32 to vector<4x410xf32>
    %c0_284 = arith.constant 0 : index
    %c0_285 = arith.constant 0 : index
    %495 = vector.load %arg13[%c0_284, %c0_285] : memref<4x444xf32, #tpu.memory_space<vmem>>, vector<1x410xf32>
    %c0_286 = arith.constant 0 : index
    %c0_287 = arith.constant 0 : index
    %496 = vector.load %arg8[%c0_286, %c0_287] : memref<4x36xf32, #tpu.memory_space<vmem>>, vector<4x1xf32>
    %497 = vector.broadcast %496 : vector<4x1xf32> to vector<4x410xf32>
    %498 = vector.broadcast %495 : vector<1x410xf32> to vector<4x410xf32>
    %499 = arith.mulf %497, %498 : vector<4x410xf32>
    %500 = arith.addf %494, %499 : vector<4x410xf32>
    %c0_288 = arith.constant 0 : index
    %c1_289 = arith.constant 1 : index
    %501 = vector.load %arg13[%c0_288, %c1_289] : memref<4x444xf32, #tpu.memory_space<vmem>>, vector<1x410xf32>
    %c0_290 = arith.constant 0 : index
    %c1_291 = arith.constant 1 : index
    %502 = vector.load %arg8[%c0_290, %c1_291] : memref<4x36xf32, #tpu.memory_space<vmem>>, vector<4x1xf32>
    %503 = vector.broadcast %502 : vector<4x1xf32> to vector<4x410xf32>
    %504 = vector.broadcast %501 : vector<1x410xf32> to vector<4x410xf32>
    %505 = arith.mulf %503, %504 : vector<4x410xf32>
    %506 = arith.addf %500, %505 : vector<4x410xf32>
    %c0_292 = arith.constant 0 : index
    %c2_293 = arith.constant 2 : index
    %507 = vector.load %arg13[%c0_292, %c2_293] : memref<4x444xf32, #tpu.memory_space<vmem>>, vector<1x410xf32>
    %c0_294 = arith.constant 0 : index
    %c2_295 = arith.constant 2 : index
    %508 = vector.load %arg8[%c0_294, %c2_295] : memref<4x36xf32, #tpu.memory_space<vmem>>, vector<4x1xf32>
    %509 = vector.broadcast %508 : vector<4x1xf32> to vector<4x410xf32>
    %510 = vector.broadcast %507 : vector<1x410xf32> to vector<4x410xf32>
    %511 = arith.mulf %509, %510 : vector<4x410xf32>
    %512 = arith.addf %506, %511 : vector<4x410xf32>
    %c0_296 = arith.constant 0 : index
    %c16_297 = arith.constant 16 : index
    %513 = vector.load %arg13[%c0_296, %c16_297] : memref<4x444xf32, #tpu.memory_space<vmem>>, vector<1x410xf32>
    %c0_298 = arith.constant 0 : index
    %c3_299 = arith.constant 3 : index
    %514 = vector.load %arg8[%c0_298, %c3_299] : memref<4x36xf32, #tpu.memory_space<vmem>>, vector<4x1xf32>
    %515 = vector.broadcast %514 : vector<4x1xf32> to vector<4x410xf32>
    %516 = vector.broadcast %513 : vector<1x410xf32> to vector<4x410xf32>
    %517 = arith.mulf %515, %516 : vector<4x410xf32>
    %518 = arith.addf %512, %517 : vector<4x410xf32>
    %c0_300 = arith.constant 0 : index
    %c17_301 = arith.constant 17 : index
    %519 = vector.load %arg13[%c0_300, %c17_301] : memref<4x444xf32, #tpu.memory_space<vmem>>, vector<1x410xf32>
    %c0_302 = arith.constant 0 : index
    %c4_303 = arith.constant 4 : index
    %520 = vector.load %arg8[%c0_302, %c4_303] : memref<4x36xf32, #tpu.memory_space<vmem>>, vector<4x1xf32>
    %521 = vector.broadcast %520 : vector<4x1xf32> to vector<4x410xf32>
    %522 = vector.broadcast %519 : vector<1x410xf32> to vector<4x410xf32>
    %523 = arith.mulf %521, %522 : vector<4x410xf32>
    %524 = arith.addf %518, %523 : vector<4x410xf32>
    %c0_304 = arith.constant 0 : index
    %c18_305 = arith.constant 18 : index
    %525 = vector.load %arg13[%c0_304, %c18_305] : memref<4x444xf32, #tpu.memory_space<vmem>>, vector<1x410xf32>
    %c0_306 = arith.constant 0 : index
    %c5_307 = arith.constant 5 : index
    %526 = vector.load %arg8[%c0_306, %c5_307] : memref<4x36xf32, #tpu.memory_space<vmem>>, vector<4x1xf32>
    %527 = vector.broadcast %526 : vector<4x1xf32> to vector<4x410xf32>
    %528 = vector.broadcast %525 : vector<1x410xf32> to vector<4x410xf32>
    %529 = arith.mulf %527, %528 : vector<4x410xf32>
    %530 = arith.addf %524, %529 : vector<4x410xf32>
    %c0_308 = arith.constant 0 : index
    %c32_309 = arith.constant 32 : index
    %531 = vector.load %arg13[%c0_308, %c32_309] : memref<4x444xf32, #tpu.memory_space<vmem>>, vector<1x410xf32>
    %c0_310 = arith.constant 0 : index
    %c6_311 = arith.constant 6 : index
    %532 = vector.load %arg8[%c0_310, %c6_311] : memref<4x36xf32, #tpu.memory_space<vmem>>, vector<4x1xf32>
    %533 = vector.broadcast %532 : vector<4x1xf32> to vector<4x410xf32>
    %534 = vector.broadcast %531 : vector<1x410xf32> to vector<4x410xf32>
    %535 = arith.mulf %533, %534 : vector<4x410xf32>
    %536 = arith.addf %530, %535 : vector<4x410xf32>
    %c0_312 = arith.constant 0 : index
    %c33_313 = arith.constant 33 : index
    %537 = vector.load %arg13[%c0_312, %c33_313] : memref<4x444xf32, #tpu.memory_space<vmem>>, vector<1x410xf32>
    %c0_314 = arith.constant 0 : index
    %c7_315 = arith.constant 7 : index
    %538 = vector.load %arg8[%c0_314, %c7_315] : memref<4x36xf32, #tpu.memory_space<vmem>>, vector<4x1xf32>
    %539 = vector.broadcast %538 : vector<4x1xf32> to vector<4x410xf32>
    %540 = vector.broadcast %537 : vector<1x410xf32> to vector<4x410xf32>
    %541 = arith.mulf %539, %540 : vector<4x410xf32>
    %542 = arith.addf %536, %541 : vector<4x410xf32>
    %c0_316 = arith.constant 0 : index
    %c34_317 = arith.constant 34 : index
    %543 = vector.load %arg13[%c0_316, %c34_317] : memref<4x444xf32, #tpu.memory_space<vmem>>, vector<1x410xf32>
    %c0_318 = arith.constant 0 : index
    %c8_319 = arith.constant 8 : index
    %544 = vector.load %arg8[%c0_318, %c8_319] : memref<4x36xf32, #tpu.memory_space<vmem>>, vector<4x1xf32>
    %545 = vector.broadcast %544 : vector<4x1xf32> to vector<4x410xf32>
    %546 = vector.broadcast %543 : vector<1x410xf32> to vector<4x410xf32>
    %547 = arith.mulf %545, %546 : vector<4x410xf32>
    %548 = arith.addf %542, %547 : vector<4x410xf32>
    %c1_320 = arith.constant 1 : index
    %c0_321 = arith.constant 0 : index
    %549 = vector.load %arg13[%c1_320, %c0_321] : memref<4x444xf32, #tpu.memory_space<vmem>>, vector<1x410xf32>
    %c0_322 = arith.constant 0 : index
    %c9_323 = arith.constant 9 : index
    %550 = vector.load %arg8[%c0_322, %c9_323] : memref<4x36xf32, #tpu.memory_space<vmem>>, vector<4x1xf32>
    %551 = vector.broadcast %550 : vector<4x1xf32> to vector<4x410xf32>
    %552 = vector.broadcast %549 : vector<1x410xf32> to vector<4x410xf32>
    %553 = arith.mulf %551, %552 : vector<4x410xf32>
    %554 = arith.addf %548, %553 : vector<4x410xf32>
    %c1_324 = arith.constant 1 : index
    %c1_325 = arith.constant 1 : index
    %555 = vector.load %arg13[%c1_324, %c1_325] : memref<4x444xf32, #tpu.memory_space<vmem>>, vector<1x410xf32>
    %c0_326 = arith.constant 0 : index
    %c10_327 = arith.constant 10 : index
    %556 = vector.load %arg8[%c0_326, %c10_327] : memref<4x36xf32, #tpu.memory_space<vmem>>, vector<4x1xf32>
    %557 = vector.broadcast %556 : vector<4x1xf32> to vector<4x410xf32>
    %558 = vector.broadcast %555 : vector<1x410xf32> to vector<4x410xf32>
    %559 = arith.mulf %557, %558 : vector<4x410xf32>
    %560 = arith.addf %554, %559 : vector<4x410xf32>
    %c1_328 = arith.constant 1 : index
    %c2_329 = arith.constant 2 : index
    %561 = vector.load %arg13[%c1_328, %c2_329] : memref<4x444xf32, #tpu.memory_space<vmem>>, vector<1x410xf32>
    %c0_330 = arith.constant 0 : index
    %c11_331 = arith.constant 11 : index
    %562 = vector.load %arg8[%c0_330, %c11_331] : memref<4x36xf32, #tpu.memory_space<vmem>>, vector<4x1xf32>
    %563 = vector.broadcast %562 : vector<4x1xf32> to vector<4x410xf32>
    %564 = vector.broadcast %561 : vector<1x410xf32> to vector<4x410xf32>
    %565 = arith.mulf %563, %564 : vector<4x410xf32>
    %566 = arith.addf %560, %565 : vector<4x410xf32>
    %c1_332 = arith.constant 1 : index
    %c16_333 = arith.constant 16 : index
    %567 = vector.load %arg13[%c1_332, %c16_333] : memref<4x444xf32, #tpu.memory_space<vmem>>, vector<1x410xf32>
    %c0_334 = arith.constant 0 : index
    %c12_335 = arith.constant 12 : index
    %568 = vector.load %arg8[%c0_334, %c12_335] : memref<4x36xf32, #tpu.memory_space<vmem>>, vector<4x1xf32>
    %569 = vector.broadcast %568 : vector<4x1xf32> to vector<4x410xf32>
    %570 = vector.broadcast %567 : vector<1x410xf32> to vector<4x410xf32>
    %571 = arith.mulf %569, %570 : vector<4x410xf32>
    %572 = arith.addf %566, %571 : vector<4x410xf32>
    %c1_336 = arith.constant 1 : index
    %c17_337 = arith.constant 17 : index
    %573 = vector.load %arg13[%c1_336, %c17_337] : memref<4x444xf32, #tpu.memory_space<vmem>>, vector<1x410xf32>
    %c0_338 = arith.constant 0 : index
    %c13_339 = arith.constant 13 : index
    %574 = vector.load %arg8[%c0_338, %c13_339] : memref<4x36xf32, #tpu.memory_space<vmem>>, vector<4x1xf32>
    %575 = vector.broadcast %574 : vector<4x1xf32> to vector<4x410xf32>
    %576 = vector.broadcast %573 : vector<1x410xf32> to vector<4x410xf32>
    %577 = arith.mulf %575, %576 : vector<4x410xf32>
    %578 = arith.addf %572, %577 : vector<4x410xf32>
    %c1_340 = arith.constant 1 : index
    %c18_341 = arith.constant 18 : index
    %579 = vector.load %arg13[%c1_340, %c18_341] : memref<4x444xf32, #tpu.memory_space<vmem>>, vector<1x410xf32>
    %c0_342 = arith.constant 0 : index
    %c14_343 = arith.constant 14 : index
    %580 = vector.load %arg8[%c0_342, %c14_343] : memref<4x36xf32, #tpu.memory_space<vmem>>, vector<4x1xf32>
    %581 = vector.broadcast %580 : vector<4x1xf32> to vector<4x410xf32>
    %582 = vector.broadcast %579 : vector<1x410xf32> to vector<4x410xf32>
    %583 = arith.mulf %581, %582 : vector<4x410xf32>
    %584 = arith.addf %578, %583 : vector<4x410xf32>
    %c1_344 = arith.constant 1 : index
    %c32_345 = arith.constant 32 : index
    %585 = vector.load %arg13[%c1_344, %c32_345] : memref<4x444xf32, #tpu.memory_space<vmem>>, vector<1x410xf32>
    %c0_346 = arith.constant 0 : index
    %c15_347 = arith.constant 15 : index
    %586 = vector.load %arg8[%c0_346, %c15_347] : memref<4x36xf32, #tpu.memory_space<vmem>>, vector<4x1xf32>
    %587 = vector.broadcast %586 : vector<4x1xf32> to vector<4x410xf32>
    %588 = vector.broadcast %585 : vector<1x410xf32> to vector<4x410xf32>
    %589 = arith.mulf %587, %588 : vector<4x410xf32>
    %590 = arith.addf %584, %589 : vector<4x410xf32>
    %c1_348 = arith.constant 1 : index
    %c33_349 = arith.constant 33 : index
    %591 = vector.load %arg13[%c1_348, %c33_349] : memref<4x444xf32, #tpu.memory_space<vmem>>, vector<1x410xf32>
    %c0_350 = arith.constant 0 : index
    %c16_351 = arith.constant 16 : index
    %592 = vector.load %arg8[%c0_350, %c16_351] : memref<4x36xf32, #tpu.memory_space<vmem>>, vector<4x1xf32>
    %593 = vector.broadcast %592 : vector<4x1xf32> to vector<4x410xf32>
    %594 = vector.broadcast %591 : vector<1x410xf32> to vector<4x410xf32>
    %595 = arith.mulf %593, %594 : vector<4x410xf32>
    %596 = arith.addf %590, %595 : vector<4x410xf32>
    %c1_352 = arith.constant 1 : index
    %c34_353 = arith.constant 34 : index
    %597 = vector.load %arg13[%c1_352, %c34_353] : memref<4x444xf32, #tpu.memory_space<vmem>>, vector<1x410xf32>
    %c0_354 = arith.constant 0 : index
    %c17_355 = arith.constant 17 : index
    %598 = vector.load %arg8[%c0_354, %c17_355] : memref<4x36xf32, #tpu.memory_space<vmem>>, vector<4x1xf32>
    %599 = vector.broadcast %598 : vector<4x1xf32> to vector<4x410xf32>
    %600 = vector.broadcast %597 : vector<1x410xf32> to vector<4x410xf32>
    %601 = arith.mulf %599, %600 : vector<4x410xf32>
    %602 = arith.addf %596, %601 : vector<4x410xf32>
    %c2_356 = arith.constant 2 : index
    %c0_357 = arith.constant 0 : index
    %603 = vector.load %arg13[%c2_356, %c0_357] : memref<4x444xf32, #tpu.memory_space<vmem>>, vector<1x410xf32>
    %c0_358 = arith.constant 0 : index
    %c18_359 = arith.constant 18 : index
    %604 = vector.load %arg8[%c0_358, %c18_359] : memref<4x36xf32, #tpu.memory_space<vmem>>, vector<4x1xf32>
    %605 = vector.broadcast %604 : vector<4x1xf32> to vector<4x410xf32>
    %606 = vector.broadcast %603 : vector<1x410xf32> to vector<4x410xf32>
    %607 = arith.mulf %605, %606 : vector<4x410xf32>
    %608 = arith.addf %602, %607 : vector<4x410xf32>
    %c2_360 = arith.constant 2 : index
    %c1_361 = arith.constant 1 : index
    %609 = vector.load %arg13[%c2_360, %c1_361] : memref<4x444xf32, #tpu.memory_space<vmem>>, vector<1x410xf32>
    %c0_362 = arith.constant 0 : index
    %c19_363 = arith.constant 19 : index
    %610 = vector.load %arg8[%c0_362, %c19_363] : memref<4x36xf32, #tpu.memory_space<vmem>>, vector<4x1xf32>
    %611 = vector.broadcast %610 : vector<4x1xf32> to vector<4x410xf32>
    %612 = vector.broadcast %609 : vector<1x410xf32> to vector<4x410xf32>
    %613 = arith.mulf %611, %612 : vector<4x410xf32>
    %614 = arith.addf %608, %613 : vector<4x410xf32>
    %c2_364 = arith.constant 2 : index
    %c2_365 = arith.constant 2 : index
    %615 = vector.load %arg13[%c2_364, %c2_365] : memref<4x444xf32, #tpu.memory_space<vmem>>, vector<1x410xf32>
    %c0_366 = arith.constant 0 : index
    %c20_367 = arith.constant 20 : index
    %616 = vector.load %arg8[%c0_366, %c20_367] : memref<4x36xf32, #tpu.memory_space<vmem>>, vector<4x1xf32>
    %617 = vector.broadcast %616 : vector<4x1xf32> to vector<4x410xf32>
    %618 = vector.broadcast %615 : vector<1x410xf32> to vector<4x410xf32>
    %619 = arith.mulf %617, %618 : vector<4x410xf32>
    %620 = arith.addf %614, %619 : vector<4x410xf32>
    %c2_368 = arith.constant 2 : index
    %c16_369 = arith.constant 16 : index
    %621 = vector.load %arg13[%c2_368, %c16_369] : memref<4x444xf32, #tpu.memory_space<vmem>>, vector<1x410xf32>
    %c0_370 = arith.constant 0 : index
    %c21_371 = arith.constant 21 : index
    %622 = vector.load %arg8[%c0_370, %c21_371] : memref<4x36xf32, #tpu.memory_space<vmem>>, vector<4x1xf32>
    %623 = vector.broadcast %622 : vector<4x1xf32> to vector<4x410xf32>
    %624 = vector.broadcast %621 : vector<1x410xf32> to vector<4x410xf32>
    %625 = arith.mulf %623, %624 : vector<4x410xf32>
    %626 = arith.addf %620, %625 : vector<4x410xf32>
    %c2_372 = arith.constant 2 : index
    %c17_373 = arith.constant 17 : index
    %627 = vector.load %arg13[%c2_372, %c17_373] : memref<4x444xf32, #tpu.memory_space<vmem>>, vector<1x410xf32>
    %c0_374 = arith.constant 0 : index
    %c22_375 = arith.constant 22 : index
    %628 = vector.load %arg8[%c0_374, %c22_375] : memref<4x36xf32, #tpu.memory_space<vmem>>, vector<4x1xf32>
    %629 = vector.broadcast %628 : vector<4x1xf32> to vector<4x410xf32>
    %630 = vector.broadcast %627 : vector<1x410xf32> to vector<4x410xf32>
    %631 = arith.mulf %629, %630 : vector<4x410xf32>
    %632 = arith.addf %626, %631 : vector<4x410xf32>
    %c2_376 = arith.constant 2 : index
    %c18_377 = arith.constant 18 : index
    %633 = vector.load %arg13[%c2_376, %c18_377] : memref<4x444xf32, #tpu.memory_space<vmem>>, vector<1x410xf32>
    %c0_378 = arith.constant 0 : index
    %c23_379 = arith.constant 23 : index
    %634 = vector.load %arg8[%c0_378, %c23_379] : memref<4x36xf32, #tpu.memory_space<vmem>>, vector<4x1xf32>
    %635 = vector.broadcast %634 : vector<4x1xf32> to vector<4x410xf32>
    %636 = vector.broadcast %633 : vector<1x410xf32> to vector<4x410xf32>
    %637 = arith.mulf %635, %636 : vector<4x410xf32>
    %638 = arith.addf %632, %637 : vector<4x410xf32>
    %c2_380 = arith.constant 2 : index
    %c32_381 = arith.constant 32 : index
    %639 = vector.load %arg13[%c2_380, %c32_381] : memref<4x444xf32, #tpu.memory_space<vmem>>, vector<1x410xf32>
    %c0_382 = arith.constant 0 : index
    %c24_383 = arith.constant 24 : index
    %640 = vector.load %arg8[%c0_382, %c24_383] : memref<4x36xf32, #tpu.memory_space<vmem>>, vector<4x1xf32>
    %641 = vector.broadcast %640 : vector<4x1xf32> to vector<4x410xf32>
    %642 = vector.broadcast %639 : vector<1x410xf32> to vector<4x410xf32>
    %643 = arith.mulf %641, %642 : vector<4x410xf32>
    %644 = arith.addf %638, %643 : vector<4x410xf32>
    %c2_384 = arith.constant 2 : index
    %c33_385 = arith.constant 33 : index
    %645 = vector.load %arg13[%c2_384, %c33_385] : memref<4x444xf32, #tpu.memory_space<vmem>>, vector<1x410xf32>
    %c0_386 = arith.constant 0 : index
    %c25_387 = arith.constant 25 : index
    %646 = vector.load %arg8[%c0_386, %c25_387] : memref<4x36xf32, #tpu.memory_space<vmem>>, vector<4x1xf32>
    %647 = vector.broadcast %646 : vector<4x1xf32> to vector<4x410xf32>
    %648 = vector.broadcast %645 : vector<1x410xf32> to vector<4x410xf32>
    %649 = arith.mulf %647, %648 : vector<4x410xf32>
    %650 = arith.addf %644, %649 : vector<4x410xf32>
    %c2_388 = arith.constant 2 : index
    %c34_389 = arith.constant 34 : index
    %651 = vector.load %arg13[%c2_388, %c34_389] : memref<4x444xf32, #tpu.memory_space<vmem>>, vector<1x410xf32>
    %c0_390 = arith.constant 0 : index
    %c26_391 = arith.constant 26 : index
    %652 = vector.load %arg8[%c0_390, %c26_391] : memref<4x36xf32, #tpu.memory_space<vmem>>, vector<4x1xf32>
    %653 = vector.broadcast %652 : vector<4x1xf32> to vector<4x410xf32>
    %654 = vector.broadcast %651 : vector<1x410xf32> to vector<4x410xf32>
    %655 = arith.mulf %653, %654 : vector<4x410xf32>
    %656 = arith.addf %650, %655 : vector<4x410xf32>
    %c3_392 = arith.constant 3 : index
    %c0_393 = arith.constant 0 : index
    %657 = vector.load %arg13[%c3_392, %c0_393] : memref<4x444xf32, #tpu.memory_space<vmem>>, vector<1x410xf32>
    %c0_394 = arith.constant 0 : index
    %c27_395 = arith.constant 27 : index
    %658 = vector.load %arg8[%c0_394, %c27_395] : memref<4x36xf32, #tpu.memory_space<vmem>>, vector<4x1xf32>
    %659 = vector.broadcast %658 : vector<4x1xf32> to vector<4x410xf32>
    %660 = vector.broadcast %657 : vector<1x410xf32> to vector<4x410xf32>
    %661 = arith.mulf %659, %660 : vector<4x410xf32>
    %662 = arith.addf %656, %661 : vector<4x410xf32>
    %c3_396 = arith.constant 3 : index
    %c1_397 = arith.constant 1 : index
    %663 = vector.load %arg13[%c3_396, %c1_397] : memref<4x444xf32, #tpu.memory_space<vmem>>, vector<1x410xf32>
    %c0_398 = arith.constant 0 : index
    %c28_399 = arith.constant 28 : index
    %664 = vector.load %arg8[%c0_398, %c28_399] : memref<4x36xf32, #tpu.memory_space<vmem>>, vector<4x1xf32>
    %665 = vector.broadcast %664 : vector<4x1xf32> to vector<4x410xf32>
    %666 = vector.broadcast %663 : vector<1x410xf32> to vector<4x410xf32>
    %667 = arith.mulf %665, %666 : vector<4x410xf32>
    %668 = arith.addf %662, %667 : vector<4x410xf32>
    %c3_400 = arith.constant 3 : index
    %c2_401 = arith.constant 2 : index
    %669 = vector.load %arg13[%c3_400, %c2_401] : memref<4x444xf32, #tpu.memory_space<vmem>>, vector<1x410xf32>
    %c0_402 = arith.constant 0 : index
    %c29_403 = arith.constant 29 : index
    %670 = vector.load %arg8[%c0_402, %c29_403] : memref<4x36xf32, #tpu.memory_space<vmem>>, vector<4x1xf32>
    %671 = vector.broadcast %670 : vector<4x1xf32> to vector<4x410xf32>
    %672 = vector.broadcast %669 : vector<1x410xf32> to vector<4x410xf32>
    %673 = arith.mulf %671, %672 : vector<4x410xf32>
    %674 = arith.addf %668, %673 : vector<4x410xf32>
    %c3_404 = arith.constant 3 : index
    %c16_405 = arith.constant 16 : index
    %675 = vector.load %arg13[%c3_404, %c16_405] : memref<4x444xf32, #tpu.memory_space<vmem>>, vector<1x410xf32>
    %c0_406 = arith.constant 0 : index
    %c30_407 = arith.constant 30 : index
    %676 = vector.load %arg8[%c0_406, %c30_407] : memref<4x36xf32, #tpu.memory_space<vmem>>, vector<4x1xf32>
    %677 = vector.broadcast %676 : vector<4x1xf32> to vector<4x410xf32>
    %678 = vector.broadcast %675 : vector<1x410xf32> to vector<4x410xf32>
    %679 = arith.mulf %677, %678 : vector<4x410xf32>
    %680 = arith.addf %674, %679 : vector<4x410xf32>
    %c3_408 = arith.constant 3 : index
    %c17_409 = arith.constant 17 : index
    %681 = vector.load %arg13[%c3_408, %c17_409] : memref<4x444xf32, #tpu.memory_space<vmem>>, vector<1x410xf32>
    %c0_410 = arith.constant 0 : index
    %c31_411 = arith.constant 31 : index
    %682 = vector.load %arg8[%c0_410, %c31_411] : memref<4x36xf32, #tpu.memory_space<vmem>>, vector<4x1xf32>
    %683 = vector.broadcast %682 : vector<4x1xf32> to vector<4x410xf32>
    %684 = vector.broadcast %681 : vector<1x410xf32> to vector<4x410xf32>
    %685 = arith.mulf %683, %684 : vector<4x410xf32>
    %686 = arith.addf %680, %685 : vector<4x410xf32>
    %c3_412 = arith.constant 3 : index
    %c18_413 = arith.constant 18 : index
    %687 = vector.load %arg13[%c3_412, %c18_413] : memref<4x444xf32, #tpu.memory_space<vmem>>, vector<1x410xf32>
    %c0_414 = arith.constant 0 : index
    %c32_415 = arith.constant 32 : index
    %688 = vector.load %arg8[%c0_414, %c32_415] : memref<4x36xf32, #tpu.memory_space<vmem>>, vector<4x1xf32>
    %689 = vector.broadcast %688 : vector<4x1xf32> to vector<4x410xf32>
    %690 = vector.broadcast %687 : vector<1x410xf32> to vector<4x410xf32>
    %691 = arith.mulf %689, %690 : vector<4x410xf32>
    %692 = arith.addf %686, %691 : vector<4x410xf32>
    %c3_416 = arith.constant 3 : index
    %c32_417 = arith.constant 32 : index
    %693 = vector.load %arg13[%c3_416, %c32_417] : memref<4x444xf32, #tpu.memory_space<vmem>>, vector<1x410xf32>
    %c0_418 = arith.constant 0 : index
    %c33_419 = arith.constant 33 : index
    %694 = vector.load %arg8[%c0_418, %c33_419] : memref<4x36xf32, #tpu.memory_space<vmem>>, vector<4x1xf32>
    %695 = vector.broadcast %694 : vector<4x1xf32> to vector<4x410xf32>
    %696 = vector.broadcast %693 : vector<1x410xf32> to vector<4x410xf32>
    %697 = arith.mulf %695, %696 : vector<4x410xf32>
    %698 = arith.addf %692, %697 : vector<4x410xf32>
    %c3_420 = arith.constant 3 : index
    %c33_421 = arith.constant 33 : index
    %699 = vector.load %arg13[%c3_420, %c33_421] : memref<4x444xf32, #tpu.memory_space<vmem>>, vector<1x410xf32>
    %c0_422 = arith.constant 0 : index
    %c34_423 = arith.constant 34 : index
    %700 = vector.load %arg8[%c0_422, %c34_423] : memref<4x36xf32, #tpu.memory_space<vmem>>, vector<4x1xf32>
    %701 = vector.broadcast %700 : vector<4x1xf32> to vector<4x410xf32>
    %702 = vector.broadcast %699 : vector<1x410xf32> to vector<4x410xf32>
    %703 = arith.mulf %701, %702 : vector<4x410xf32>
    %704 = arith.addf %698, %703 : vector<4x410xf32>
    %c3_424 = arith.constant 3 : index
    %c34_425 = arith.constant 34 : index
    %705 = vector.load %arg13[%c3_424, %c34_425] : memref<4x444xf32, #tpu.memory_space<vmem>>, vector<1x410xf32>
    %c0_426 = arith.constant 0 : index
    %c35_427 = arith.constant 35 : index
    %706 = vector.load %arg8[%c0_426, %c35_427] : memref<4x36xf32, #tpu.memory_space<vmem>>, vector<4x1xf32>
    %707 = vector.broadcast %706 : vector<4x1xf32> to vector<4x410xf32>
    %708 = vector.broadcast %705 : vector<1x410xf32> to vector<4x410xf32>
    %709 = arith.mulf %707, %708 : vector<4x410xf32>
    %710 = arith.addf %704, %709 : vector<4x410xf32>
    %c2_428 = arith.constant 2 : index
    %c0_429 = arith.constant 0 : index
    %711 = vector.load %arg1[%c2_428, %c0_429] : memref<3x512xf32, #tpu.memory_space<vmem>>, vector<1x410xf32>
    %712 = vector.broadcast %711 : vector<1x410xf32> to vector<4x410xf32>
    %713 = arith.mulf %710, %712 : vector<4x410xf32>
    %cst_430 = arith.constant dense<0.000000e+00> : vector<4xf32>
    %714 = vector.multi_reduction <add>, %713, %cst_430 [1] : vector<4x410xf32> to vector<4xf32>
    %715 = vector.shape_cast %714 : vector<4xf32> to vector<4x1xf32>
    %cst_431 = arith.constant 5.000000e-03 : f32
    %716 = vector.broadcast %cst_431 : f32 to vector<4x1xf32>
    %717 = arith.mulf %715, %716 : vector<4x1xf32>
    %718 = arith.mulf %713, %710 : vector<4x410xf32>
    %cst_432 = arith.constant dense<0.000000e+00> : vector<4xf32>
    %719 = vector.multi_reduction <add>, %718, %cst_432 [1] : vector<4x410xf32> to vector<4xf32>
    %720 = vector.shape_cast %719 : vector<4xf32> to vector<4x1xf32>
    %cst_433 = arith.constant 5.000000e-03 : f32
    %721 = vector.broadcast %cst_433 : f32 to vector<4x1xf32>
    %722 = arith.mulf %720, %721 : vector<4x1xf32>
    %723 = arith.mulf %717, %717 : vector<4x1xf32>
    %724 = arith.subf %722, %723 : vector<4x1xf32>
    %c0_434 = arith.constant 0 : index
    %c0_435 = arith.constant 0 : index
    %725 = vector.load %arg9[%c0_434, %c0_435] : memref<4x1xf32, #tpu.memory_space<vmem>>, vector<4x1xf32>
    %cst_436 = arith.constant 9.99999974E-6 : f32
    %726 = vector.broadcast %cst_436 : f32 to vector<4x1xf32>
    %727 = arith.addf %724, %726 : vector<4x1xf32>
    %728 = math.rsqrt %727 : vector<4x1xf32>
    %729 = arith.mulf %725, %728 : vector<4x1xf32>
    %c0_437 = arith.constant 0 : index
    %c0_438 = arith.constant 0 : index
    %730 = vector.load %arg10[%c0_437, %c0_438] : memref<4x1xf32, #tpu.memory_space<vmem>>, vector<4x1xf32>
    %731 = arith.mulf %717, %729 : vector<4x1xf32>
    %732 = arith.subf %730, %731 : vector<4x1xf32>
    %733 = vector.broadcast %729 : vector<4x1xf32> to vector<4x410xf32>
    %734 = arith.mulf %710, %733 : vector<4x410xf32>
    %735 = vector.broadcast %732 : vector<4x1xf32> to vector<4x410xf32>
    %736 = arith.addf %734, %735 : vector<4x410xf32>
    %cst_439 = arith.constant 0.000000e+00 : f32
    %737 = vector.broadcast %cst_439 : f32 to vector<4x410xf32>
    %738 = arith.maximumf %736, %737 : vector<4x410xf32>
    %c0_440 = arith.constant 0 : index
    %c0_441 = arith.constant 0 : index
    %739 = vector.load %arg11[%c0_440, %c0_441] : memref<4x410xf32, #tpu.memory_space<vmem>>, vector<4x410xf32>
    tpu.vector_store %arg11[%c0_440, %c0_441], %738 {strides = array<i32>} : memref<4x410xf32, #tpu.memory_space<vmem>>, vector<4x410xf32>,
    return
  }
}

</mosaic_0001>

<bundles_post_ra>
// kernel: tpu_custom_call.1
= control target key start
LH: loop header
LB: loop body
LE: loop exit
PB: predicated region body
PF: predicated region fallthrough
CT: control target
= control target key end

     0   :  { %16 = vsyncpa [#allocation5], 0  ;;  %s6658_s0 = inlined_call_operand.hbm [shape: f32[4,512], index: 0, kind: input, shape index: {}]   ;;  %s6659_s1 = inlined_call_operand.hbm [shape: f32[3,512], index: 1, kind: input, shape index: {}]   ;;  %s6660_s2 = inlined_call_operand.vmem [shape: f32[4,36], index: 2, kind: input, shape index: {}]   ;;  %s6661_s3 = inlined_call_operand.vmem [shape: f32[4,1], index: 3, kind: input, shape index: {}]   ;;  %s6662_s4 = inlined_call_operand.vmem [shape: f32[4,1], index: 4, kind: input, shape index: {}]   ;;  %s6663_s5 = inlined_call_operand.vmem [shape: f32[4,36], index: 5, kind: input, shape index: {}]   ;;  %s6664_s6 = inlined_call_operand.vmem [shape: f32[4,1], index: 6, kind: input, shape index: {}]   ;;  %s6665_s7 = inlined_call_operand.vmem [shape: f32[4,1], index: 7, kind: input, shape index: {}]   ;;  %s6666_s8 = inlined_call_operand.vmem [shape: f32[4,36], index: 8, kind: input, shape index: {}]   ;;  %s6667_s9 = inlined_call_operand.vmem [shape: f32[4,1], index: 9, kind: input, shape index: {}]   ;;  %s6668_s10 = inlined_call_operand.vmem [shape: f32[4,1], index: 10, kind: input, shape index: {}]   ;;  %s6669_s11 = inlined_call_operand.hbm [shape: f32[4,410], index: 11, kind: output, shape index: {}]  }
   0x1   :  { %17 = vsyncpa [#allocation8], 0 }
   0x2   :  { %18 = vsyncpa [#allocation6], 0  ;;  %s24_s19 = sshll.u32 %s6658_s0, 4  ;;  %s3903_s20 = smov [#allocation4]   ;;  %s25_s19 = int_to_ptr.hbm [resolvable:$true] %s24_s19 }
   0x3   :  { %s26_s21 = sshll.u32 %s3903_s20, 4  ;;  %s35_s24 = sshll.u32 %s6659_s1, 4  ;;  %s27_s21 = int_to_ptr.vmem [resolvable:$true] %s26_s21  ;;  %s36_s24 = int_to_ptr.hbm [resolvable:$true] %s35_s24 }
   0x4   :  { %29 = dma.hbm_to_vmem [thread:$0]  %s25_s19, 256, %s27_s21, [#allocation5]  }
   0x5   :  { %s3904_s25 = smov [#allocation7]  }
   0x6   :  { %s37_s26 = sshll.u32 %s3904_s25, 4  ;;  %s38_s26 = int_to_ptr.vmem [resolvable:$true] %s37_s26 }
   0x7   :  { %40 = dma.hbm_to_vmem [thread:$0]  %s36_s24, 256, %s38_s26, [#allocation8]  }
   0x8   :  { %3897 = dma.done.wait [#allocation5], 256  }
   0x9   :  { %3898 = vsyncadd [#allocation5], 4294967040 }
   0xa   :  { %3899 = dma.done.wait [#allocation8], 256  }
   0xb   :  { %3900 = vsyncadd [#allocation8], 4294967040  ;;  %v6726_v0 = vmov 0   ;;  %v6716_v1 = vmov 2   ;;  %v4022_v2 = vld [vmem:[%s6660_s2] sm:$0xf] }
   0xc   :  { %3707 = vset.pattern.permute.xlu0 %v6726_v0  ;;  %3709 = vset.pattern.permute.xlu1 %v6716_v1  ;;  %v6718_v3 = vmov 1   ;;  %v6724_v4 = vmov 3   ;;  %v6722_v5 = vmov 4   ;;  %v6710_v6 = vmov 5   ;;  %s3914_s2 = smov 126   ;;  %s3915_s27 = smov 127  }
   0xd   :  { %3743 = vset.pattern.permute.xlu2 %v6726_v0  ;;  %71 = vperm.xlu0 %3707, %v4022_v2   ;;  %v6708_v7 = vmov 6   ;;  %v6694_v8 = vmov 7   ;;  %v6692_v9 = vmov 8   ;;  %v67_v10 = vld [vmem:[#allocation4] ss:$4 sm:$0xf] }
   0xe   :  { %124 = vperm.xlu1 %3709, %v4022_v2   ;;  %v4040_v11 = vperm.slane %v67_v10, 1  ;;  %v4046_v15 = vperm.slane %v67_v10, 2  ;;  %v4048_v16 = vperm.slane %v67_v10, 0  ;;  %v4054_v20 = vperm.slane %v67_v10, 3  ;;  %s3916_s28 = smov 112   ;;  %s3917_s29 = smov 111  }
   0xf   :  { %s3918_s30 = smov 110   ;;  %v6690_v38 = vmov 9   ;;  %s3920_s12 = smov 96   ;;  %v6712_v48 = vmov 10   ;;  %vm111_vm0 = vcmask 1039360   ;;  %vm143_vm1 = vcmask 1031168  }
  0x10   :  { %s3922_s13 = smov 95   ;;  %s3923_s14 = smov 94   ;;  %vm175_vm2 = vcmask 916480   ;;  %vm207_vm3 = vcmask 908288   ;;  %vm239_vm4 = vcmask 900096   ;;  %vm271_vm5 = vcmask 785408  }
  0x11   :  { %vm303_vm6 = vcmask 777216   ;;  %vm335_vm7 = vcmask 769024   ;;  %vm1174_vm8 = vcmask 1043456   ;;  %vm1180_vm9 = vcmask 764928  }
  0x12   :  { %vm1251_vm13 = vcmask 769028   ;;  %vm2359_vm15 = vcmask 486400  }
  0x13   :  { %vm1252_vm14 = vmor %vm1251_vm13, %vm1174_vm8 }
  0x15   :  { %3708 = vset.pattern.permute.xlu0 %v6718_v3 }
  0x16   :  { %92 = vperm.xlu0 %3708, %v4022_v2   ;;  %3717 = vset.pattern.permute.xlu1 %v6712_v48 }
  0x1e   :  { %3710 = vset.pattern.permute.xlu0 %v6724_v4 }
  0x1f   :  { %156 = vperm.xlu0 %3710, %v4022_v2  }
  0x27   :  { %3711 = vset.pattern.permute.xlu0 %v6722_v5 }
  0x28   :  { %188 = vperm.xlu0 %3711, %v4022_v2  }
  0x30   :  { %3712 = vset.pattern.permute.xlu0 %v6710_v6 }
  0x31   :  { %220 = vperm.xlu0 %3712, %v4022_v2  }
  0x39   :  { %3713 = vset.pattern.permute.xlu0 %v6708_v7 }
  0x3a   :  { %252 = vperm.xlu0 %3713, %v4022_v2  }
  0x42   :  { %3714 = vset.pattern.permute.xlu0 %v6694_v8 }
  0x43   :  { %284 = vperm.xlu0 %3714, %v4022_v2  }
  0x4b   :  { %3715 = vset.pattern.permute.xlu0 %v6692_v9 }
  0x4c   :  { %316 = vperm.xlu0 %3715, %v4022_v2  }
  0x54   :  { %3716 = vset.pattern.permute.xlu0 %v6690_v38  ;;  %v6702_v38 = vmov 21  }
  0x7f   :  { %v4042_v12 = vpop.permute.xlu0 %71 }
  0x80   :  { %v125_v13 = vpop.permute.xlu1 %124 }
  0x81   :  { %v128_v14 = vmul.f32 %v125_v13, %v4040_v11  ;;  %v127_v23 = vmul.f32 %v125_v13, %v4048_v16  ;;  %v129_v24 = vmul.f32 %v125_v13, %v4046_v15  ;;  %v130_v27 = vmul.f32 %v125_v13, %v4054_v20 }
  0x83   :  { %137 = vrot.lane.b32.xlu0 %v128_v14, %s3914_s2 }
  0x88   :  { %v93_v17 = vpop.permute.xlu0 %92 }
  0x89   :  { %v97_v18 = vmul.f32 %v93_v17, %v4046_v15  ;;  %v95_v19 = vmul.f32 %v93_v17, %v4048_v16  ;;  %v98_v21 = vmul.f32 %v93_v17, %v4054_v20  ;;  %v96_v22 = vmul.f32 %v93_v17, %v4040_v11 }
  0x8b   :  { %107 = vrot.lane.b32.xlu2 %v97_v18, %s3915_s27  ;;  %103 = vrot.lane.b32.xlu1 %v95_v19, %s3915_s27 }
  0x8c   :  { %350 = vperm.xlu0 %3716, %v4022_v2  }
  0x91   :  { %v157_v25 = vpop.permute.xlu0 %156 }
  0x92   :  { %v159_v26 = vmul.f32 %v157_v25, %v4048_v16  ;;  %v160_v28 = vmul.f32 %v157_v25, %v4040_v11  ;;  %v161_v29 = vmul.f32 %v157_v25, %v4046_v15  ;;  %v162_v32 = vmul.f32 %v157_v25, %v4054_v20  ;;  %v348_v25 = vld [vmem:[#allocation4 + $0x1] ss:$4 sm:$0xf] }
  0x93   :  { %109 = vrot.lane.b32.xlu2 %v98_v21, %s3915_s27  ;;  %105 = vrot.lane.b32.xlu1 %v96_v22, %s3915_s27  ;;  %v6686_v21 = vmov 11  }
  0x9a   :  { %v189_v30 = vpop.permute.xlu0 %188 }
  0x9b   :  { %135 = vrot.lane.b32.xlu2 %v127_v23, %s3914_s2  ;;  %139 = vrot.lane.b32.xlu1 %v129_v24, %s3914_s2  ;;  %v191_v31 = vmul.f32 %v189_v30, %v4048_v16  ;;  %v192_v33 = vmul.f32 %v189_v30, %v4040_v11  ;;  %v193_v34 = vmul.f32 %v189_v30, %v4046_v15 }
  0x9c   :  { %v194_v37 = vmul.f32 %v189_v30, %v4054_v20 }
  0xa3   :  { %141 = vrot.lane.b32.xlu2 %v130_v27, %s3914_s2  ;;  %167 = vrot.lane.b32.xlu1 %v159_v26, %s3916_s28  ;;  %v221_v35 = vpop.permute.xlu0 %220  ;;  %v4149_v26 = vperm.slane %v348_v25, 0  ;;  %v4151_v27 = vperm.slane %v348_v25, 3 }
  0xa4   :  { %v223_v36 = vmul.f32 %v221_v35, %v4048_v16  ;;  %v224_v39 = vmul.f32 %v221_v35, %v4040_v11  ;;  %v225_v40 = vmul.f32 %v221_v35, %v4046_v15  ;;  %v226_v43 = vmul.f32 %v221_v35, %v4054_v20 }
  0xa5   :  { %v6688_v35 = vmov 12  }
  0xa6   :  { %3719 = vset.pattern.permute.xlu0 %v6688_v35 }
  0xab   :  { %169 = vrot.lane.b32.xlu2 %v160_v28, %s3916_s28  ;;  %171 = vrot.lane.b32.xlu1 %v161_v29, %s3916_s28  ;;  %v4153_v28 = vperm.slane %v348_v25, 1 }
  0xac   :  { %v253_v41 = vpop.permute.xlu0 %252 }
  0xad   :  { %v255_v42 = vmul.f32 %v253_v41, %v4048_v16  ;;  %v256_v44 = vmul.f32 %v253_v41, %v4040_v11  ;;  %v257_v45 = vmul.f32 %v253_v41, %v4046_v15  ;;  %v258_v49 = vmul.f32 %v253_v41, %v4054_v20 }
  0xb3   :  { %173 = vrot.lane.b32.xlu2 %v162_v32, %s3916_s28  ;;  %199 = vrot.lane.b32.xlu1 %v191_v31, %s3917_s29 }
  0xb5   :  { %v285_v46 = vpop.permute.xlu0 %284 }
  0xb6   :  { %v287_v47 = vmul.f32 %v285_v46, %v4048_v16  ;;  %v288_v50 = vmul.f32 %v285_v46, %v4040_v11  ;;  %v289_v51 = vmul.f32 %v285_v46, %v4046_v15  ;;  %v290_v54 = vmul.f32 %v285_v46, %v4054_v20 }
  0xb7   :  { %v6674_v46 = vmov 16  }
  0xbb   :  { %201 = vrot.lane.b32.xlu2 %v192_v33, %s3917_s29  ;;  %203 = vrot.lane.b32.xlu1 %v193_v34, %s3917_s29  ;;  %v4161_v33 = vperm.slane %v348_v25, 2 }
  0xbe   :  { %v317_v52 = vpop.permute.xlu0 %316 }
  0xbf   :  { %v319_v53 = vmul.f32 %v317_v52, %v4048_v16  ;;  %v320_v55 = vmul.f32 %v317_v52, %v4040_v11  ;;  %v321_v56 = vmul.f32 %v317_v52, %v4046_v15  ;;  %v322_v58 = vmul.f32 %v317_v52, %v4054_v20 }
  0xc3   :  { %205 = vrot.lane.b32.xlu2 %v194_v37, %s3917_s29  ;;  %231 = vrot.lane.b32.xlu1 %v223_v36, %s3918_s30 }
  0xcb   :  { %233 = vrot.lane.b32.xlu2 %v224_v39, %s3918_s30  ;;  %235 = vrot.lane.b32.xlu1 %v225_v40, %s3918_s30 }
  0xd3   :  { %237 = vrot.lane.b32.xlu2 %v226_v43, %s3918_s30  ;;  %263 = vrot.lane.b32.xlu1 %v255_v42, %s3920_s12  ;;  %v6680_v43 = vmov 13  }
  0xdb   :  { %265 = vrot.lane.b32.xlu2 %v256_v44, %s3920_s12  ;;  %267 = vrot.lane.b32.xlu1 %v257_v45, %s3920_s12  ;;  %v6678_v44 = vmov 14   ;;  %v6676_v45 = vmov 15  }
  0xe3   :  { %269 = vrot.lane.b32.xlu2 %v258_v49, %s3920_s12  ;;  %295 = vrot.lane.b32.xlu1 %v287_v47, %s3922_s13  ;;  %v6672_v47 = vmov 17  }
  0xeb   :  { %297 = vrot.lane.b32.xlu2 %v288_v50, %s3922_s13  ;;  %299 = vrot.lane.b32.xlu1 %v289_v51, %s3922_s13 }
  0xf3   :  { %301 = vrot.lane.b32.xlu2 %v290_v54, %s3922_s13  ;;  %327 = vrot.lane.b32.xlu1 %v319_v53, %s3923_s14 }
  0xf5   :  { %v4188_v49 = vpop.permute.xlu0 %137 }
  0xfb   :  { %329 = vrot.lane.b32.xlu2 %v320_v55, %s3923_s14  ;;  %331 = vrot.lane.b32.xlu1 %v321_v56, %s3923_s14 }
  0xfd   :  { %v4115_v57 = vpop.permute.xlu1 %103 }
  0xfe   :  { %v4190_v50 = vpop.permute.xlu0 %350 }
 0x103   :  { %333 = vrot.lane.b32.xlu2 %v322_v58, %s3923_s14  ;;  %371 = vperm.xlu1 %3717, %v4022_v2  }
 0x105   :  { %v4120_v59 = vpop.permute.xlu1 %105 }
 0x10b   :  { %3718 = vset.pattern.permute.xlu1 %v6686_v21 }
 0x10d   :  { %v4122_v60 = vpop.permute.xlu1 %139 }
 0x115   :  { %v4124_v61 = vpop.permute.xlu1 %167 }
 0x11d   :  { %v4126_v62 = vpop.permute.xlu1 %171 }
 0x125   :  { %v4128_v63 = vpop.permute.xlu1 %199 }
 0x12d   :  { %v4130_v10 = vpop.permute.xlu1 %203 }
 0x135   :  { %v4132_v13 = vpop.permute.xlu1 %231 }
 0x13d   :  { %v4134_v14 = vpop.permute.xlu1 %235 }
 0x145   :  { %v4136_v17 = vpop.permute.xlu1 %263 }
 0x14d   :  { %v4138_v18 = vpop.permute.xlu1 %267 }
 0x155   :  { %v4140_v19 = vpop.permute.xlu1 %295 }
 0x15d   :  { %v4143_v22 = vpop.permute.xlu1 %299 }
 0x165   :  { %v4145_v23 = vpop.permute.xlu1 %327 }
 0x16d   :  { %v4147_v24 = vpop.permute.xlu1 %331 }
 0x175   :  { %v372_v29 = vpop.permute.xlu1 %371 }
 0x176   :  { %v377_v30 = vmul.f32 %v372_v29, %v4151_v27  ;;  %v375_v31 = vmul.f32 %v372_v29, %v4153_v28  ;;  %v374_v32 = vmul.f32 %v372_v29, %v4149_v26  ;;  %v376_v34 = vmul.f32 %v372_v29, %v4161_v33 }
 0x178   :  { %388 = vrot.lane.b32.xlu0 %v377_v30, %s3915_s27  ;;  %384 = vrot.lane.b32.xlu1 %v375_v31, %s3915_s27 }
 0x179   :  { %382 = vrot.lane.b32.xlu2 %v374_v32, %s3915_s27 }
 0x180   :  { %402 = vperm.xlu1 %3718, %v4022_v2  }
 0x181   :  { %386 = vrot.lane.b32.xlu2 %v376_v34, %s3915_s27 }
 0x1ea   :  { %v4167_v36 = vpop.permute.xlu1 %384  ;;  %v4192_v51 = vpop.permute.xlu0 %388 }
 0x1f2   :  { %v403_v37 = vpop.permute.xlu1 %402 }
 0x1f3   :  { %v407_v39 = vmul.f32 %v403_v37, %v4161_v33  ;;  %v406_v40 = vmul.f32 %v403_v37, %v4153_v28  ;;  %v405_v41 = vmul.f32 %v403_v37, %v4149_v26  ;;  %v408_v42 = vmul.f32 %v403_v37, %v4151_v27 }
 0x1f4   :  { %v6670_v37 = vmov 18  }
 0x1f5   :  { %417 = vrot.lane.b32.xlu1 %v407_v39, %s3914_s2  ;;  %415 = vrot.lane.b32.xlu0 %v406_v40, %s3914_s2 }
 0x1f6   :  { %413 = vrot.lane.b32.xlu2 %v405_v41, %s3914_s2 }
 0x1fd   :  { %433 = vperm.xlu0 %3719, %v4022_v2  }
 0x1fe   :  { %419 = vrot.lane.b32.xlu2 %v408_v42, %s3914_s2 }
 0x205   :  { %3720 = vset.pattern.permute.xlu0 %v6680_v43 }
 0x206   :  { %464 = vperm.xlu0 %3720, %v4022_v2  }
 0x20e   :  { %3721 = vset.pattern.permute.xlu0 %v6678_v44 }
 0x20f   :  { %495 = vperm.xlu0 %3721, %v4022_v2  }
 0x217   :  { %3722 = vset.pattern.permute.xlu0 %v6676_v45 }
 0x218   :  { %526 = vperm.xlu0 %3722, %v4022_v2  }
 0x220   :  { %3723 = vset.pattern.permute.xlu0 %v6674_v46 }
 0x221   :  { %557 = vperm.xlu0 %3723, %v4022_v2  }
 0x229   :  { %3724 = vset.pattern.permute.xlu0 %v6672_v47 }
 0x22a   :  { %588 = vperm.xlu0 %3724, %v4022_v2  }
 0x232   :  { %3725 = vset.pattern.permute.xlu0 %v6670_v37  ;;  %v619_v37 = vld [vmem:[#allocation4 + $0x2] ss:$4 sm:$0xf] }
 0x233   :  { %621 = vperm.xlu0 %3725, %v4022_v2   ;;  %v4275_v47 = vperm.slane %v619_v37, 0  ;;  %v4277_v46 = vperm.slane %v619_v37, 3  ;;  %v4279_v45 = vperm.slane %v619_v37, 1  ;;  %v4287_v21 = vperm.slane %v619_v37, 2 }
 0x234   :  { %v6696_v37 = vmov 23  }
 0x235   :  { %6869 = vst [vmem:[#allocation25_spill] sm:$0xff] %v4275_v47 }
 0x236   :  { %6870 = vst [vmem:[#allocation26_spill] sm:$0xff] %v4277_v46 }
 0x237   :  { %6871 = vst [vmem:[#allocation27_spill] sm:$0xff] %v4279_v45 }
 0x238   :  { %6872 = vst [vmem:[#allocation28_spill] sm:$0xff] %v4287_v21 }
 0x23b   :  { %3728 = vset.pattern.permute.xlu0 %v6702_v38 }
 0x267   :  { %v4194_v52 = vpop.permute.xlu0 %415 }
 0x26f   :  { %v434_v53 = vpop.permute.xlu0 %433 }
 0x270   :  { %v436_v54 = vmul.f32 %v434_v53, %v4149_v26  ;;  %v437_v55 = vmul.f32 %v434_v53, %v4153_v28  ;;  %v438_v56 = vmul.f32 %v434_v53, %v4161_v33  ;;  %v439_v58 = vmul.f32 %v434_v53, %v4151_v27 }
 0x272   :  { %444 = vrot.lane.b32.xlu1 %v436_v54, %s3916_s28  ;;  %446 = vrot.lane.b32.xlu2 %v437_v55, %s3916_s28 }
 0x278   :  { %v465_v25 = vpop.permute.xlu0 %464 }
 0x279   :  { %v467_v29 = vmul.f32 %v465_v25, %v4149_v26  ;;  %v468_v30 = vmul.f32 %v465_v25, %v4153_v28  ;;  %v469_v31 = vmul.f32 %v465_v25, %v4161_v33  ;;  %v470_v32 = vmul.f32 %v465_v25, %v4151_v27 }
 0x27a   :  { %448 = vrot.lane.b32.xlu1 %v438_v56, %s3916_s28  ;;  %450 = vrot.lane.b32.xlu2 %v439_v58, %s3916_s28 }
 0x281   :  { %v496_v34 = vpop.permute.xlu0 %495 }
 0x282   :  { %475 = vrot.lane.b32.xlu1 %v467_v29, %s3917_s29  ;;  %477 = vrot.lane.b32.xlu2 %v468_v30, %s3917_s29  ;;  %v498_v39 = vmul.f32 %v496_v34, %v4149_v26  ;;  %v499_v40 = vmul.f32 %v496_v34, %v4153_v28  ;;  %v500_v41 = vmul.f32 %v496_v34, %v4161_v33  ;;  %v6682_v29 = vmov 19  }
 0x283   :  { %v501_v42 = vmul.f32 %v496_v34, %v4151_v27  ;;  %3726 = vset.pattern.permute.xlu1 %v6682_v29 }
 0x28a   :  { %479 = vrot.lane.b32.xlu1 %v469_v31, %s3917_s29  ;;  %481 = vrot.lane.b32.xlu2 %v470_v32, %s3917_s29  ;;  %v527_v53 = vpop.permute.xlu0 %526 }
 0x28b   :  { %v529_v54 = vmul.f32 %v527_v53, %v4149_v26  ;;  %v530_v55 = vmul.f32 %v527_v53, %v4153_v28  ;;  %v531_v56 = vmul.f32 %v527_v53, %v4161_v33  ;;  %v532_v58 = vmul.f32 %v527_v53, %v4151_v27 }
 0x292   :  { %506 = vrot.lane.b32.xlu1 %v498_v39, %s3918_s30  ;;  %508 = vrot.lane.b32.xlu2 %v499_v40, %s3918_s30 }
 0x293   :  { %v558_v25 = vpop.permute.xlu0 %557 }
 0x294   :  { %v560_v30 = vmul.f32 %v558_v25, %v4149_v26  ;;  %v561_v31 = vmul.f32 %v558_v25, %v4153_v28  ;;  %v562_v32 = vmul.f32 %v558_v25, %v4161_v33  ;;  %v563_v34 = vmul.f32 %v558_v25, %v4151_v27 }
 0x29a   :  { %510 = vrot.lane.b32.xlu1 %v500_v41, %s3918_s30  ;;  %512 = vrot.lane.b32.xlu2 %v501_v42, %s3918_s30 }
 0x29c   :  { %v589_v39 = vpop.permute.xlu0 %588 }
 0x29d   :  { %v591_v40 = vmul.f32 %v589_v39, %v4149_v26  ;;  %v592_v41 = vmul.f32 %v589_v39, %v4153_v28  ;;  %v593_v42 = vmul.f32 %v589_v39, %v4161_v33  ;;  %v594_v53 = vmul.f32 %v589_v39, %v4151_v27 }
 0x2a2   :  { %537 = vrot.lane.b32.xlu1 %v529_v54, %s3920_s12  ;;  %539 = vrot.lane.b32.xlu2 %v530_v55, %s3920_s12  ;;  %v4248_v54 = vpop.permute.xlu1 %417 }
 0x2a3   :  { %6857 = vst [vmem:[#allocation13_spill] sm:$0xff] %v4248_v54 }
 0x2aa   :  { %541 = vrot.lane.b32.xlu1 %v531_v56, %s3920_s12  ;;  %543 = vrot.lane.b32.xlu2 %v532_v58, %s3920_s12 }
 0x2b2   :  { %568 = vrot.lane.b32.xlu1 %v560_v30, %s3922_s13  ;;  %570 = vrot.lane.b32.xlu2 %v561_v31, %s3922_s13 }
 0x2ba   :  { %572 = vrot.lane.b32.xlu1 %v562_v32, %s3922_s13  ;;  %574 = vrot.lane.b32.xlu2 %v563_v34, %s3922_s13 }
 0x2c2   :  { %599 = vrot.lane.b32.xlu1 %v591_v40, %s3923_s14  ;;  %601 = vrot.lane.b32.xlu2 %v592_v41, %s3923_s14  ;;  %v6684_v40 = vmov 20  }
 0x2ca   :  { %603 = vrot.lane.b32.xlu1 %v593_v42, %s3923_s14  ;;  %605 = vrot.lane.b32.xlu2 %v594_v53, %s3923_s14 }
 0x2d2   :  { %642 = vperm.xlu1 %3726, %v4022_v2  }
 0x2da   :  { %3727 = vset.pattern.permute.xlu1 %v6684_v40 }
 0x2e4   :  { %v4250_v55 = vpop.permute.xlu1 %444 }
 0x2ec   :  { %v4252_v56 = vpop.permute.xlu1 %448 }
 0x2ed   :  { %6858 = vst [vmem:[#allocation14_spill] sm:$0xff] %v4252_v56  ;;  %v6891_v56 = vmov 0  }
 0x2f4   :  { %v4254_v58 = vpop.permute.xlu1 %475 }
 0x2f5   :  { %6859 = vst [vmem:[#allocation15_spill] sm:$0xff] %v4254_v58 }
 0x2fc   :  { %v4256_v25 = vpop.permute.xlu1 %479 }
 0x2fd   :  { %6860 = vst [vmem:[#allocation16_spill] sm:$0xff] %v4256_v25 }
 0x304   :  { %v4258_v30 = vpop.permute.xlu1 %506 }
 0x305   :  { %6861 = vst [vmem:[#allocation17_spill] sm:$0xff] %v4258_v30 }
 0x30c   :  { %v4260_v31 = vpop.permute.xlu1 %510 }
 0x30d   :  { %6862 = vst [vmem:[#allocation18_spill] sm:$0xff] %v4260_v31 }
 0x314   :  { %v4262_v32 = vpop.permute.xlu1 %537 }
 0x315   :  { %6863 = vst [vmem:[#allocation19_spill] sm:$0xff] %v4262_v32 }
 0x31c   :  { %v4264_v34 = vpop.permute.xlu1 %541 }
 0x31d   :  { %6864 = vst [vmem:[#allocation20_spill] sm:$0xff] %v4264_v34 }
 0x324   :  { %v4266_v39 = vpop.permute.xlu1 %568 }
 0x325   :  { %6865 = vst [vmem:[#allocation21_spill] sm:$0xff] %v4266_v39 }
 0x32c   :  { %v4269_v41 = vpop.permute.xlu1 %572 }
 0x32d   :  { %6866 = vst [vmem:[#allocation22_spill] sm:$0xff] %v4269_v41 }
 0x334   :  { %v4271_v42 = vpop.permute.xlu1 %599 }
 0x335   :  { %6867 = vst [vmem:[#allocation23_spill] sm:$0xff] %v4271_v42 }
 0x33c   :  { %v4273_v53 = vpop.permute.xlu1 %603 }
 0x33d   :  { %6868 = vst [vmem:[#allocation24_spill] sm:$0xff] %v4273_v53 }
 0x344   :  { %v643_v44 = vpop.permute.xlu1 %642 }
 0x345   :  { %v648_v43 = vmul.f32 %v643_v44, %v4277_v46  ;;  %v646_v29 = vmul.f32 %v643_v44, %v4279_v45  ;;  %v645_v40 = vmul.f32 %v643_v44, %v4275_v47  ;;  %v647_v35 = vmul.f32 %v643_v44, %v4287_v21 }
 0x346   :  { %v6698_v44 = vmov 22  }
 0x347   :  { %659 = vrot.lane.b32.xlu0 %v648_v43, %s3915_s27  ;;  %655 = vrot.lane.b32.xlu1 %v646_v29, %s3915_s27 }
 0x348   :  { %653 = vrot.lane.b32.xlu2 %v645_v40, %s3915_s27 }
 0x34f   :  { %673 = vperm.xlu1 %3727, %v4022_v2  }
 0x350   :  { %657 = vrot.lane.b32.xlu2 %v647_v35, %s3915_s27 }
 0x3b9   :  { %v4293_v9 = vpop.permute.xlu1 %655 }
 0x3ba   :  { %6873 = vst [vmem:[#allocation29_spill] sm:$0xff] %v4293_v9 }
 0x3c1   :  { %v674_v8 = vpop.permute.xlu1 %673 }
 0x3c2   :  { %v678_v43 = vmul.f32 %v674_v8, %v4287_v21  ;;  %v677_v29 = vmul.f32 %v674_v8, %v4279_v45  ;;  %v676_v40 = vmul.f32 %v674_v8, %v4275_v47  ;;  %v679_v35 = vmul.f32 %v674_v8, %v4277_v46 }
 0x3c3   :  { %v6704_v8 = vmov 25  }
 0x3c4   :  { %688 = vrot.lane.b32.xlu1 %v678_v43, %s3914_s2  ;;  %686 = vrot.lane.b32.xlu0 %v677_v29, %s3914_s2  ;;  %v6700_v43 = vmov 24   ;;  %v6706_v29 = vmov 26  }
 0x3c5   :  { %684 = vrot.lane.b32.xlu2 %v676_v40, %s3914_s2  ;;  %v4314_v40 = vpop.permute.xlu0 %621 }
 0x3c6   :  { %6874 = vst [vmem:[#allocation30_spill] sm:$0xff] %v4314_v40 }
 0x3cc   :  { %704 = vperm.xlu0 %3728, %v4022_v2  }
 0x3cd   :  { %690 = vrot.lane.b32.xlu2 %v679_v35, %s3914_s2  ;;  %v4316_v35 = vpop.permute.xlu0 %659 }
 0x3ce   :  { %6875 = vst [vmem:[#allocation31_spill] sm:$0xff] %v4316_v35 }
 0x3d4   :  { %3729 = vset.pattern.permute.xlu0 %v6698_v44 }
 0x3d5   :  { %735 = vperm.xlu0 %3729, %v4022_v2  }
 0x3dd   :  { %3730 = vset.pattern.permute.xlu0 %v6696_v37 }
 0x3de   :  { %766 = vperm.xlu0 %3730, %v4022_v2  }
 0x3e6   :  { %3731 = vset.pattern.permute.xlu0 %v6700_v43 }
 0x3e7   :  { %797 = vperm.xlu0 %3731, %v4022_v2  }
 0x3ef   :  { %3732 = vset.pattern.permute.xlu0 %v6704_v8 }
 0x3f0   :  { %828 = vperm.xlu0 %3732, %v4022_v2  }
 0x3f8   :  { %3733 = vset.pattern.permute.xlu0 %v6706_v29 }
 0x3f9   :  { %859 = vperm.xlu0 %3733, %v4022_v2  }
 0x436   :  { %v4318_v37 = vpop.permute.xlu0 %686  ;;  %v4384_v4 = vpop.permute.xlu1 %688 }
 0x437   :  { %6876 = vst [vmem:[#allocation32_spill] sm:$0xff] %v4318_v37 }
 0x438   :  { %6877 = vst [vmem:[#allocation33_spill] sm:$0xff] %v4384_v4 }
 0x43e   :  { %v705_v44 = vpop.permute.xlu0 %704 }
 0x43f   :  { %v707_v43 = vmul.f32 %v705_v44, %v4275_v47  ;;  %v708_v38 = vmul.f32 %v705_v44, %v4279_v45  ;;  %v709_v8 = vmul.f32 %v705_v44, %v4287_v21  ;;  %v710_v29 = vmul.f32 %v705_v44, %v4277_v46 }
 0x441   :  { %715 = vrot.lane.b32.xlu1 %v707_v43, %s3916_s28  ;;  %717 = vrot.lane.b32.xlu2 %v708_v38, %s3916_s28 }
 0x447   :  { %v736_v7 = vpop.permute.xlu0 %735 }
 0x448   :  { %v738_v6 = vmul.f32 %v736_v7, %v4275_v47  ;;  %v739_v48 = vmul.f32 %v736_v7, %v4279_v45  ;;  %v740_v43 = vmul.f32 %v736_v7, %v4287_v21  ;;  %v741_v38 = vmul.f32 %v736_v7, %v4277_v46 }
 0x449   :  { %719 = vrot.lane.b32.xlu1 %v709_v8, %s3916_s28  ;;  %721 = vrot.lane.b32.xlu2 %v710_v29, %s3916_s28  ;;  %v6714_v8 = vmov 27  }
 0x44a   :  { %3734 = vset.pattern.permute.xlu0 %v6714_v8 }
 0x44b   :  { %892 = vperm.xlu0 %3734, %v4022_v2  }
 0x450   :  { %v767_v44 = vpop.permute.xlu0 %766 }
 0x451   :  { %746 = vrot.lane.b32.xlu1 %v738_v6, %s3917_s29  ;;  %748 = vrot.lane.b32.xlu2 %v739_v48, %s3917_s29  ;;  %v769_v29 = vmul.f32 %v767_v44, %v4275_v47  ;;  %v770_v6 = vmul.f32 %v767_v44, %v4279_v45  ;;  %v771_v7 = vmul.f32 %v767_v44, %v4287_v21 }
 0x452   :  { %v772_v48 = vmul.f32 %v767_v44, %v4277_v46 }
 0x459   :  { %750 = vrot.lane.b32.xlu1 %v740_v43, %s3917_s29  ;;  %752 = vrot.lane.b32.xlu2 %v741_v38, %s3917_s29  ;;  %v798_v43 = vpop.permute.xlu0 %797 }
 0x45a   :  { %v800_v38 = vmul.f32 %v798_v43, %v4275_v47  ;;  %v801_v8 = vmul.f32 %v798_v43, %v4279_v45  ;;  %v803_v1 = vmul.f32 %v798_v43, %v4277_v46 }
 0x461   :  { %777 = vrot.lane.b32.xlu1 %v769_v29, %s3918_s30  ;;  %779 = vrot.lane.b32.xlu2 %v770_v6, %s3918_s30  ;;  %v4350_v29 = vpop.permute.xlu2 %107  ;;  %v802_v6 = vmul.f32 %v798_v43, %v4287_v21 }
 0x462   :  { %v829_v44 = vpop.permute.xlu0 %828 }
 0x463   :  { %v834_v43 = vmul.f32 %v829_v44, %v4277_v46 }
 0x469   :  { %781 = vrot.lane.b32.xlu1 %v771_v7, %s3918_s30  ;;  %783 = vrot.lane.b32.xlu2 %v772_v48, %s3918_s30  ;;  %v6720_v7 = vmov 28   ;;  %v831_v48 = vmul.f32 %v829_v44, %v4275_v47  ;;  %v4359_v3 = vpop.permute.xlu2 %109 }
 0x46a   :  { %3735 = vset.pattern.permute.xlu1 %v6720_v7 }
 0x471   :  { %808 = vrot.lane.b32.xlu1 %v800_v38, %s3920_s12  ;;  %810 = vrot.lane.b32.xlu2 %v801_v8, %s3920_s12  ;;  %v832_v38 = vmul.f32 %v829_v44, %v4279_v45  ;;  %v833_v8 = vmul.f32 %v829_v44, %v4287_v21 }
 0x479   :  { %812 = vrot.lane.b32.xlu1 %v802_v6, %s3920_s12  ;;  %814 = vrot.lane.b32.xlu2 %v803_v1, %s3920_s12  ;;  %v4365_v6 = vpop.permute.xlu2 %135  ;;  %v860_v1 = vpop.permute.xlu0 %859 }
 0x47a   :  { %v862_v7 = vmul.f32 %v860_v1, %v4275_v47  ;;  %v863_v5 = vmul.f32 %v860_v1, %v4279_v45  ;;  %v865_v44 = vmul.f32 %v860_v1, %v4277_v46 }
 0x481   :  { %839 = vrot.lane.b32.xlu1 %v831_v48, %s3922_s13  ;;  %841 = vrot.lane.b32.xlu2 %v832_v38, %s3922_s13  ;;  %v4373_v48 = vpop.permute.xlu2 %141  ;;  %v864_v38 = vmul.f32 %v860_v1, %v4287_v21 }
 0x489   :  { %843 = vrot.lane.b32.xlu1 %v833_v8, %s3922_s13  ;;  %845 = vrot.lane.b32.xlu2 %v834_v43, %s3922_s13  ;;  %v4379_v8 = vpop.permute.xlu2 %169 }
 0x491   :  { %870 = vrot.lane.b32.xlu1 %v862_v7, %s3923_s14  ;;  %872 = vrot.lane.b32.xlu2 %v863_v5, %s3923_s14  ;;  %v4382_v43 = vpop.permute.xlu2 %173 }
 0x499   :  { %874 = vrot.lane.b32.xlu1 %v864_v38, %s3923_s14  ;;  %876 = vrot.lane.b32.xlu2 %v865_v44, %s3923_s14  ;;  %v4386_v7 = vpop.permute.xlu2 %201 }
 0x4a1   :  { %913 = vperm.xlu1 %3735, %v4022_v2   ;;  %v4390_v0 = vpop.permute.xlu2 %205 }
 0x4a9   :  { %v4396_v38 = vpop.permute.xlu2 %233 }
 0x4b1   :  { %v4400_v21 = vpop.permute.xlu2 %237 }
 0x4b3   :  { %v4388_v5 = vpop.permute.xlu1 %715 }
 0x4b4   :  { %6878 = vst [vmem:[#allocation34_spill] sm:$0xff] %v4388_v5 }
 0x4b9   :  { %v4404_v45 = vpop.permute.xlu2 %265 }
 0x4bb   :  { %v4392_v35 = vpop.permute.xlu1 %719 }
 0x4bc   :  { %6879 = vst [vmem:[#allocation35_spill] sm:$0xff] %v4392_v35 }
 0x4c1   :  { %v4408_v9 = vpop.permute.xlu2 %269 }
 0x4c3   :  { %v4394_v1 = vpop.permute.xlu1 %746 }
 0x4c4   :  { %6880 = vst [vmem:[#allocation36_spill] sm:$0xff] %v4394_v1 }
 0x4c9   :  { %v4414_v35 = vpop.permute.xlu2 %297 }
 0x4cb   :  { %v4398_v44 = vpop.permute.xlu1 %750 }
 0x4cc   :  { %6881 = vst [vmem:[#allocation37_spill] sm:$0xff] %v4398_v44  ;;  %v6744_v44 = vmov 29  }
 0x4cd   :  { %3736 = vset.pattern.permute.xlu1 %v6744_v44 }
 0x4d1   :  { %v4418_v46 = vpop.permute.xlu2 %301 }
 0x4d3   :  { %v4402_v37 = vpop.permute.xlu1 %777 }
 0x4d4   :  { %6882 = vst [vmem:[#allocation38_spill] sm:$0xff] %v4402_v37 }
 0x4d9   :  { %v4423_v41 = vpop.permute.xlu2 %329 }
 0x4db   :  { %v4406_v4 = vpop.permute.xlu1 %781 }
 0x4dc   :  { %6883 = vst [vmem:[#allocation39_spill] sm:$0xff] %v4406_v4 }
 0x4e1   :  { %v4427_v47 = vpop.permute.xlu2 %333 }
 0x4e3   :  { %v4410_v5 = vpop.permute.xlu1 %808 }
 0x4e4   :  { %6884 = vst [vmem:[#allocation40_spill] sm:$0xff] %v4410_v5 }
 0x4e9   :  { %v4431_v40 = vpop.permute.xlu2 %382 }
 0x4eb   :  { %v4412_v53 = vpop.permute.xlu1 %812 }
 0x4ec   :  { %6885 = vst [vmem:[#allocation41_spill] sm:$0xff] %v4412_v53  ;;  %v890_v53 = vld [vmem:[#allocation4 + $0x3] ss:$4 sm:$0xf] }
 0x4ed   :  { %v4433_v34 = vperm.slane %v890_v53, 0  ;;  %v4437_v42 = vperm.slane %v890_v53, 1 }
 0x4f1   :  { %v4447_v39 = vpop.permute.xlu2 %386 }
 0x4f2   :  { %6890 = vst [vmem:[#allocation46_spill] sm:$0xff] %v4447_v39 }
 0x4f3   :  { %v4416_v1 = vpop.permute.xlu1 %839 }
 0x4f4   :  { %6886 = vst [vmem:[#allocation42_spill] sm:$0xff] %v4416_v1  ;;  %v4435_v1 = vperm.slane %v890_v53, 3 }
 0x4f9   :  { %v4452_v32 = vpop.permute.xlu2 %413 }
 0x4fb   :  { %v4421_v37 = vpop.permute.xlu1 %843 }
 0x4fc   :  { %6887 = vst [vmem:[#allocation43_spill] sm:$0xff] %v4421_v37 }
 0x501   :  { %v4455_v30 = vpop.permute.xlu2 %419 }
 0x502   :  { %6892 = vst [vmem:[#allocation47_spill] sm:$0xff] %v4455_v30 }
 0x503   :  { %v4425_v4 = vpop.permute.xlu1 %870 }
 0x504   :  { %6888 = vst [vmem:[#allocation44_spill] sm:$0xff] %v4425_v4 }
 0x50b   :  { %v4429_v5 = vpop.permute.xlu1 %874 }
 0x50c   :  { %6889 = vst [vmem:[#allocation45_spill] sm:$0xff] %v4429_v5  ;;  %v4445_v5 = vperm.slane %v890_v53, 2 }
 0x513   :  { %v914_v44 = vpop.permute.xlu1 %913 }
 0x514   :  { %v919_v37 = vmul.f32 %v914_v44, %v4435_v1  ;;  %v917_v31 = vmul.f32 %v914_v44, %v4437_v42  ;;  %v916_v4 = vmul.f32 %v914_v44, %v4433_v34  ;;  %v918_v25 = vmul.f32 %v914_v44, %v4445_v5 }
 0x516   :  { %930 = vrot.lane.b32.xlu0 %v919_v37, %s3915_s27  ;;  %926 = vrot.lane.b32.xlu1 %v917_v31, %s3915_s27  ;;  %v4457_v37 = vpop.permute.xlu2 %446 }
 0x517   :  { %924 = vrot.lane.b32.xlu2 %v916_v4, %s3915_s27 }
 0x51e   :  { %944 = vperm.xlu1 %3736, %v4022_v2   ;;  %v4459_v31 = vpop.permute.xlu2 %450 }
 0x51f   :  { %928 = vrot.lane.b32.xlu2 %v918_v25, %s3915_s27  ;;  %6893 = vst [vmem:[#allocation48_spill] sm:$0xff] %v4459_v31  ;;  %v6759_v25 = vmov 30  }
 0x520   :  { %3737 = vset.pattern.permute.xlu0 %v6759_v25 }
 0x526   :  { %3779 = vset.pattern.permute.xlu1 %v6891_v56  ;;  %v4461_v4 = vpop.permute.xlu2 %477 }
 0x527   :  { %6894 = vst [vmem:[#allocation49_spill] sm:$0xff] %v4461_v4 }
 0x52e   :  { %v4463_v53 = vpop.permute.xlu2 %481 }
 0x52f   :  { %6895 = vst [vmem:[#allocation50_spill] sm:$0xff] %v4463_v53 }
 0x536   :  { %v4465_v54 = vpop.permute.xlu2 %508 }
 0x537   :  { %6896 = vst [vmem:[#allocation51_spill] sm:$0xff] %v4465_v54 }
 0x53e   :  { %v4467_v44 = vpop.permute.xlu2 %512 }
 0x53f   :  { %6897 = vst [vmem:[#allocation52_spill] sm:$0xff] %v4467_v44 }
 0x546   :  { %v4469_v58 = vpop.permute.xlu2 %539 }
 0x547   :  { %6898 = vst [vmem:[#allocation53_spill] sm:$0xff] %v4469_v58 }
 0x54e   :  { %v4472_v56 = vpop.permute.xlu2 %543 }
 0x54f   :  { %6899 = vst [vmem:[#allocation54_spill] sm:$0xff] %v4472_v56 }
 0x556   :  { %v4474_v30 = vpop.permute.xlu2 %570 }
 0x557   :  { %6900 = vst [vmem:[#allocation55_spill] sm:$0xff] %v4474_v30 }
 0x55e   :  { %v4478_v31 = vpop.permute.xlu2 %574 }
 0x55f   :  { %6902 = vst [vmem:[#allocation57_spill] sm:$0xff] %v4478_v31 }
 0x566   :  { %v4486_v25 = vpop.permute.xlu2 %601 }
 0x567   :  { %6903 = vst [vmem:[#allocation58_spill] sm:$0xff] %v4486_v25 }
 0x56e   :  { %v4492_v31 = vpop.permute.xlu2 %605 }
 0x56f   :  { %6904 = vst [vmem:[#allocation59_spill] sm:$0xff] %v4492_v31 }
 0x588   :  { %v4476_v39 = vpop.permute.xlu1 %926 }
 0x589   :  { %6901 = vst [vmem:[#allocation56_spill] sm:$0xff] %v4476_v39  ;;  %v6764_v39 = vmov 31  }
 0x590   :  { %v945_v4 = vpop.permute.xlu1 %944 }
 0x591   :  { %v949_v53 = vmul.f32 %v945_v4, %v4445_v5  ;;  %v948_v54 = vmul.f32 %v945_v4, %v4437_v42  ;;  %v947_v44 = vmul.f32 %v945_v4, %v4433_v34  ;;  %v950_v56 = vmul.f32 %v945_v4, %v4435_v1 }
 0x593   :  { %959 = vrot.lane.b32.xlu1 %v949_v53, %s3914_s2  ;;  %957 = vrot.lane.b32.xlu0 %v948_v54, %s3914_s2  ;;  %v4495_v53 = vpop.permute.xlu2 %653  ;;  %v6766_v54 = vmov 32  }
 0x594   :  { %955 = vrot.lane.b32.xlu2 %v947_v44, %s3914_s2  ;;  %6905 = vst [vmem:[#allocation60_spill] sm:$0xff] %v4495_v53  ;;  %v6769_v44 = vmov 33   ;;  %v6777_v53 = vmov 35  }
 0x59b   :  { %975 = vperm.xlu0 %3737, %v4022_v2   ;;  %v4500_v4 = vpop.permute.xlu2 %657 }
 0x59c   :  { %961 = vrot.lane.b32.xlu2 %v950_v56, %s3914_s2  ;;  %6906 = vst [vmem:[#allocation61_spill] sm:$0xff] %v4500_v4 }
 0x5a3   :  { %3738 = vset.pattern.permute.xlu0 %v6764_v39  ;;  %v4503_v56 = vpop.permute.xlu2 %684  ;;  %v6773_v39 = vmov 34  }
 0x5a4   :  { %1006 = vperm.xlu0 %3738, %v4022_v2   ;;  %6907 = vst [vmem:[#allocation62_spill] sm:$0xff] %v4503_v56 }
 0x5ac   :  { %3739 = vset.pattern.permute.xlu0 %v6766_v54  ;;  %v4508_v54 = vpop.permute.xlu2 %690 }
 0x5ad   :  { %1037 = vperm.xlu0 %3739, %v4022_v2   ;;  %6908 = vst [vmem:[#allocation63_spill] sm:$0xff] %v4508_v54 }
 0x5b4   :  { %v4511_v31 = vpop.permute.xlu2 %717 }
 0x5b5   :  { %3740 = vset.pattern.permute.xlu0 %v6769_v44  ;;  %6909 = vst [vmem:[#allocation64_spill] sm:$0xff] %v4511_v31  ;;  %v6910_v44 = vmov 3  }
 0x5b6   :  { %1068 = vperm.xlu0 %3740, %v4022_v2  }
 0x5bc   :  { %v4514_v4 = vpop.permute.xlu2 %721 }
 0x5bd   :  { %6911 = vst [vmem:[#allocation65_spill] sm:$0xff] %v4514_v4 }
 0x5be   :  { %3741 = vset.pattern.permute.xlu0 %v6773_v39  ;;  %v4520_v39 = vpop.permute.xlu0 %892 }
 0x5bf   :  { %1099 = vperm.xlu0 %3741, %v4022_v2   ;;  %6913 = vst [vmem:[#allocation67_spill] sm:$0xff] %v4520_v39 }
 0x5c4   :  { %v4516_v25 = vpop.permute.xlu2 %748 }
 0x5c6   :  { %v4524_v58 = vpop.permute.xlu0 %930 }
 0x5c7   :  { %3742 = vset.pattern.permute.xlu0 %v6777_v53  ;;  %6915 = vst [vmem:[#allocation69_spill] sm:$0xff] %v4524_v58 }
 0x5c8   :  { %1130 = vperm.xlu0 %3742, %v4022_v2  }
 0x5cc   :  { %v4518_v56 = vpop.permute.xlu2 %752 }
 0x5cd   :  { %6912 = vst [vmem:[#allocation66_spill] sm:$0xff] %v4518_v56 }
 0x5d0   :  { %3746 = vset.pattern.permute.xlu0 %v6910_v44 }
 0x5d4   :  { %v4522_v30 = vpop.permute.xlu2 %779 }
 0x5d5   :  { %6914 = vst [vmem:[#allocation68_spill] sm:$0xff] %v4522_v30 }
 0x5dc   :  { %v4526_v53 = vpop.permute.xlu2 %783 }
 0x5dd   :  { %6916 = vst [vmem:[#allocation70_spill] sm:$0xff] %v4526_v53 }
 0x5e4   :  { %v4530_v2 = vpop.permute.xlu2 %810 }
 0x5e5   :  { %6918 = vst [vmem:[#allocation72_spill] sm:$0xff] %v4530_v2 }
 0x5ec   :  { %v4536_v39 = vpop.permute.xlu2 %814 }
 0x5ed   :  { %6919 = vst [vmem:[#allocation73_spill] sm:$0xff] %v4536_v39 }
 0x5f4   :  { %v4544_v30 = vpop.permute.xlu2 %841 }
 0x5f5   :  { %6920 = vst [vmem:[#allocation74_spill] sm:$0xff] %v4544_v30 }
 0x605   :  { %v4528_v54 = vpop.permute.xlu0 %957 }
 0x606   :  { %6917 = vst [vmem:[#allocation71_spill] sm:$0xff] %v4528_v54 }
 0x60d   :  { %v976_v31 = vpop.permute.xlu0 %975 }
 0x60e   :  { %v978_v44 = vmul.f32 %v976_v31, %v4433_v34  ;;  %v979_v4 = vmul.f32 %v976_v31, %v4437_v42  ;;  %v980_v56 = vmul.f32 %v976_v31, %v4445_v5  ;;  %v981_v58 = vmul.f32 %v976_v31, %v4435_v1  ;;  %v4552_v31 = vpop.permute.xlu2 %845 }
 0x60f   :  { %6921 = vst [vmem:[#allocation75_spill] sm:$0xff] %v4552_v31 }
 0x610   :  { %986 = vrot.lane.b32.xlu1 %v978_v44, %s3916_s28  ;;  %988 = vrot.lane.b32.xlu2 %v979_v4, %s3916_s28 }
 0x616   :  { %v1007_v54 = vpop.permute.xlu0 %1006 }
 0x617   :  { %v1009_v53 = vmul.f32 %v1007_v54, %v4433_v34  ;;  %v1010_v2 = vmul.f32 %v1007_v54, %v4437_v42  ;;  %v1011_v44 = vmul.f32 %v1007_v54, %v4445_v5  ;;  %v1012_v4 = vmul.f32 %v1007_v54, %v4435_v1 }
 0x618   :  { %990 = vrot.lane.b32.xlu1 %v980_v56, %s3916_s28  ;;  %992 = vrot.lane.b32.xlu2 %v981_v58, %s3916_s28 }
 0x61f   :  { %v1038_v58 = vpop.permute.xlu0 %1037 }
 0x620   :  { %1017 = vrot.lane.b32.xlu1 %v1009_v53, %s3917_s29  ;;  %1019 = vrot.lane.b32.xlu2 %v1010_v2, %s3917_s29  ;;  %v1040_v56 = vmul.f32 %v1038_v58, %v4433_v34  ;;  %v1041_v39 = vmul.f32 %v1038_v58, %v4437_v42  ;;  %v4558_v53 = vpop.permute.xlu2 %872  ;;  %v1042_v2 = vmul.f32 %v1038_v58, %v4445_v5 }
 0x621   :  { %6922 = vst [vmem:[#allocation76_spill] sm:$0xff] %v4558_v53  ;;  %v1043_v54 = vmul.f32 %v1038_v58, %v4435_v1 }
 0x628   :  { %1021 = vrot.lane.b32.xlu1 %v1011_v44, %s3917_s29  ;;  %1023 = vrot.lane.b32.xlu2 %v1012_v4, %s3917_s29  ;;  %v1069_v44 = vpop.permute.xlu0 %1068  ;;  %v4566_v30 = vpop.permute.xlu2 %876 }
 0x629   :  { %v1071_v4 = vmul.f32 %v1069_v44, %v4433_v34  ;;  %v1072_v31 = vmul.f32 %v1069_v44, %v4437_v42  ;;  %6923 = vst [vmem:[#allocation77_spill] sm:$0xff] %v4566_v30  ;;  %v1074_v58 = vmul.f32 %v1069_v44, %v4435_v1 }
 0x630   :  { %1048 = vrot.lane.b32.xlu1 %v1040_v56, %s3918_s30  ;;  %1050 = vrot.lane.b32.xlu2 %v1041_v39, %s3918_s30  ;;  %v4570_v39 = vpop.permute.xlu2 %924  ;;  %v1073_v56 = vmul.f32 %v1069_v44, %v4445_v5 }
 0x631   :  { %6924 = vst [vmem:[#allocation78_spill] sm:$0xff] %v4570_v39 }
 0x638   :  { %1052 = vrot.lane.b32.xlu1 %v1042_v2, %s3918_s30  ;;  %1054 = vrot.lane.b32.xlu2 %v1043_v54, %s3918_s30  ;;  %v1100_v2 = vpop.permute.xlu0 %1099  ;;  %v4578_v30 = vpop.permute.xlu2 %928 }
 0x639   :  { %v1102_v54 = vmul.f32 %v1100_v2, %v4433_v34  ;;  %v1103_v53 = vmul.f32 %v1100_v2, %v4437_v42  ;;  %6925 = vst [vmem:[#allocation79_spill] sm:$0xff] %v4578_v30  ;;  %v4602_v30 = vpop.permute.xlu1 %959 }
 0x63a   :  { %6929 = vst [vmem:[#allocation83_spill] sm:$0xff] %v4602_v30  ;;  %v86_v30 = vmul.f32 %v4054_v20, %v4042_v12  ;;  %v113_v20 = vsel %vm111_vm0, %v4120_v59, %v4350_v29 }
 0x640   :  { %1079 = vrot.lane.b32.xlu1 %v1071_v4, %s3920_s12  ;;  %1081 = vrot.lane.b32.xlu2 %v1072_v31, %s3920_s12  ;;  %v1104_v31 = vmul.f32 %v1100_v2, %v4445_v5  ;;  %v1105_v4 = vmul.f32 %v1100_v2, %v4435_v1  ;;  %v4584_v44 = vpop.permute.xlu2 %955 }
 0x641   :  { %6926 = vst [vmem:[#allocation80_spill] sm:$0xff] %v4584_v44 }
 0x648   :  { %1083 = vrot.lane.b32.xlu1 %v1073_v56, %s3920_s12  ;;  %1085 = vrot.lane.b32.xlu2 %v1074_v58, %s3920_s12  ;;  %v1131_v56 = vpop.permute.xlu0 %1130 }
 0x649   :  { %v1133_v58 = vmul.f32 %v1131_v56, %v4433_v34  ;;  %v1134_v39 = vmul.f32 %v1131_v56, %v4437_v42  ;;  %v1136_v2 = vmul.f32 %v1131_v56, %v4435_v1 }
 0x650   :  { %1110 = vrot.lane.b32.xlu1 %v1102_v54, %s3922_s13  ;;  %1112 = vrot.lane.b32.xlu2 %v1103_v53, %s3922_s13  ;;  %v4592_v53 = vpop.permute.xlu2 %961  ;;  %v1135_v54 = vmul.f32 %v1131_v56, %v4445_v5 }
 0x651   :  { %6927 = vst [vmem:[#allocation81_spill] sm:$0xff] %v4592_v53  ;;  %v144_v53 = vsel %vm143_vm1, %v4365_v6, %v4188_v49  ;;  %v208_v6 = vsel %vm207_vm3, %v4128_v63, %v4386_v7  ;;  %v240_v63 = vsel %vm239_vm4, %v4132_v13, %v4396_v38  ;;  %v272_v13 = vsel %vm271_vm5, %v4136_v17, %v4404_v45 }
 0x658   :  { %1114 = vrot.lane.b32.xlu1 %v1104_v31, %s3922_s13  ;;  %1116 = vrot.lane.b32.xlu2 %v1105_v4, %s3922_s13 }
 0x660   :  { %1141 = vrot.lane.b32.xlu1 %v1133_v58, %s3923_s14  ;;  %1143 = vrot.lane.b32.xlu2 %v1134_v39, %s3923_s14  ;;  %v112_v39 = vsel %vm111_vm0, %v4115_v57, %v4120_v59  ;;  %v176_v57 = vsel %vm175_vm2, %v4124_v61, %v4379_v8  ;;  %v85_v61 = vmul.f32 %v4046_v15, %v4042_v12 }
 0x661   :  { %v146_v59 = vsel %vm143_vm1, %v4122_v60, %v4373_v48 }
 0x668   :  { %1145 = vrot.lane.b32.xlu1 %v1135_v54, %s3923_s14  ;;  %1147 = vrot.lane.b32.xlu2 %v1136_v2, %s3923_s14  ;;  %v83_v54 = vmul.f32 %v4048_v16, %v4042_v12  ;;  %v114_v16 = vsel %vm111_vm0, %v4350_v29, %v4359_v3 }
 0x66a   :  { %v4598_v31 = vpop.permute.xlu2 %988  ;;  %v119_v2 = vadd.f32 %v112_v39, %v83_v54  ;;  %v122_v39 = vadd.f32 %v4359_v3, %v86_v30  ;;  %v84_v54 = vmul.f32 %v4040_v11, %v4042_v12  ;;  %v145_v3 = vsel %vm143_vm1, %v4188_v49, %v4122_v60 }
 0x66b   :  { %v121_v30 = vadd.f32 %v114_v16, %v85_v61  ;;  %v177_v49 = vsel %vm175_vm2, %v4379_v8, %v4126_v62  ;;  %v178_v60 = vsel %vm175_vm2, %v4126_v62, %v4382_v43  ;;  %v210_v8 = vsel %vm207_vm3, %v4130_v10, %v4390_v0 }
 0x66c   :  { %v120_v12 = vadd.f32 %v113_v20, %v84_v54  ;;  %v209_v20 = vsel %vm207_vm3, %v4386_v7, %v4130_v10  ;;  %v304_v62 = vsel %vm303_vm6, %v4140_v19, %v4414_v35  ;;  %v241_v61 = vsel %vm239_vm4, %v4396_v38, %v4134_v14 }
 0x66d   :  { %v242_v7 = vsel %vm239_vm4, %v4134_v14, %v4400_v21  ;;  %v274_v38 = vsel %vm271_vm5, %v4138_v18, %v4408_v9  ;;  %v362_v14 = vmul.f32 %v4149_v26, %v4190_v50  ;;  %v365_v26 = vmul.f32 %v4151_v27, %v4190_v50 }
 0x66e   :  { %v363_v27 = vmul.f32 %v4153_v28, %v4190_v50  ;;  %v6931_v28 = vld [vmem:[#allocation46_spill] sm:$0xff] }
 0x672   :  { %v4600_v4 = vpop.permute.xlu2 %992 }
 0x673   :  { %6928 = vst [vmem:[#allocation82_spill] sm:$0xff] %v4600_v4 }
 0x67a   :  { %v4604_v44 = vpop.permute.xlu2 %1019 }
 0x682   :  { %v4606_v58 = vpop.permute.xlu1 %986  ;;  %v4611_v56 = vpop.permute.xlu2 %1023 }
 0x683   :  { %6930 = vst [vmem:[#allocation84_spill] sm:$0xff] %v4611_v56  ;;  %v151_v56 = vadd.f32 %v144_v53, %v119_v2  ;;  %v154_v2 = vadd.f32 %v4373_v48, %v122_v39  ;;  %v152_v48 = vadd.f32 %v145_v3, %v120_v12  ;;  %v273_v3 = vsel %vm271_vm5, %v4404_v45, %v4138_v18 }
 0x684   :  { %v305_v12 = vsel %vm303_vm6, %v4414_v35, %v4143_v22  ;;  %v306_v45 = vsel %vm303_vm6, %v4143_v22, %v4418_v46  ;;  %v338_v35 = vsel %vm335_vm7, %v4147_v24, %v4427_v47  ;;  %v390_v22 = vsel %vm111_vm0, %v4431_v40, %v4167_v36 }
 0x685   :  { %v183_v53 = vadd.f32 %v176_v57, %v151_v56  ;;  %v186_v56 = vadd.f32 %v4382_v43, %v154_v2  ;;  %v153_v57 = vadd.f32 %v146_v59, %v121_v30  ;;  %v184_v43 = vadd.f32 %v177_v49, %v152_v48 }
 0x686   :  { %v337_v49 = vsel %vm335_vm7, %v4423_v41, %v4147_v24  ;;  %v421_v48 = vsel %vm143_vm1, %v4452_v32, %v4194_v52  ;;  %v452_v40 = vsel %vm175_vm2, %v4250_v55, %v4457_v37 }
 0x687   :  { %v215_v15 = vadd.f32 %v208_v6, %v183_v53  ;;  %v218_v39 = vadd.f32 %v4390_v0, %v186_v56  ;;  %v185_v17 = vadd.f32 %v178_v60, %v153_v57  ;;  %v336_v0 = vsel %vm335_vm7, %v4145_v23, %v4423_v41 }
 0x688   :  { %v216_v10 = vadd.f32 %v209_v20, %v184_v43 }
 0x689   :  { %v247_v16 = vadd.f32 %v240_v63, %v215_v15  ;;  %v250_v54 = vadd.f32 %v4400_v21, %v218_v39  ;;  %v217_v53 = vadd.f32 %v210_v8, %v185_v17  ;;  %v392_v8 = vsel %vm111_vm0, %v6931_v28, %v4192_v51 }
 0x68a   :  { %v4615_v4 = vpop.permute.xlu1 %990  ;;  %v4649_v11 = vpop.permute.xlu2 %1050  ;;  %v248_v59 = vadd.f32 %v241_v61, %v216_v10  ;;  %v6936_v10 = vld [vmem:[#allocation51_spill] sm:$0xff] }
 0x68b   :  { %v279_v6 = vadd.f32 %v272_v13, %v247_v16  ;;  %v282_v2 = vadd.f32 %v4408_v9, %v250_v54  ;;  %v249_v63 = vadd.f32 %v242_v7, %v217_v53  ;;  %v364_v16 = vmul.f32 %v4161_v33, %v4190_v50  ;;  %v6932_v33 = vld [vmem:[#allocation49_spill] sm:$0xff]  ;;  %v6933_v50 = vld [vmem:[#allocation15_spill] sm:$0xff] }
 0x68c   :  { %v280_v9 = vadd.f32 %v273_v3, %v248_v59  ;;  %v483_v43 = vsel %vm207_vm3, %v6933_v50, %v6932_v33  ;;  %v6934_v54 = vld [vmem:[#allocation47_spill] sm:$0xff]  ;;  %v6935_v7 = vld [vmem:[#allocation13_spill] sm:$0xff]  ;;  %v6938_v59 = vld [vmem:[#allocation48_spill] sm:$0xff] }
 0x68d   :  { %v311_v19 = vadd.f32 %v304_v62, %v279_v6  ;;  %v314_v30 = vadd.f32 %v4418_v46, %v282_v2  ;;  %v281_v18 = vadd.f32 %v274_v38, %v249_v63  ;;  %v391_v62 = vsel %vm111_vm0, %v4167_v36, %v6931_v28  ;;  %v6937_v53 = vld [vmem:[#allocation17_spill] sm:$0xff]  ;;  %v6948_v28 = vld [vmem:[#allocation58_spill] sm:$0xff] }
 0x68e   :  { %v312_v46 = vadd.f32 %v305_v12, %v280_v9  ;;  %v514_v36 = vsel %vm239_vm4, %v6937_v53, %v6936_v10  ;;  %v6941_v12 = vld [vmem:[#allocation19_spill] sm:$0xff] }
 0x68f   :  { %v343_v21 = vadd.f32 %v336_v0, %v311_v19  ;;  %v346_v56 = vadd.f32 %v4427_v47, %v314_v30  ;;  %v313_v60 = vadd.f32 %v306_v45, %v281_v18  ;;  %v423_v0 = vsel %vm143_vm1, %v6935_v7, %v6934_v54 }
 0x690   :  { %v344_v57 = vadd.f32 %v337_v49, %v312_v46  ;;  %v6944_v46 = vld [vmem:[#allocation55_spill] sm:$0xff] }
 0x691   :  { %v366_v13 = vadd.f32 %v362_v14, %v343_v21  ;;  %v345_v41 = vadd.f32 %v338_v35, %v313_v60  ;;  %v369_v47 = vadd.f32 %v365_v26, %v346_v56  ;;  %v6939_v14 = vld [vmem:[#allocation14_spill] sm:$0xff]  ;;  %v6943_v35 = vld [vmem:[#allocation16_spill] sm:$0xff]  ;;  %v6945_v60 = vld [vmem:[#allocation21_spill] sm:$0xff] }
 0x692   :  { %v4651_v29 = vpop.permute.xlu1 %1017  ;;  %v4701_v15 = vpop.permute.xlu2 %1054  ;;  %v367_v6 = vadd.f32 %v363_v27, %v344_v57  ;;  %v453_v21 = vsel %vm175_vm2, %v4457_v37, %v6939_v14  ;;  %v454_v30 = vsel %vm175_vm2, %v6939_v14, %v6938_v59  ;;  %v6942_v56 = vld [vmem:[#allocation50_spill] sm:$0xff] }
 0x693   :  { %v397_v24 = vadd.f32 %v390_v22, %v366_v13  ;;  %v400_v32 = vadd.f32 %v4192_v51, %v369_v47  ;;  %v368_v17 = vadd.f32 %v364_v16, %v345_v41  ;;  %v422_v51 = vsel %vm143_vm1, %v4194_v52, %v6935_v7  ;;  %v6940_v52 = vld [vmem:[#allocation53_spill] sm:$0xff]  ;;  %v6946_v16 = vld [vmem:[#allocation52_spill] sm:$0xff]  ;;  %v6947_v47 = vld [vmem:[#allocation18_spill] sm:$0xff] }
 0x694   :  { %v398_v3 = vadd.f32 %v391_v62, %v367_v6  ;;  %v545_v45 = vsel %vm271_vm5, %v6941_v12, %v6940_v52  ;;  %v484_v22 = vsel %vm207_vm3, %v6932_v33, %v6943_v35  ;;  %v485_v37 = vsel %vm207_vm3, %v6943_v35, %v6942_v56  ;;  %v6951_v6 = vld [vmem:[#allocation20_spill] sm:$0xff]  ;;  %v6957_v12 = vld [vmem:[#allocation59_spill] sm:$0xff] }
 0x695   :  { %v428_v39 = vadd.f32 %v421_v48, %v397_v24  ;;  %v431_v61 = vadd.f32 %v6934_v54, %v400_v32  ;;  %v399_v2 = vadd.f32 %v392_v8, %v368_v17  ;;  %v576_v13 = vsel %vm303_vm6, %v6945_v60, %v6944_v46  ;;  %v6949_v8 = vld [vmem:[#allocation23_spill] sm:$0xff] }
 0x696   :  { %v429_v18 = vadd.f32 %v422_v51, %v398_v3  ;;  %v607_v32 = vsel %vm335_vm7, %v6949_v8, %v6948_v28  ;;  %v6952_v51 = vld [vmem:[#allocation30_spill] sm:$0xff] }
 0x697   :  { %v459_v55 = vadd.f32 %v452_v40, %v428_v39  ;;  %v462_v63 = vadd.f32 %v6938_v59, %v431_v61  ;;  %v430_v9 = vadd.f32 %v423_v0, %v399_v2  ;;  %v515_v40 = vsel %vm239_vm4, %v6936_v10, %v6947_v47  ;;  %v6953_v10 = vld [vmem:[#allocation25_spill] sm:$0xff]  ;;  %v6955_v3 = vld [vmem:[#allocation22_spill] sm:$0xff] }
 0x698   :  { %v460_v27 = vadd.f32 %v453_v21, %v429_v18  ;;  %v516_v39 = vsel %vm239_vm4, %v6947_v47, %v6946_v16  ;;  %v633_v53 = vmul.f32 %v6953_v10, %v6952_v51 }
 0x699   :  { %v490_v38 = vadd.f32 %v483_v43, %v459_v55  ;;  %v493_v49 = vadd.f32 %v6942_v56, %v462_v63  ;;  %v461_v48 = vadd.f32 %v454_v30, %v430_v9  ;;  %v6950_v43 = vld [vmem:[#allocation54_spill] sm:$0xff]  ;;  %v546_v55 = vsel %vm271_vm5, %v6940_v52, %v6951_v6  ;;  %v6958_v9 = vld [vmem:[#allocation24_spill] sm:$0xff]  ;;  %v6959_v56 = vld [vmem:[#allocation29_spill] sm:$0xff] }
 0x69a   :  { %v4692_v23 = vpop.permute.xlu1 %1021  ;;  %v4747_v19 = vpop.permute.xlu2 %1081  ;;  %v491_v62 = vadd.f32 %v484_v22, %v460_v27  ;;  %v547_v54 = vsel %vm271_vm5, %v6951_v6, %v6950_v43  ;;  %v6956_v30 = vld [vmem:[#allocation26_spill] sm:$0xff]  ;;  %v608_v18 = vsel %vm335_vm7, %v6948_v28, %v6958_v9  ;;  %v6968_v6 = vld [vmem:[#allocation31_spill] sm:$0xff] }
 0x69b   :  { %v521_v26 = vadd.f32 %v514_v36, %v490_v38  ;;  %v524_v24 = vadd.f32 %v6946_v16, %v493_v49  ;;  %v492_v33 = vadd.f32 %v485_v37, %v461_v48  ;;  %v6954_v36 = vld [vmem:[#allocation57_spill] sm:$0xff]  ;;  %v577_v38 = vsel %vm303_vm6, %v6944_v46, %v6955_v3  ;;  %v6960_v49 = vld [vmem:[#allocation60_spill] sm:$0xff] }
 0x69c   :  { %v522_v61 = vadd.f32 %v515_v40, %v491_v62  ;;  %v578_v59 = vsel %vm303_vm6, %v6955_v3, %v6954_v36  ;;  %v636_v52 = vmul.f32 %v6956_v30, %v6952_v51  ;;  %v661_v35 = vsel %vm111_vm0, %v6960_v49, %v6959_v56  ;;  %v6962_v48 = vld [vmem:[#allocation32_spill] sm:$0xff]  ;;  %v6966_v62 = vld [vmem:[#allocation34_spill] sm:$0xff] }
 0x69d   :  { %v552_v57 = vadd.f32 %v545_v45, %v521_v26  ;;  %v555_v17 = vadd.f32 %v6950_v43, %v524_v24  ;;  %v523_v7 = vadd.f32 %v516_v39, %v492_v33  ;;  %v609_v26 = vsel %vm335_vm7, %v6958_v9, %v6957_v12  ;;  %v6964_v39 = vld [vmem:[#allocation28_spill] sm:$0xff]  ;;  %v6967_v43 = vld [vmem:[#allocation61_spill] sm:$0xff] }
 0x69e   :  { %v553_v14 = vadd.f32 %v546_v55, %v522_v61  ;;  %v635_v28 = vmul.f32 %v6964_v39, %v6952_v51  ;;  %v663_v55 = vsel %vm111_vm0, %v6967_v43, %v6968_v6  ;;  %v6969_v61 = vld [vmem:[#allocation36_spill] sm:$0xff]  ;;  %v6980_v39 = vld [vmem:[#allocation74_spill] sm:$0xff] }
 0x69f   :  { %v583_v50 = vadd.f32 %v576_v13, %v552_v57  ;;  %v586_v2 = vadd.f32 %v6954_v36, %v555_v17  ;;  %v554_v21 = vadd.f32 %v547_v54, %v523_v7  ;;  %v6961_v13 = vld [vmem:[#allocation27_spill] sm:$0xff]  ;;  %v6963_v57 = vld [vmem:[#allocation62_spill] sm:$0xff]  ;;  %v662_v17 = vsel %vm111_vm0, %v6959_v56, %v6967_v43 }
 0x6a0   :  { %v584_v22 = vadd.f32 %v577_v38, %v553_v14  ;;  %v634_v27 = vmul.f32 %v6961_v13, %v6952_v51  ;;  %v692_v16 = vsel %vm143_vm1, %v6963_v57, %v6962_v48  ;;  %v754_v7 = vsel %vm207_vm3, %v6969_v61, %v4516_v25  ;;  %v6973_v14 = vld [vmem:[#allocation38_spill] sm:$0xff]  ;;  %v6975_v56 = vld [vmem:[#allocation35_spill] sm:$0xff] }
 0x6a1   :  { %v614_v0 = vadd.f32 %v607_v32, %v583_v50  ;;  %v617_v45 = vadd.f32 %v6957_v12, %v586_v2  ;;  %v585_v37 = vadd.f32 %v578_v59, %v554_v21  ;;  %v6965_v32 = vld [vmem:[#allocation64_spill] sm:$0xff]  ;;  %v6971_v2 = vld [vmem:[#allocation33_spill] sm:$0xff]  ;;  %v6978_v57 = vld [vmem:[#allocation66_spill] sm:$0xff] }
 0x6a2   :  { %v4725_v20 = vpop.permute.xlu1 %1048  ;;  %v4797_v63 = vpop.permute.xlu2 %1085  ;;  %v615_v24 = vadd.f32 %v608_v18, %v584_v22  ;;  %v723_v33 = vsel %vm175_vm2, %v6966_v62, %v6965_v32  ;;  %v693_v38 = vsel %vm143_vm1, %v6962_v48, %v6971_v2  ;;  %v6972_v59 = vld [vmem:[#allocation68_spill] sm:$0xff]  ;;  %v6974_v18 = vld [vmem:[#allocation65_spill] sm:$0xff]  ;;  %v724_v49 = vsel %vm175_vm2, %v6965_v32, %v6975_v56 }
 0x6a3   :  { %v637_v46 = vadd.f32 %v633_v53, %v614_v0  ;;  %v616_v47 = vadd.f32 %v609_v26, %v585_v37  ;;  %v640_v8 = vadd.f32 %v636_v52, %v617_v45  ;;  %v6970_v53 = vld [vmem:[#allocation63_spill] sm:$0xff]  ;;  %v785_v21 = vsel %vm239_vm4, %v6973_v14, %v6972_v59  ;;  %v6976_v22 = vld [vmem:[#allocation72_spill] sm:$0xff] }
 0x6a4   :  { %v638_v0 = vadd.f32 %v634_v27, %v615_v24  ;;  %v694_v3 = vsel %vm143_vm1, %v6971_v2, %v6970_v53  ;;  %v6977_v37 = vld [vmem:[#allocation40_spill] sm:$0xff]  ;;  %v6979_v24 = vld [vmem:[#allocation37_spill] sm:$0xff] }
 0x6a5   :  { %v668_v40 = vadd.f32 %v661_v35, %v637_v46  ;;  %v671_v54 = vadd.f32 %v6968_v6, %v640_v8  ;;  %v639_v51 = vadd.f32 %v635_v28, %v616_v47  ;;  %v725_v35 = vsel %vm175_vm2, %v6975_v56, %v6974_v18  ;;  %v6981_v28 = vld [vmem:[#allocation42_spill] sm:$0xff] }
 0x6a6   :  { %v669_v52 = vadd.f32 %v662_v17, %v638_v0  ;;  %v816_v46 = vsel %vm271_vm5, %v6977_v37, %v6976_v22  ;;  %v755_v47 = vsel %vm207_vm3, %v4516_v25, %v6979_v24  ;;  %v847_v8 = vsel %vm303_vm6, %v6981_v28, %v6980_v39  ;;  %v6983_v17 = vld [vmem:[#allocation39_spill] sm:$0xff] }
 0x6a7   :  { %v699_v50 = vadd.f32 %v692_v16, %v668_v40  ;;  %v702_v36 = vadd.f32 %v6970_v53, %v671_v54  ;;  %v670_v12 = vadd.f32 %v663_v55, %v639_v51  ;;  %v756_v40 = vsel %vm207_vm3, %v6979_v24, %v6978_v57  ;;  %v6984_v55 = vld [vmem:[#allocation76_spill] sm:$0xff]  ;;  %v6994_v24 = vld [vmem:[#allocation78_spill] sm:$0xff] }
 0x6a8   :  { %v700_v27 = vadd.f32 %v693_v38, %v669_v52  ;;  %v786_v6 = vsel %vm239_vm4, %v6972_v59, %v6983_v17  ;;  %v6985_v54 = vld [vmem:[#allocation44_spill] sm:$0xff] }
 0x6a9   :  { %v730_v10 = vadd.f32 %v723_v33, %v699_v50  ;;  %v733_v26 = vadd.f32 %v6974_v18, %v702_v36  ;;  %v701_v13 = vadd.f32 %v694_v3, %v670_v12  ;;  %v6982_v50 = vld [vmem:[#allocation70_spill] sm:$0xff]  ;;  %v878_v61 = vsel %vm335_vm7, %v6985_v54, %v6984_v55  ;;  %v6987_v36 = vld [vmem:[#allocation41_spill] sm:$0xff] }
 0x6aa   :  { %v4769_v41 = vpop.permute.xlu1 %1052  ;;  %v4843_v30 = vpop.permute.xlu2 %1112  ;;  %v731_v32 = vadd.f32 %v724_v49, %v700_v27  ;;  %v787_v25 = vsel %vm239_vm4, %v6983_v17, %v6982_v50  ;;  %v817_v2 = vsel %vm271_vm5, %v6976_v22, %v6987_v36  ;;  %v6992_v27 = vld [vmem:[#allocation45_spill] sm:$0xff] }
 0x6ab   :  { %v761_v45 = vadd.f32 %v754_v7, %v730_v10  ;;  %v764_v16 = vadd.f32 %v6978_v57, %v733_v26  ;;  %v732_v62 = vadd.f32 %v725_v35, %v701_v13  ;;  %v6986_v10 = vld [vmem:[#allocation73_spill] sm:$0xff]  ;;  %v6990_v26 = vld [vmem:[#allocation43_spill] sm:$0xff] }
 0x6ac   :  { %v762_v7 = vadd.f32 %v755_v47, %v731_v32  ;;  %v818_v3 = vsel %vm271_vm5, %v6987_v36, %v6986_v10  ;;  %v848_v56 = vsel %vm303_vm6, %v6980_v39, %v6990_v26  ;;  %v6991_v13 = vld [vmem:[#allocation77_spill] sm:$0xff]  ;;  %v6996_v32 = vld [vmem:[#allocation80_spill] sm:$0xff] }
 0x6ad   :  { %v792_v48 = vadd.f32 %v785_v21, %v761_v45  ;;  %v795_v43 = vadd.f32 %v6982_v50, %v764_v16  ;;  %v763_v0 = vadd.f32 %v756_v40, %v732_v62  ;;  %v6988_v21 = vld [vmem:[#allocation67_spill] sm:$0xff]  ;;  %v880_v57 = vsel %vm335_vm7, %v6992_v27, %v6991_v13  ;;  %v6993_v16 = vld [vmem:[#allocation56_spill] sm:$0xff] }
 0x6ae   :  { %v793_v38 = vadd.f32 %v786_v6, %v762_v7  ;;  %v904_v52 = vmul.f32 %v4433_v34, %v6988_v21  ;;  %v6989_v45 = vld [vmem:[#allocation75_spill] sm:$0xff]  ;;  %v932_v47 = vsel %vm111_vm0, %v6994_v24, %v6993_v16  ;;  %v906_v17 = vmul.f32 %v4445_v5, %v6988_v21  ;;  %v6998_v7 = vld [vmem:[#allocation69_spill] sm:$0xff] }
 0x6af   :  { %v823_v33 = vadd.f32 %v816_v46, %v792_v48  ;;  %v826_v53 = vadd.f32 %v6986_v10, %v795_v43  ;;  %v794_v59 = vadd.f32 %v787_v25, %v763_v0  ;;  %v849_v49 = vsel %vm303_vm6, %v6990_v26, %v6989_v45 }
 0x6b0   :  { %v824_v22 = vadd.f32 %v817_v2, %v793_v38  ;;  %v907_v46 = vmul.f32 %v4435_v1, %v6988_v21  ;;  %v879_v48 = vsel %vm335_vm7, %v6984_v55, %v6992_v27  ;;  %v905_v1 = vmul.f32 %v4437_v42, %v6988_v21 }
 0x6b1   :  { %v854_v51 = vadd.f32 %v847_v8, %v823_v33  ;;  %v857_v18 = vadd.f32 %v6989_v45, %v826_v53  ;;  %v825_v37 = vadd.f32 %v818_v3, %v794_v59  ;;  %v6995_v8 = vld [vmem:[#allocation71_spill] sm:$0xff]  ;;  %v994_v25 = vsel %vm175_vm2, %v4606_v58, %v4598_v31  ;;  %v6999_v58 = vld [vmem:[#allocation81_spill] sm:$0xff] }
 0x6b2   :  { %v4811_v60 = vpop.permute.xlu1 %1079  ;;  %v4893_v35 = vpop.permute.xlu2 %1116  ;;  %v855_v40 = vadd.f32 %v848_v56, %v824_v22  ;;  %v963_v62 = vsel %vm143_vm1, %v6996_v32, %v6995_v8  ;;  %v1025_v5 = vsel %vm207_vm3, %v4651_v29, %v4604_v44  ;;  %v7000_v3 = vld [vmem:[#allocation83_spill] sm:$0xff]  ;;  %v995_v56 = vsel %vm175_vm2, %v4598_v31, %v4615_v4 }
 0x6b3   :  { %v885_v14 = vadd.f32 %v878_v61, %v854_v51  ;;  %v888_v34 = vadd.f32 %v6991_v13, %v857_v18  ;;  %v856_v39 = vadd.f32 %v849_v49, %v825_v37  ;;  %v6997_v61 = vld [vmem:[#allocation79_spill] sm:$0xff]  ;;  %v965_v38 = vsel %vm143_vm1, %v7000_v3, %v6999_v58  ;;  %v7001_v18 = vld [vmem:[#allocation82_spill] sm:$0xff]  ;;  %v7002_v13 = vld [vmem:[#allocation84_spill] sm:$0xff] }
 0x6b4   :  { %v886_v33 = vadd.f32 %v879_v48, %v855_v40  ;;  %v933_v42 = vsel %vm111_vm0, %v6993_v16, %v6997_v61  ;;  %v934_v0 = vsel %vm111_vm0, %v6997_v61, %v6998_v7  ;;  %v964_v59 = vsel %vm143_vm1, %v6995_v8, %v7000_v3 }
 0x6b5   :  { %v908_v28 = vadd.f32 %v904_v52, %v885_v14  ;;  %v887_v50 = vadd.f32 %v880_v57, %v856_v39  ;;  %v911_v6 = vadd.f32 %v907_v46, %v888_v34  ;;  %v1056_v14 = vsel %vm239_vm4, %v4725_v20, %v4649_v11 }
 0x6b6   :  { %v909_v10 = vadd.f32 %v905_v1, %v886_v33  ;;  %v996_v49 = vsel %vm175_vm2, %v4615_v4, %v7001_v18  ;;  %v1087_v22 = vsel %vm271_vm5, %v4811_v60, %v4747_v19  ;;  %v1026_v27 = vsel %vm207_vm3, %v4604_v44, %v4692_v23 }
 0x6b7   :  { %v939_v43 = vadd.f32 %v932_v47, %v908_v28  ;;  %v942_v51 = vadd.f32 %v6998_v7, %v911_v6  ;;  %v910_v53 = vadd.f32 %v906_v17, %v887_v50  ;;  %v1027_v31 = vsel %vm207_vm3, %v4692_v23, %v7002_v13 }
 0x6b8   :  { %v940_v52 = vadd.f32 %v933_v42, %v909_v10  ;;  %v1057_v47 = vsel %vm239_vm4, %v4649_v11, %v4769_v41  ;;  %v1058_v44 = vsel %vm239_vm4, %v4769_v41, %v4701_v15  ;;  %v1160_v11 = vld [vmem:[#allocation7] ss:$4 sm:$0xf] }
 0x6b9   :  { %v970_v55 = vadd.f32 %v963_v62, %v939_v43  ;;  %v973_v2 = vadd.f32 %v6999_v58, %v942_v51  ;;  %v941_v29 = vadd.f32 %v934_v0, %v910_v53  ;;  %v1162_v33 = vperm.slane %v1160_v11, 0 }
 0x6ba   :  { %v4845_v9 = vpop.permute.xlu1 %1083  ;;  %v1144_v21 = vpop.permute.xlu2 %1143  ;;  %v971_v20 = vadd.f32 %v964_v59, %v940_v52 }
 0x6bb   :  { %v1001_v36 = vadd.f32 %v994_v25, %v970_v55  ;;  %v1004_v26 = vadd.f32 %v7001_v18, %v973_v2  ;;  %v972_v37 = vadd.f32 %v965_v38, %v941_v29  ;;  %v1088_v1 = vsel %vm271_vm5, %v4747_v19, %v4845_v9 }
 0x6bc   :  { %v1002_v48 = vadd.f32 %v995_v56, %v971_v20  ;;  %v1089_v8 = vsel %vm271_vm5, %v4845_v9, %v4797_v63  ;;  %v1163_v25 = vperm.slane %v1160_v11, 1  ;;  %v1164_v55 = vperm.slane %v1160_v11, 2 }
 0x6bd   :  { %v1032_v45 = vadd.f32 %v1025_v5, %v1001_v36  ;;  %v1035_v34 = vadd.f32 %v7002_v13, %v1004_v26  ;;  %v1003_v57 = vadd.f32 %v996_v49, %v972_v37 }
 0x6be   :  { %v1033_v23 = vadd.f32 %v1026_v27, %v1002_v48 }
 0x6bf   :  { %v1063_v46 = vadd.f32 %v1056_v14, %v1032_v45  ;;  %v1066_v24 = vadd.f32 %v4701_v15, %v1035_v34  ;;  %v1034_v39 = vadd.f32 %v1027_v31, %v1003_v57  ;;  %v7003_v57 = vmov 4  }
 0x6c0   :  { %v1064_v32 = vadd.f32 %v1057_v47, %v1033_v23  ;;  %v1202_v23 = vld [vmem:[%s6661_s3] sm:$0xf] }
 0x6c1   :  { %v1094_v16 = vadd.f32 %v1087_v22, %v1063_v46  ;;  %v1065_v62 = vadd.f32 %v1058_v44, %v1034_v39  ;;  %v5003_v46 = vld [vmem:[%s6663_s5] sm:$0xf] }
 0x6c2   :  { %v1111_v12 = vpop.permute.xlu1 %1110  ;;  %v1148_v41 = vpop.permute.xlu2 %1147  ;;  %v1095_v19 = vadd.f32 %v1088_v1, %v1064_v32  ;;  %v7004_v32 = vmov 1  }
 0x6c3   :  { %v1118_v4 = vsel %vm303_vm6, %v1111_v12, %v4843_v30  ;;  %v1097_v12 = vadd.f32 %v4797_v63, %v1066_v24  ;;  %v1096_v6 = vadd.f32 %v1089_v8, %v1065_v62  ;;  %v1165_v63 = vperm.slane %v1160_v11, 3  ;;  %v1215_v8 = vld [vmem:[%s6662_s4] sm:$0xf] }
 0x6c4   :  { %v1125_v28 = vadd.f32 %v1118_v4, %v1094_v16  ;;  %v7005_v62 = vmov 2  }
 0x6c5   :  { %v1128_v17 = vadd.f32 %v4893_v35, %v1097_v12 }
 0x6c7   :  { %v4978_v9 = vadd.f32 %v1148_v41, %v1128_v17 }
 0x6c9   :  { %v1173_v36 = vmul.f32 %v1165_v63, %v4978_v9 }
 0x6ca   :  { %v1115_v54 = vpop.permute.xlu1 %1114 }
 0x6cb   :  { %v1119_v50 = vsel %vm303_vm6, %v4843_v30, %v1115_v54  ;;  %v1120_v43 = vsel %vm303_vm6, %v1115_v54, %v4893_v35  ;;  %v1181_v26 = vsel %vm1180_vm9, %v1173_v36, 0.0 }
 0x6cc   :  { %v1126_v61 = vadd.f32 %v1119_v50, %v1095_v19  ;;  %v1127_v42 = vadd.f32 %v1120_v43, %v1096_v6 }
 0x6d2   :  { %v1142_v60 = vpop.permute.xlu1 %1141 }
 0x6d3   :  { %v1149_v40 = vsel %vm335_vm7, %v1142_v60, %v1144_v21 }
 0x6d4   :  { %v4971_v15 = vadd.f32 %v1149_v40, %v1125_v28 }
 0x6d6   :  { %v1170_v7 = vmul.f32 %v1162_v33, %v4971_v15  ;;  %v7006_v33 = vmov 10  }
 0x6d8   :  { %v1186_v35 = vmul.f32 %v1170_v7, %v4971_v15  ;;  %v1175_v58 = vsel %vm1174_vm8, %v1170_v7, 0.0 }
 0x6da   :  { %v1146_v0 = vpop.permute.xlu1 %1145  ;;  %v1190_v52 = vsel %vm1174_vm8, %v1186_v35, 0.0 }
 0x6db   :  { %v1150_v51 = vsel %vm335_vm7, %v1144_v21, %v1146_v0  ;;  %v1151_v30 = vsel %vm335_vm7, %v1146_v0, %v1148_v41  ;;  %v1189_v21 = vmul.f32 %v1173_v36, %v4978_v9 }
 0x6dc   :  { %v4983_v5 = vadd.f32 %v1150_v51, %v1126_v61  ;;  %v4985_v54 = vadd.f32 %v1151_v30, %v1127_v42 }
 0x6dd   :  { %v1195_v37 = vsel %vm1180_vm9, %v1189_v21, 0.0 }
 0x6de   :  { %v1171_v10 = vmul.f32 %v1163_v25, %v4983_v5  ;;  %v1172_v53 = vmul.f32 %v1164_v55, %v4985_v54 }
 0x6e0   :  { %v1176_v2 = vsel %vm1174_vm8, %v1171_v10, 0.0  ;;  %v1187_v3 = vmul.f32 %v1171_v10, %v4983_v5  ;;  %v1188_v38 = vmul.f32 %v1172_v53, %v4985_v54  ;;  %v1178_v14 = vsel %vm1174_vm8, %v1172_v53, 0.0 }
 0x6e1   :  { %v1177_v59 = vadd.f32 %v1176_v2, %v1175_v58 }
 0x6e2   :  { %v1191_v29 = vsel %vm1174_vm8, %v1187_v3, 0.0  ;;  %v1193_v56 = vsel %vm1174_vm8, %v1188_v38, 0.0 }
 0x6e3   :  { %v1179_v45 = vadd.f32 %v1178_v14, %v1177_v59  ;;  %v1192_v18 = vadd.f32 %v1191_v29, %v1190_v52 }
 0x6e5   :  { %v1182_v49 = vadd.f32 %v1181_v26, %v1179_v45  ;;  %v1194_v22 = vadd.f32 %v1193_v56, %v1192_v18 }
 0x6e7   :  { %1183 = vadd.xlane.f32.xlu0 %v1182_v49  ;;  %v1196_v20 = vadd.f32 %v1195_v37, %v1194_v22  ;;  %v7007_v22 = vmov 5  }
 0x6e9   :  { %1197 = vadd.xlane.f32.xlu1 %v1196_v20  ;;  %v7008_v20 = vmov 6  }
 0x6fb   :  { %1341 = vperm.xlu0 %3746, %v5003_v46  }
 0x703   :  { %3747 = vset.pattern.permute.xlu0 %v7003_v57 }
 0x75a   :  { %v1184_v13 = vpop.xlane.xlu0 %1183 }
 0x75b   :  { %v1185_v34 = vmul.f32 0.0025510204, %v1184_v13 }
 0x75c   :  { %v1198_v27 = vpop.xlane.xlu1 %1197 }
 0x75d   :  { %v1200_v31 = vmul.f32 %v1185_v34, %v1185_v34  ;;  %v1199_v4 = vmul.f32 0.0025510204, %v1198_v27  ;;  %v7010_v27 = vmov 8  }
 0x75f   :  { %v1201_v48 = vsub.f32 %v1199_v4, %v1200_v31  ;;  %v7011_v31 = vmov 9   ;;  %v7012_v4 = vmov 12  }
 0x761   :  { %v1203_v16 = vadd.f32 1e-05, %v1201_v48 }
 0x763   :  { %3818 = vrsqrt.f32 %v1203_v16  ;;  %vm1210_vm11 = vweird.f32 %v1203_v16 }
 0x769   :  { %v3819_v60 = vpop.eup %3818 }
 0x76a   :  { %v1205_v24 = vmul.f32 %v3819_v60, %v1203_v16  ;;  %vm1211_vm10 = vweird.f32 %v3819_v60 }
 0x76b   :  { %vm1212_vm12 = vmor %vm1210_vm11, %vm1211_vm10 }
 0x76c   :  { %v1206_v47 = vmul.f32 %v3819_v60, %v1205_v24 }
 0x76d   :  { %v1342_v45 = vpop.permute.xlu0 %1341 }
 0x76e   :  { %v1207_v44 = vmul.f32 0.5, %v1206_v47 }
 0x770   :  { %v1208_v40 = vsub.f32 1.5, %v1207_v44 }
 0x772   :  { %v1209_v39 = vmul.f32 %v3819_v60, %v1208_v40 }
 0x774   :  { %v1213_v28 = vsel %vm1212_vm12, %v3819_v60, %v1209_v39  ;;  %vm2460_vm12 = vcmask 490500  }
 0x775   :  { %v1214_v12 = vmul.f32 %v1213_v28, %v1202_v23  ;;  %vm2461_vm13 = vmor %vm2460_vm12, %vm1174_vm8 }
 0x777   :  { %1220 = vperm.xlu2 %3743, %v1214_v12   ;;  %v1216_v1 = vmul.f32 %v1214_v12, %v1185_v34  ;;  %v7009_v34 = vmov 7  }
 0x779   :  { %v1217_v11 = vsub.f32 %v1215_v8, %v1216_v1 }
 0x77f   :  { %1229 = vperm.xlu2 %3743, %v1217_v11  }
 0x787   :  { %1258 = vperm.xlu2 %3743, %v5003_v46  }
 0x78f   :  { %3744 = vset.pattern.permute.xlu2 %v7004_v32 }
 0x790   :  { %1279 = vperm.xlu2 %3744, %v5003_v46  }
 0x798   :  { %3745 = vset.pattern.permute.xlu2 %v7005_v62 }
 0x799   :  { %1310 = vperm.xlu2 %3745, %v5003_v46  }
 0x7a1   :  { %3753 = vset.pattern.permute.xlu2 %v7006_v33 }
 0x7d1   :  { %v1221_v41 = vpop.permute.xlu2 %1220 }
 0x7d2   :  { %v1223_v50 = vmul.f32 %v1221_v41, %v4971_v15  ;;  %v1224_v43 = vmul.f32 %v1221_v41, %v4983_v5  ;;  %v1225_v17 = vmul.f32 %v1221_v41, %v4985_v54  ;;  %v1226_v19 = vmul.f32 %v1221_v41, %v4978_v9 }
 0x7d9   :  { %v1230_v6 = vpop.permute.xlu2 %1229 }
 0x7da   :  { %v1232_v25 = vadd.f32 %v1230_v6, %v1223_v50  ;;  %v1233_v55 = vadd.f32 %v1230_v6, %v1224_v43  ;;  %v1234_v63 = vadd.f32 %v1230_v6, %v1225_v17  ;;  %v1235_v61 = vadd.f32 %v1230_v6, %v1226_v19 }
 0x7dc   :  { %v1237_v42 = vmax.f32 %v1233_v55, 0.0  ;;  %v1239_v7 = vmax.f32 %v1235_v61, 0.0  ;;  %v1236_v0 = vmax.f32 %v1232_v25, 0.0  ;;  %v1238_v51 = vmax.f32 %v1234_v63, 0.0 }
 0x7de   :  { %v1244_v30 = vrot.slane %v1237_v42, 4  ;;  %v1245_v35 = vrot.slane %v1239_v7, 4 }
 0x7e0   :  { %v1246_v15 = vsel %vm1174_vm8, %v1236_v0, %v1244_v30  ;;  %v1247_v5 = vsel %vm1174_vm8, %v1238_v51, %v1245_v35 }
 0x7e1   :  { %1250 = vst [vmem:[#allocation2] sm:$0xff] %v1246_v15  ;;  %v5026_v9 = vpop.permute.xlu2 %1258 }
 0x7e2   :  { %1253 = vst.msk [vmem:[#allocation2 + $0x8] sm:$0xff] %vm1252_vm14, %v1247_v5 }
 0x7e9   :  { %v1254_v54 = vld [vmem:[#allocation2] ss:$4 sm:$0xf] }
 0x7ea   :  { %v1280_v10 = vpop.permute.xlu2 %1279  ;;  %v5028_v53 = vperm.slane %v1254_v54, 2  ;;  %v5030_v36 = vperm.slane %v1254_v54, 3  ;;  %v5032_v58 = vperm.slane %v1254_v54, 0  ;;  %v5040_v59 = vperm.slane %v1254_v54, 1 }
 0x7ec   :  { %v1285_v2 = vmul.f32 %v1280_v10, %v5030_v36  ;;  %v1284_v3 = vmul.f32 %v1280_v10, %v5028_v53  ;;  %v1282_v38 = vmul.f32 %v1280_v10, %v5032_v58  ;;  %v1283_v29 = vmul.f32 %v1280_v10, %v5040_v59 }
 0x7ed   :  { %v1345_v18 = vmul.f32 %v1342_v45, %v5040_v59  ;;  %v1347_v56 = vmul.f32 %v1342_v45, %v5030_v36  ;;  %v1344_v37 = vmul.f32 %v1342_v45, %v5032_v58  ;;  %v1346_v13 = vmul.f32 %v1342_v45, %v5028_v53 }
 0x7ee   :  { %1296 = vrot.lane.b32.xlu1 %v1285_v2, %s3915_s27  ;;  %1294 = vrot.lane.b32.xlu0 %v1284_v3, %s3915_s27  ;;  %v7013_v10 = vmov 11  }
 0x7ef   :  { %1290 = vrot.lane.b32.xlu2 %v1282_v38, %s3915_s27 }
 0x7f3   :  { %v1311_v14 = vpop.permute.xlu2 %1310 }
 0x7f4   :  { %v1316_v21 = vmul.f32 %v1311_v14, %v5030_v36  ;;  %v1314_v52 = vmul.f32 %v1311_v14, %v5040_v59  ;;  %v1313_v26 = vmul.f32 %v1311_v14, %v5032_v58  ;;  %v1315_v49 = vmul.f32 %v1311_v14, %v5028_v53 }
 0x7f6   :  { %1327 = vrot.lane.b32.xlu1 %v1316_v21, %s3914_s2  ;;  %1323 = vrot.lane.b32.xlu0 %v1314_v52, %s3914_s2 }
 0x7f7   :  { %1292 = vrot.lane.b32.xlu2 %v1283_v29, %s3915_s27 }
 0x7fe   :  { %1354 = vrot.lane.b32.xlu1 %v1345_v18, %s3916_s28  ;;  %1372 = vperm.xlu0 %3747, %v5003_v46  }
 0x7ff   :  { %1321 = vrot.lane.b32.xlu2 %v1313_v26, %s3914_s2 }
 0x806   :  { %1358 = vrot.lane.b32.xlu1 %v1347_v56, %s3916_s28  ;;  %3748 = vset.pattern.permute.xlu0 %v7007_v22  ;;  %v1527_v56 = vld [vmem:[#allocation2 + $0x1] ss:$4 sm:$0xf] }
 0x807   :  { %1325 = vrot.lane.b32.xlu2 %v1315_v49, %s3914_s2  ;;  %1403 = vperm.xlu0 %3748, %v5003_v46   ;;  %v5150_v49 = vperm.slane %v1527_v56, 3 }
 0x809   :  { %7014 = vst [vmem:[#allocation46_spill] sm:$0xff] %v5150_v49 }
 0x80f   :  { %1352 = vrot.lane.b32.xlu2 %v1344_v37, %s3916_s28  ;;  %3749 = vset.pattern.permute.xlu0 %v7008_v20  ;;  %v5152_v37 = vperm.slane %v1527_v56, 1 }
 0x810   :  { %1434 = vperm.xlu0 %3749, %v5003_v46  }
 0x817   :  { %1356 = vrot.lane.b32.xlu2 %v1346_v13, %s3916_s28 }
 0x818   :  { %3750 = vset.pattern.permute.xlu0 %v7009_v34 }
 0x819   :  { %1465 = vperm.xlu0 %3750, %v5003_v46  }
 0x821   :  { %3751 = vset.pattern.permute.xlu0 %v7010_v27 }
 0x822   :  { %1496 = vperm.xlu0 %3751, %v5003_v46  }
 0x82a   :  { %3752 = vset.pattern.permute.xlu0 %v7011_v31  ;;  %v7042_v31 = vmov 28  }
 0x82b   :  { %1529 = vperm.xlu0 %3752, %v5003_v46  }
 0x833   :  { %3755 = vset.pattern.permute.xlu0 %v7012_v4 }
 0x849   :  { %v5094_v50 = vpop.permute.xlu2 %1290 }
 0x851   :  { %v5102_v19 = vpop.permute.xlu2 %1292 }
 0x859   :  { %v5108_v63 = vpop.permute.xlu2 %1321 }
 0x860   :  { %v5072_v48 = vpop.permute.xlu0 %1294 }
 0x861   :  { %v5114_v0 = vpop.permute.xlu2 %1325 }
 0x868   :  { %v5074_v16 = vpop.permute.xlu0 %1323 }
 0x869   :  { %v5122_v5 = vpop.permute.xlu2 %1352 }
 0x870   :  { %v1373_v60 = vpop.permute.xlu0 %1372 }
 0x871   :  { %v1376_v24 = vmul.f32 %v1373_v60, %v5040_v59  ;;  %v1375_v47 = vmul.f32 %v1373_v60, %v5032_v58  ;;  %v1378_v44 = vmul.f32 %v1373_v60, %v5030_v36  ;;  %v1377_v40 = vmul.f32 %v1373_v60, %v5028_v53  ;;  %v5127_v54 = vpop.permute.xlu2 %1356 }
 0x872   :  { %v5154_v60 = vperm.slane %v1527_v56, 0 }
 0x873   :  { %1385 = vrot.lane.b32.xlu1 %v1376_v24, %s3917_s29  ;;  %1383 = vrot.lane.b32.xlu2 %v1375_v47, %s3917_s29 }
 0x879   :  { %v1404_v23 = vpop.permute.xlu0 %1403 }
 0x87a   :  { %v1407_v39 = vmul.f32 %v1404_v23, %v5040_v59  ;;  %v1406_v28 = vmul.f32 %v1404_v23, %v5032_v58  ;;  %v1409_v12 = vmul.f32 %v1404_v23, %v5030_v36  ;;  %v1408_v1 = vmul.f32 %v1404_v23, %v5028_v53 }
 0x87b   :  { %1389 = vrot.lane.b32.xlu1 %v1378_v44, %s3917_s29  ;;  %1387 = vrot.lane.b32.xlu2 %v1377_v40, %s3917_s29  ;;  %v5162_v40 = vperm.slane %v1527_v56, 2 }
 0x87d   :  { %7015 = vst [vmem:[#allocation49_spill] sm:$0xff] %v5162_v40 }
 0x882   :  { %v1435_v8 = vpop.permute.xlu0 %1434 }
 0x883   :  { %1416 = vrot.lane.b32.xlu1 %v1407_v39, %s3918_s30  ;;  %1414 = vrot.lane.b32.xlu2 %v1406_v28, %s3918_s30  ;;  %v1438_v11 = vmul.f32 %v1435_v8, %v5040_v59  ;;  %v1437_v41 = vmul.f32 %v1435_v8, %v5032_v58  ;;  %v1440_v43 = vmul.f32 %v1435_v8, %v5030_v36  ;;  %v7016_v39 = vmov 19  }
 0x884   :  { %v1439_v17 = vmul.f32 %v1435_v8, %v5028_v53 }
 0x88b   :  { %1420 = vrot.lane.b32.xlu1 %v1409_v12, %s3918_s30  ;;  %1418 = vrot.lane.b32.xlu2 %v1408_v1, %s3918_s30  ;;  %v1466_v6 = vpop.permute.xlu0 %1465 }
 0x88c   :  { %v1469_v25 = vmul.f32 %v1466_v6, %v5040_v59  ;;  %v1468_v55 = vmul.f32 %v1466_v6, %v5032_v58  ;;  %v1471_v61 = vmul.f32 %v1466_v6, %v5030_v36  ;;  %v1470_v42 = vmul.f32 %v1466_v6, %v5028_v53 }
 0x88d   :  { %v7019_v6 = vmov 15  }
 0x893   :  { %1447 = vrot.lane.b32.xlu1 %v1438_v11, %s3920_s12  ;;  %1445 = vrot.lane.b32.xlu2 %v1437_v41, %s3920_s12 }
 0x894   :  { %v1497_v7 = vpop.permute.xlu0 %1496 }
 0x895   :  { %v1500_v51 = vmul.f32 %v1497_v7, %v5040_v59  ;;  %v1499_v30 = vmul.f32 %v1497_v7, %v5032_v58  ;;  %v1502_v35 = vmul.f32 %v1497_v7, %v5030_v36  ;;  %v1501_v15 = vmul.f32 %v1497_v7, %v5028_v53 }
 0x89b   :  { %1451 = vrot.lane.b32.xlu1 %v1440_v43, %s3920_s12  ;;  %1449 = vrot.lane.b32.xlu2 %v1439_v17, %s3920_s12  ;;  %v7017_v43 = vmov 13   ;;  %v7018_v17 = vmov 14  }
 0x89d   :  { %v5192_v7 = vpop.permute.xlu0 %1529 }
 0x8a3   :  { %1478 = vrot.lane.b32.xlu1 %v1469_v25, %s3922_s13  ;;  %1476 = vrot.lane.b32.xlu2 %v1468_v55, %s3922_s13  ;;  %v7020_v25 = vmov 16   ;;  %v7021_v55 = vmov 17  }
 0x8ab   :  { %1482 = vrot.lane.b32.xlu1 %v1471_v61, %s3922_s13  ;;  %1480 = vrot.lane.b32.xlu2 %v1470_v42, %s3922_s13  ;;  %v7022_v61 = vmov 18   ;;  %v7023_v42 = vmov 21  }
 0x8b3   :  { %1509 = vrot.lane.b32.xlu1 %v1500_v51, %s3923_s14  ;;  %1507 = vrot.lane.b32.xlu2 %v1499_v30, %s3923_s14 }
 0x8bb   :  { %1513 = vrot.lane.b32.xlu1 %v1502_v35, %s3923_s14  ;;  %1511 = vrot.lane.b32.xlu2 %v1501_v15, %s3923_s14 }
 0x8c3   :  { %1550 = vperm.xlu2 %3753, %v5003_v46  }
 0x8cb   :  { %3754 = vset.pattern.permute.xlu2 %v7013_v10 }
 0x8cd   :  { %v5130_v2 = vpop.permute.xlu2 %1383 }
 0x8d5   :  { %v5132_v3 = vpop.permute.xlu2 %1387 }
 0x8dd   :  { %v5134_v38 = vpop.permute.xlu2 %1414 }
 0x8e5   :  { %v5136_v14 = vpop.permute.xlu2 %1418 }
 0x8ed   :  { %v5138_v21 = vpop.permute.xlu2 %1445 }
 0x8f5   :  { %v5140_v52 = vpop.permute.xlu2 %1449 }
 0x8fd   :  { %v5142_v29 = vpop.permute.xlu2 %1476 }
 0x905   :  { %v5144_v45 = vpop.permute.xlu2 %1480 }
 0x90d   :  { %v5146_v18 = vpop.permute.xlu2 %1507 }
 0x915   :  { %v5148_v26 = vpop.permute.xlu2 %1511 }
 0x91d   :  { %v1551_v13 = vpop.permute.xlu2 %1550 }
 0x91e   :  { %v1556_v24 = vmul.f32 %v1551_v13, %v5150_v49  ;;  %v1554_v47 = vmul.f32 %v1551_v13, %v5152_v37  ;;  %v1553_v44 = vmul.f32 %v1551_v13, %v5154_v60  ;;  %v1555_v23 = vmul.f32 %v1551_v13, %v5162_v40 }
 0x920   :  { %1567 = vrot.lane.b32.xlu0 %v1556_v24, %s3915_s27  ;;  %1563 = vrot.lane.b32.xlu2 %v1554_v47, %s3915_s27 }
 0x921   :  { %1561 = vrot.lane.b32.xlu1 %v1553_v44, %s3915_s27 }
 0x928   :  { %1581 = vperm.xlu2 %3754, %v5003_v46  }
 0x929   :  { %1565 = vrot.lane.b32.xlu1 %v1555_v23, %s3915_s27 }
 0x930   :  { %3762 = vset.pattern.permute.xlu2 %v7016_v39 }
 0x97a   :  { %v5168_v28 = vpop.permute.xlu2 %1563 }
 0x982   :  { %v1582_v12 = vpop.permute.xlu2 %1581 }
 0x983   :  { %v1586_v1 = vmul.f32 %v1582_v12, %v5162_v40  ;;  %v1585_v8 = vmul.f32 %v1582_v12, %v5152_v37  ;;  %v1584_v11 = vmul.f32 %v1582_v12, %v5154_v60  ;;  %v1587_v41 = vmul.f32 %v1582_v12, %v5150_v49 }
 0x985   :  { %1596 = vrot.lane.b32.xlu2 %v1586_v1, %s3914_s2  ;;  %1594 = vrot.lane.b32.xlu0 %v1585_v8, %s3914_s2 }
 0x986   :  { %1592 = vrot.lane.b32.xlu1 %v1584_v11, %s3914_s2 }
 0x98d   :  { %1612 = vperm.xlu0 %3755, %v5003_v46  }
 0x98e   :  { %1598 = vrot.lane.b32.xlu1 %v1587_v41, %s3914_s2 }
 0x992   :  { %v5194_v51 = vpop.permute.xlu0 %1567 }
 0x993   :  { %7024 = vst [vmem:[#allocation15_spill] sm:$0xff] %v5194_v51 }
 0x995   :  { %3756 = vset.pattern.permute.xlu0 %v7017_v43 }
 0x996   :  { %1643 = vperm.xlu0 %3756, %v5003_v46  }
 0x99e   :  { %3757 = vset.pattern.permute.xlu0 %v7018_v17 }
 0x99f   :  { %1674 = vperm.xlu0 %3757, %v5003_v46  }
 0x9a7   :  { %3758 = vset.pattern.permute.xlu0 %v7019_v6 }
 0x9a8   :  { %1705 = vperm.xlu0 %3758, %v5003_v46  }
 0x9b0   :  { %3759 = vset.pattern.permute.xlu0 %v7020_v25 }
 0x9b1   :  { %1736 = vperm.xlu0 %3759, %v5003_v46  }
 0x9b9   :  { %3760 = vset.pattern.permute.xlu0 %v7021_v55 }
 0x9ba   :  { %1767 = vperm.xlu0 %3760, %v5003_v46  }
 0x9c2   :  { %3761 = vset.pattern.permute.xlu0 %v7022_v61 }
 0x9c3   :  { %1800 = vperm.xlu0 %3761, %v5003_v46  }
 0x9cb   :  { %3764 = vset.pattern.permute.xlu0 %v7023_v42 }
 0x9f7   :  { %v5196_v30 = vpop.permute.xlu0 %1594 }
 0x9ff   :  { %v1613_v35 = vpop.permute.xlu0 %1612 }
 0xa00   :  { %v1616_v15 = vmul.f32 %v1613_v35, %v5152_v37  ;;  %v1615_v56 = vmul.f32 %v1613_v35, %v5154_v60  ;;  %v1618_v13 = vmul.f32 %v1613_v35, %v5150_v49  ;;  %v1617_v24 = vmul.f32 %v1613_v35, %v5162_v40 }
 0xa02   :  { %1625 = vrot.lane.b32.xlu1 %v1616_v15, %s3916_s28  ;;  %1623 = vrot.lane.b32.xlu2 %v1615_v56, %s3916_s28 }
 0xa08   :  { %v1644_v47 = vpop.permute.xlu0 %1643 }
 0xa09   :  { %v1647_v44 = vmul.f32 %v1644_v47, %v5152_v37  ;;  %v1646_v23 = vmul.f32 %v1644_v47, %v5154_v60  ;;  %v1649_v12 = vmul.f32 %v1644_v47, %v5150_v49  ;;  %v1648_v1 = vmul.f32 %v1644_v47, %v5162_v40 }
 0xa0a   :  { %1629 = vrot.lane.b32.xlu1 %v1618_v13, %s3916_s28  ;;  %1627 = vrot.lane.b32.xlu2 %v1617_v24, %s3916_s28 }
 0xa11   :  { %v1675_v8 = vpop.permute.xlu0 %1674 }
 0xa12   :  { %1656 = vrot.lane.b32.xlu1 %v1647_v44, %s3917_s29  ;;  %1654 = vrot.lane.b32.xlu2 %v1646_v23, %s3917_s29  ;;  %v1678_v11 = vmul.f32 %v1675_v8, %v5152_v37  ;;  %v1677_v41 = vmul.f32 %v1675_v8, %v5154_v60  ;;  %v1680_v35 = vmul.f32 %v1675_v8, %v5150_v49 }
 0xa13   :  { %v1679_v15 = vmul.f32 %v1675_v8, %v5162_v40 }
 0xa1a   :  { %1660 = vrot.lane.b32.xlu1 %v1649_v12, %s3917_s29  ;;  %1658 = vrot.lane.b32.xlu2 %v1648_v1, %s3917_s29  ;;  %v1706_v56 = vpop.permute.xlu0 %1705 }
 0xa1b   :  { %v1709_v13 = vmul.f32 %v1706_v56, %v5152_v37  ;;  %v1708_v24 = vmul.f32 %v1706_v56, %v5154_v60  ;;  %v1711_v47 = vmul.f32 %v1706_v56, %v5150_v49  ;;  %v1710_v44 = vmul.f32 %v1706_v56, %v5162_v40  ;;  %v5242_v56 = vpop.permute.xlu2 %1596 }
 0xa22   :  { %1687 = vrot.lane.b32.xlu1 %v1678_v11, %s3918_s30  ;;  %1685 = vrot.lane.b32.xlu2 %v1677_v41, %s3918_s30 }
 0xa23   :  { %v1737_v23 = vpop.permute.xlu0 %1736 }
 0xa24   :  { %v1740_v12 = vmul.f32 %v1737_v23, %v5152_v37  ;;  %v1739_v1 = vmul.f32 %v1737_v23, %v5154_v60  ;;  %v1742_v8 = vmul.f32 %v1737_v23, %v5150_v49  ;;  %v1741_v11 = vmul.f32 %v1737_v23, %v5162_v40 }
 0xa25   :  { %v7027_v23 = vmov 20  }
 0xa2a   :  { %1691 = vrot.lane.b32.xlu1 %v1680_v35, %s3918_s30  ;;  %1689 = vrot.lane.b32.xlu2 %v1679_v15, %s3918_s30 }
 0xa2c   :  { %v1768_v41 = vpop.permute.xlu0 %1767 }
 0xa2d   :  { %v1771_v35 = vmul.f32 %v1768_v41, %v5152_v37  ;;  %v1770_v15 = vmul.f32 %v1768_v41, %v5154_v60 }
 0xa32   :  { %1718 = vrot.lane.b32.xlu1 %v1709_v13, %s3920_s12  ;;  %1716 = vrot.lane.b32.xlu2 %v1708_v24, %s3920_s12  ;;  %v1773_v13 = vmul.f32 %v1768_v41, %v5150_v49  ;;  %v1772_v24 = vmul.f32 %v1768_v41, %v5162_v40 }
 0xa3a   :  { %1722 = vrot.lane.b32.xlu1 %v1711_v47, %s3920_s12  ;;  %1720 = vrot.lane.b32.xlu2 %v1710_v44, %s3920_s12 }
 0xa42   :  { %1749 = vrot.lane.b32.xlu1 %v1740_v12, %s3922_s13  ;;  %1747 = vrot.lane.b32.xlu2 %v1739_v1, %s3922_s13 }
 0xa4a   :  { %1753 = vrot.lane.b32.xlu1 %v1742_v8, %s3922_s13  ;;  %1751 = vrot.lane.b32.xlu2 %v1741_v11, %s3922_s13 }
 0xa52   :  { %1780 = vrot.lane.b32.xlu1 %v1771_v35, %s3923_s14  ;;  %1778 = vrot.lane.b32.xlu2 %v1770_v15, %s3923_s14 }
 0xa5a   :  { %1784 = vrot.lane.b32.xlu1 %v1773_v13, %s3923_s14  ;;  %1782 = vrot.lane.b32.xlu2 %v1772_v24, %s3923_s14 }
 0xa5c   :  { %v5248_v47 = vpop.permute.xlu2 %1623 }
 0xa5d   :  { %7025 = vst [vmem:[#allocation47_spill] sm:$0xff] %v5248_v47 }
 0xa62   :  { %1821 = vperm.xlu2 %3762, %v5003_v46  }
 0xa64   :  { %v5251_v44 = vpop.permute.xlu2 %1627 }
 0xa65   :  { %7026 = vst [vmem:[#allocation13_spill] sm:$0xff] %v5251_v44 }
 0xa6a   :  { %3763 = vset.pattern.permute.xlu2 %v7027_v23  ;;  %v1798_v23 = vld [vmem:[#allocation2 + $0x2] ss:$4 sm:$0xf] }
 0xa6b   :  { %v5274_v61 = vperm.slane %v1798_v23, 3  ;;  %v5276_v55 = vperm.slane %v1798_v23, 1  ;;  %v5278_v6 = vperm.slane %v1798_v23, 0  ;;  %v5286_v10 = vperm.slane %v1798_v23, 2 }
 0xa6c   :  { %v5254_v12 = vpop.permute.xlu2 %1654  ;;  %v7046_v23 = vmov 24  }
 0xa6d   :  { %7028 = vst [vmem:[#allocation51_spill] sm:$0xff] %v5254_v12 }
 0xa6e   :  { %7038 = vst [vmem:[#allocation52_spill] sm:$0xff] %v5274_v61 }
 0xa6f   :  { %7039 = vst [vmem:[#allocation18_spill] sm:$0xff] %v5276_v55 }
 0xa70   :  { %7040 = vst [vmem:[#allocation58_spill] sm:$0xff] %v5278_v6 }
 0xa71   :  { %7041 = vst [vmem:[#allocation23_spill] sm:$0xff] %v5286_v10 }
 0xa74   :  { %v5256_v1 = vpop.permute.xlu2 %1658 }
 0xa75   :  { %7029 = vst [vmem:[#allocation17_spill] sm:$0xff] %v5256_v1  ;;  %v7070_v1 = vmov 0  }
 0xa7c   :  { %v5258_v8 = vpop.permute.xlu2 %1685 }
 0xa7d   :  { %7030 = vst [vmem:[#allocation48_spill] sm:$0xff] %v5258_v8 }
 0xa84   :  { %v5260_v11 = vpop.permute.xlu2 %1689 }
 0xa85   :  { %7031 = vst [vmem:[#allocation14_spill] sm:$0xff] %v5260_v11 }
 0xa8c   :  { %v5262_v41 = vpop.permute.xlu2 %1716 }
 0xa8d   :  { %7032 = vst [vmem:[#allocation53_spill] sm:$0xff] %v5262_v41 }
 0xa94   :  { %v5264_v35 = vpop.permute.xlu2 %1720 }
 0xa95   :  { %7033 = vst [vmem:[#allocation19_spill] sm:$0xff] %v5264_v35 }
 0xa9c   :  { %v5266_v15 = vpop.permute.xlu2 %1747 }
 0xa9d   :  { %7034 = vst [vmem:[#allocation50_spill] sm:$0xff] %v5266_v15 }
 0xaa4   :  { %v5268_v13 = vpop.permute.xlu2 %1751 }
 0xaa5   :  { %7035 = vst [vmem:[#allocation16_spill] sm:$0xff] %v5268_v13  ;;  %v2069_v13 = vld [vmem:[#allocation2 + $0x3] ss:$4 sm:$0xf] }
 0xaa6   :  { %v5430_v15 = vperm.slane %v2069_v13, 1  ;;  %v5432_v35 = vperm.slane %v2069_v13, 0 }
 0xaac   :  { %v5270_v24 = vpop.permute.xlu2 %1778 }
 0xaad   :  { %7036 = vst [vmem:[#allocation55_spill] sm:$0xff] %v5270_v24 }
 0xab4   :  { %v5272_v42 = vpop.permute.xlu2 %1782 }
 0xab5   :  { %7037 = vst [vmem:[#allocation21_spill] sm:$0xff] %v5272_v42 }
 0xabc   :  { %v1822_v25 = vpop.permute.xlu2 %1821 }
 0xabd   :  { %v1827_v17 = vmul.f32 %v1822_v25, %v5274_v61  ;;  %v1825_v43 = vmul.f32 %v1822_v25, %v5276_v55  ;;  %v1824_v39 = vmul.f32 %v1822_v25, %v5278_v6  ;;  %v1826_v4 = vmul.f32 %v1822_v25, %v5286_v10 }
 0xabe   :  { %v7045_v25 = vmov 23  }
 0xabf   :  { %1838 = vrot.lane.b32.xlu0 %v1827_v17, %s3915_s27  ;;  %1834 = vrot.lane.b32.xlu2 %v1825_v43, %s3915_s27 }
 0xac0   :  { %1832 = vrot.lane.b32.xlu1 %v1824_v39, %s3915_s27 }
 0xac7   :  { %1852 = vperm.xlu2 %3763, %v5003_v46  }
 0xac8   :  { %1836 = vrot.lane.b32.xlu1 %v1826_v4, %s3915_s27  ;;  %v7044_v4 = vmov 22  }
 0xacf   :  { %3771 = vset.pattern.permute.xlu2 %v7042_v31 }
 0xb19   :  { %v5292_v27 = vpop.permute.xlu2 %1834 }
 0xb1a   :  { %7043 = vst [vmem:[#allocation54_spill] sm:$0xff] %v5292_v27 }
 0xb21   :  { %v1853_v34 = vpop.permute.xlu2 %1852 }
 0xb22   :  { %v1857_v20 = vmul.f32 %v1853_v34, %v5286_v10  ;;  %v1856_v17 = vmul.f32 %v1853_v34, %v5276_v55  ;;  %v1855_v43 = vmul.f32 %v1853_v34, %v5278_v6  ;;  %v1858_v39 = vmul.f32 %v1853_v34, %v5274_v61 }
 0xb23   :  { %v7048_v34 = vmov 26  }
 0xb24   :  { %1867 = vrot.lane.b32.xlu2 %v1857_v20, %s3914_s2  ;;  %1865 = vrot.lane.b32.xlu0 %v1856_v17, %s3914_s2  ;;  %v7047_v20 = vmov 25   ;;  %v7049_v17 = vmov 27  }
 0xb25   :  { %1863 = vrot.lane.b32.xlu1 %v1855_v43, %s3914_s2  ;;  %v7050_v43 = vmov 30  }
 0xb2c   :  { %1883 = vperm.xlu0 %3764, %v5003_v46  }
 0xb2d   :  { %1869 = vrot.lane.b32.xlu1 %v1858_v39, %s3914_s2  ;;  %v5316_v39 = vpop.permute.xlu0 %1800 }
 0xb2e   :  { %7051 = vst [vmem:[#allocation20_spill] sm:$0xff] %v5316_v39 }
 0xb34   :  { %3765 = vset.pattern.permute.xlu0 %v7044_v4 }
 0xb35   :  { %1914 = vperm.xlu0 %3765, %v5003_v46   ;;  %v5318_v31 = vpop.permute.xlu0 %1838 }
 0xb36   :  { %7052 = vst [vmem:[#allocation30_spill] sm:$0xff] %v5318_v31 }
 0xb3d   :  { %3766 = vset.pattern.permute.xlu0 %v7045_v25 }
 0xb3e   :  { %1945 = vperm.xlu0 %3766, %v5003_v46  }
 0xb46   :  { %3767 = vset.pattern.permute.xlu0 %v7046_v23 }
 0xb47   :  { %1976 = vperm.xlu0 %3767, %v5003_v46  }
 0xb4f   :  { %3768 = vset.pattern.permute.xlu0 %v7047_v20 }
 0xb50   :  { %2007 = vperm.xlu0 %3768, %v5003_v46  }
 0xb58   :  { %3769 = vset.pattern.permute.xlu0 %v7048_v34 }
 0xb59   :  { %2038 = vperm.xlu0 %3769, %v5003_v46  }
 0xb61   :  { %3770 = vset.pattern.permute.xlu0 %v7049_v17 }
 0xb62   :  { %2071 = vperm.xlu0 %3770, %v5003_v46  }
 0xb6a   :  { %3773 = vset.pattern.permute.xlu0 %v7050_v43 }
 0xb96   :  { %v5320_v23 = vpop.permute.xlu0 %1865 }
 0xb97   :  { %7053 = vst [vmem:[#allocation25_spill] sm:$0xff] %v5320_v23 }
 0xb9e   :  { %v1884_v25 = vpop.permute.xlu0 %1883 }
 0xb9f   :  { %v1887_v4 = vmul.f32 %v1884_v25, %v5276_v55  ;;  %v1886_v20 = vmul.f32 %v1884_v25, %v5278_v6  ;;  %v1889_v17 = vmul.f32 %v1884_v25, %v5274_v61  ;;  %v1888_v22 = vmul.f32 %v1884_v25, %v5286_v10 }
 0xba1   :  { %1896 = vrot.lane.b32.xlu1 %v1887_v4, %s3916_s28  ;;  %1894 = vrot.lane.b32.xlu2 %v1886_v20, %s3916_s28 }
 0xba7   :  { %v1915_v43 = vpop.permute.xlu0 %1914 }
 0xba8   :  { %v1918_v33 = vmul.f32 %v1915_v43, %v5276_v55  ;;  %v1917_v34 = vmul.f32 %v1915_v43, %v5278_v6  ;;  %v1920_v4 = vmul.f32 %v1915_v43, %v5274_v61  ;;  %v1919_v20 = vmul.f32 %v1915_v43, %v5286_v10 }
 0xba9   :  { %1900 = vrot.lane.b32.xlu1 %v1889_v17, %s3916_s28  ;;  %1898 = vrot.lane.b32.xlu2 %v1888_v22, %s3916_s28 }
 0xbb0   :  { %v1946_v25 = vpop.permute.xlu0 %1945 }
 0xbb1   :  { %1927 = vrot.lane.b32.xlu1 %v1918_v33, %s3917_s29  ;;  %1925 = vrot.lane.b32.xlu2 %v1917_v34, %s3917_s29  ;;  %v1949_v22 = vmul.f32 %v1946_v25, %v5276_v55  ;;  %v1948_v17 = vmul.f32 %v1946_v25, %v5278_v6  ;;  %v1951_v33 = vmul.f32 %v1946_v25, %v5274_v61 }
 0xbb2   :  { %v1950_v34 = vmul.f32 %v1946_v25, %v5286_v10 }
 0xbb9   :  { %1931 = vrot.lane.b32.xlu1 %v1920_v4, %s3917_s29  ;;  %1929 = vrot.lane.b32.xlu2 %v1919_v20, %s3917_s29  ;;  %v1977_v43 = vpop.permute.xlu0 %1976 }
 0xbba   :  { %v1980_v4 = vmul.f32 %v1977_v43, %v5276_v55  ;;  %v1979_v20 = vmul.f32 %v1977_v43, %v5278_v6  ;;  %v1981_v62 = vmul.f32 %v1977_v43, %v5286_v10 }
 0xbc1   :  { %1958 = vrot.lane.b32.xlu1 %v1949_v22, %s3918_s30  ;;  %1956 = vrot.lane.b32.xlu2 %v1948_v17, %s3918_s30  ;;  %v5350_v22 = vpop.permute.xlu1 %1296  ;;  %v1982_v17 = vmul.f32 %v1977_v43, %v5274_v61 }
 0xbc9   :  { %1962 = vrot.lane.b32.xlu1 %v1951_v33, %s3918_s30  ;;  %1960 = vrot.lane.b32.xlu2 %v1950_v34, %s3918_s30  ;;  %v5356_v25 = vpop.permute.xlu1 %1327  ;;  %v2008_v33 = vpop.permute.xlu0 %2007 }
 0xbca   :  { %v2011_v34 = vmul.f32 %v2008_v33, %v5276_v55  ;;  %v2010_v32 = vmul.f32 %v2008_v33, %v5278_v6  ;;  %v2012_v43 = vmul.f32 %v2008_v33, %v5286_v10 }
 0xbd1   :  { %1989 = vrot.lane.b32.xlu1 %v1980_v4, %s3920_s12  ;;  %1987 = vrot.lane.b32.xlu2 %v1979_v20, %s3920_s12  ;;  %v5362_v4 = vpop.permute.xlu1 %1354  ;;  %v2013_v20 = vmul.f32 %v2008_v33, %v5274_v61 }
 0xbd9   :  { %1993 = vrot.lane.b32.xlu1 %v1982_v17, %s3920_s12  ;;  %1991 = vrot.lane.b32.xlu2 %v1981_v62, %s3920_s12  ;;  %v2039_v62 = vpop.permute.xlu0 %2038  ;;  %v5370_v23 = vpop.permute.xlu1 %1358 }
 0xbda   :  { %v2042_v17 = vmul.f32 %v2039_v62, %v5276_v55  ;;  %v2041_v31 = vmul.f32 %v2039_v62, %v5278_v6  ;;  %v2043_v33 = vmul.f32 %v2039_v62, %v5286_v10 }
 0xbe1   :  { %2020 = vrot.lane.b32.xlu1 %v2011_v34, %s3922_s13  ;;  %2018 = vrot.lane.b32.xlu2 %v2010_v32, %s3922_s13  ;;  %v5374_v32 = vpop.permute.xlu2 %1867  ;;  %v2044_v34 = vmul.f32 %v2039_v62, %v5274_v61 }
 0xbe2   :  { %7054 = vst [vmem:[#allocation57_spill] sm:$0xff] %v5374_v32 }
 0xbe9   :  { %2024 = vrot.lane.b32.xlu1 %v2013_v20, %s3922_s13  ;;  %2022 = vrot.lane.b32.xlu2 %v2012_v43, %s3922_s13  ;;  %v5378_v20 = vpop.permute.xlu1 %1385 }
 0xbf1   :  { %2051 = vrot.lane.b32.xlu1 %v2042_v17, %s3923_s14  ;;  %2049 = vrot.lane.b32.xlu2 %v2041_v31, %s3923_s14  ;;  %v5385_v27 = vpop.permute.xlu1 %1389  ;;  %v7057_v31 = vmov 29  }
 0xbf9   :  { %2055 = vrot.lane.b32.xlu1 %v2044_v34, %s3923_s14  ;;  %2053 = vrot.lane.b32.xlu2 %v2043_v33, %s3923_s14  ;;  %v5392_v61 = vpop.permute.xlu1 %1416 }
 0xbfb   :  { %v5382_v43 = vpop.permute.xlu2 %1894 }
 0xbfc   :  { %7055 = vst [vmem:[#allocation22_spill] sm:$0xff] %v5382_v43 }
 0xc01   :  { %2092 = vperm.xlu2 %3771, %v5003_v46   ;;  %v5396_v10 = vpop.permute.xlu1 %1420 }
 0xc03   :  { %v5387_v17 = vpop.permute.xlu2 %1898 }
 0xc04   :  { %7056 = vst [vmem:[#allocation26_spill] sm:$0xff] %v5387_v17 }
 0xc09   :  { %3772 = vset.pattern.permute.xlu2 %v7057_v31  ;;  %v5400_v33 = vpop.permute.xlu1 %1447 }
 0xc0b   :  { %v5390_v32 = vpop.permute.xlu2 %1925 }
 0xc0c   :  { %7058 = vst [vmem:[#allocation59_spill] sm:$0xff] %v5390_v32 }
 0xc11   :  { %v5404_v55 = vpop.permute.xlu1 %1451 }
 0xc13   :  { %v5394_v62 = vpop.permute.xlu2 %1929 }
 0xc14   :  { %7059 = vst [vmem:[#allocation24_spill] sm:$0xff] %v5394_v62 }
 0xc19   :  { %v5410_v31 = vpop.permute.xlu1 %1478 }
 0xc1b   :  { %v5398_v34 = vpop.permute.xlu2 %1956 }
 0xc1c   :  { %7060 = vst [vmem:[#allocation29_spill] sm:$0xff] %v5398_v34 }
 0xc21   :  { %v5414_v39 = vpop.permute.xlu1 %1482 }
 0xc23   :  { %v5402_v43 = vpop.permute.xlu2 %1960 }
 0xc24   :  { %7061 = vst [vmem:[#allocation60_spill] sm:$0xff] %v5402_v43 }
 0xc29   :  { %v5418_v42 = vpop.permute.xlu1 %1509 }
 0xc2b   :  { %v5406_v6 = vpop.permute.xlu2 %1987 }
 0xc2c   :  { %7062 = vst [vmem:[#allocation27_spill] sm:$0xff] %v5406_v6 }
 0xc31   :  { %v5422_v24 = vpop.permute.xlu1 %1513 }
 0xc33   :  { %v5408_v17 = vpop.permute.xlu2 %1991 }
 0xc34   :  { %7063 = vst [vmem:[#allocation32_spill] sm:$0xff] %v5408_v17  ;;  %v5428_v17 = vperm.slane %v2069_v13, 3 }
 0xc36   :  { %7068 = vst [vmem:[#allocation61_spill] sm:$0xff] %v5428_v17 }
 0xc39   :  { %v5426_v6 = vpop.permute.xlu1 %1561 }
 0xc3b   :  { %v5412_v32 = vpop.permute.xlu2 %2018 }
 0xc3c   :  { %7064 = vst [vmem:[#allocation62_spill] sm:$0xff] %v5412_v32 }
 0xc41   :  { %v5442_v11 = vpop.permute.xlu1 %1565 }
 0xc43   :  { %v5416_v62 = vpop.permute.xlu2 %2022 }
 0xc44   :  { %7065 = vst [vmem:[#allocation28_spill] sm:$0xff] %v5416_v62 }
 0xc49   :  { %v5447_v51 = vpop.permute.xlu1 %1592 }
 0xc4b   :  { %v5420_v34 = vpop.permute.xlu2 %2049 }
 0xc4c   :  { %7066 = vst [vmem:[#allocation64_spill] sm:$0xff] %v5420_v34 }
 0xc51   :  { %v5450_v12 = vpop.permute.xlu1 %1598 }
 0xc52   :  { %7071 = vst [vmem:[#allocation36_spill] sm:$0xff] %v5450_v12 }
 0xc53   :  { %v5424_v43 = vpop.permute.xlu2 %2053 }
 0xc54   :  { %7067 = vst [vmem:[#allocation34_spill] sm:$0xff] %v5424_v43  ;;  %v5440_v43 = vperm.slane %v2069_v13, 2 }
 0xc56   :  { %7069 = vst [vmem:[#allocation31_spill] sm:$0xff] %v5440_v43 }
 0xc5b   :  { %v2093_v32 = vpop.permute.xlu2 %2092 }
 0xc5c   :  { %v2098_v62 = vmul.f32 %v2093_v32, %v5428_v17  ;;  %v2096_v41 = vmul.f32 %v2093_v32, %v5430_v15  ;;  %v2095_v34 = vmul.f32 %v2093_v32, %v5432_v35  ;;  %v2097_v8 = vmul.f32 %v2093_v32, %v5440_v43 }
 0xc5e   :  { %2109 = vrot.lane.b32.xlu0 %v2098_v62, %s3915_s27  ;;  %2105 = vrot.lane.b32.xlu2 %v2096_v41, %s3915_s27  ;;  %v5452_v62 = vpop.permute.xlu1 %1625 }
 0xc5f   :  { %2103 = vrot.lane.b32.xlu1 %v2095_v34, %s3915_s27 }
 0xc66   :  { %2123 = vperm.xlu2 %3772, %v5003_v46   ;;  %v5454_v41 = vpop.permute.xlu1 %1629 }
 0xc67   :  { %2107 = vrot.lane.b32.xlu1 %v2097_v8, %s3915_s27  ;;  %7072 = vst [vmem:[#allocation63_spill] sm:$0xff] %v5454_v41  ;;  %v7079_v41 = vmov 31  }
 0xc6e   :  { %3780 = vset.pattern.permute.xlu2 %v7070_v1  ;;  %v5456_v13 = vpop.permute.xlu1 %1656 }
 0xc76   :  { %v5458_v34 = vpop.permute.xlu1 %1660 }
 0xc77   :  { %7073 = vst [vmem:[#allocation33_spill] sm:$0xff] %v5458_v34 }
 0xc7e   :  { %v5460_v40 = vpop.permute.xlu1 %1687 }
 0xc86   :  { %v5462_v32 = vpop.permute.xlu1 %1691 }
 0xc87   :  { %7074 = vst [vmem:[#allocation68_spill] sm:$0xff] %v5462_v32 }
 0xc8e   :  { %v5466_v8 = vpop.permute.xlu1 %1718 }
 0xc8f   :  { %7076 = vst [vmem:[#allocation65_spill] sm:$0xff] %v5466_v8 }
 0xc96   :  { %v5473_v34 = vpop.permute.xlu1 %1722 }
 0xc97   :  { %7077 = vst [vmem:[#allocation35_spill] sm:$0xff] %v5473_v34  ;;  %v7087_v34 = vmov 35  }
 0xcb8   :  { %v5464_v49 = vpop.permute.xlu2 %2105 }
 0xcb9   :  { %7075 = vst [vmem:[#allocation38_spill] sm:$0xff] %v5464_v49  ;;  %v5479_v49 = vpop.permute.xlu1 %1749 }
 0xcba   :  { %7078 = vst [vmem:[#allocation72_spill] sm:$0xff] %v5479_v49 }
 0xcc0   :  { %v2124_v44 = vpop.permute.xlu2 %2123 }
 0xcc1   :  { %v2128_v1 = vmul.f32 %v2124_v44, %v5440_v43  ;;  %v2127_v12 = vmul.f32 %v2124_v44, %v5430_v15  ;;  %v2126_v47 = vmul.f32 %v2124_v44, %v5432_v35  ;;  %v2129_v32 = vmul.f32 %v2124_v44, %v5428_v17  ;;  %v5483_v8 = vpop.permute.xlu1 %1753 }
 0xcc2   :  { %7080 = vst [vmem:[#allocation40_spill] sm:$0xff] %v5483_v8 }
 0xcc3   :  { %2138 = vrot.lane.b32.xlu2 %v2128_v1, %s3914_s2  ;;  %2136 = vrot.lane.b32.xlu0 %v2127_v12, %s3914_s2  ;;  %v7081_v1 = vmov 32  }
 0xcc4   :  { %2134 = vrot.lane.b32.xlu1 %v2126_v47, %s3914_s2  ;;  %v7083_v47 = vmov 33  }
 0xcc9   :  { %v5487_v12 = vpop.permute.xlu1 %1780 }
 0xcca   :  { %7082 = vst [vmem:[#allocation66_spill] sm:$0xff] %v5487_v12 }
 0xccb   :  { %2154 = vperm.xlu0 %3773, %v5003_v46  }
 0xccc   :  { %2140 = vrot.lane.b32.xlu1 %v2129_v32, %s3914_s2  ;;  %v7085_v32 = vmov 34  }
 0xcd1   :  { %v5491_v44 = vpop.permute.xlu1 %1784 }
 0xcd2   :  { %7084 = vst [vmem:[#allocation37_spill] sm:$0xff] %v5491_v44 }
 0xcd3   :  { %3774 = vset.pattern.permute.xlu0 %v7079_v41 }
 0xcd4   :  { %2185 = vperm.xlu0 %3774, %v5003_v46  }
 0xcd9   :  { %v5495_v41 = vpop.permute.xlu1 %1832 }
 0xcda   :  { %7086 = vst [vmem:[#allocation74_spill] sm:$0xff] %v5495_v41 }
 0xcdc   :  { %3775 = vset.pattern.permute.xlu0 %v7081_v1 }
 0xcdd   :  { %2216 = vperm.xlu0 %3775, %v5003_v46  }
 0xce1   :  { %v5499_v1 = vpop.permute.xlu1 %1836 }
 0xce2   :  { %7088 = vst [vmem:[#allocation42_spill] sm:$0xff] %v5499_v1 }
 0xce5   :  { %3776 = vset.pattern.permute.xlu0 %v7083_v47 }
 0xce6   :  { %2247 = vperm.xlu0 %3776, %v5003_v46  }
 0xce9   :  { %v5502_v8 = vpop.permute.xlu1 %1863 }
 0xcea   :  { %7089 = vst [vmem:[#allocation70_spill] sm:$0xff] %v5502_v8 }
 0xcee   :  { %3777 = vset.pattern.permute.xlu0 %v7085_v32  ;;  %v5510_v32 = vpop.permute.xlu0 %2071 }
 0xcef   :  { %2278 = vperm.xlu0 %3777, %v5003_v46   ;;  %7092 = vst [vmem:[#allocation44_spill] sm:$0xff] %v5510_v32 }
 0xcf1   :  { %v5504_v47 = vpop.permute.xlu1 %1869 }
 0xcf2   :  { %7090 = vst [vmem:[#allocation39_spill] sm:$0xff] %v5504_v47 }
 0xcf6   :  { %v5514_v41 = vpop.permute.xlu0 %2109 }
 0xcf7   :  { %3778 = vset.pattern.permute.xlu0 %v7087_v34  ;;  %7094 = vst [vmem:[#allocation41_spill] sm:$0xff] %v5514_v41 }
 0xcf8   :  { %2309 = vperm.xlu0 %3778, %v5003_v46  }
 0xcf9   :  { %v5506_v12 = vpop.permute.xlu1 %1896 }
 0xd00   :  { %3784 = vset.pattern.permute.xlu0 %v7003_v57 }
 0xd01   :  { %v5508_v44 = vpop.permute.xlu1 %1900 }
 0xd02   :  { %7091 = vst [vmem:[#allocation76_spill] sm:$0xff] %v5508_v44 }
 0xd09   :  { %v5512_v49 = vpop.permute.xlu1 %1927 }
 0xd0a   :  { %7093 = vst [vmem:[#allocation73_spill] sm:$0xff] %v5512_v49 }
 0xd11   :  { %v5518_v46 = vpop.permute.xlu1 %1931 }
 0xd12   :  { %7096 = vst [vmem:[#allocation75_spill] sm:$0xff] %v5518_v46 }
 0xd19   :  { %v5522_v47 = vpop.permute.xlu1 %1958 }
 0xd1a   :  { %7097 = vst [vmem:[#allocation43_spill] sm:$0xff] %v5522_v47 }
 0xd21   :  { %v5530_v41 = vpop.permute.xlu1 %1962 }
 0xd22   :  { %7098 = vst [vmem:[#allocation77_spill] sm:$0xff] %v5530_v41 }
 0xd35   :  { %v5516_v34 = vpop.permute.xlu0 %2136 }
 0xd36   :  { %7095 = vst [vmem:[#allocation67_spill] sm:$0xff] %v5516_v34 }
 0xd3d   :  { %v2155_v1 = vpop.permute.xlu0 %2154 }
 0xd3e   :  { %v2158_v57 = vmul.f32 %v2155_v1, %v5430_v15  ;;  %v2157_v8 = vmul.f32 %v2155_v1, %v5432_v35  ;;  %v2160_v32 = vmul.f32 %v2155_v1, %v5428_v17  ;;  %v2159_v44 = vmul.f32 %v2155_v1, %v5440_v43 }
 0xd40   :  { %2167 = vrot.lane.b32.xlu1 %v2158_v57, %s3916_s28  ;;  %2165 = vrot.lane.b32.xlu2 %v2157_v8, %s3916_s28  ;;  %v5536_v8 = vpop.permute.xlu1 %1989 }
 0xd41   :  { %7099 = vst [vmem:[#allocation45_spill] sm:$0xff] %v5536_v8 }
 0xd46   :  { %v2186_v34 = vpop.permute.xlu0 %2185 }
 0xd47   :  { %v2189_v46 = vmul.f32 %v2186_v34, %v5430_v15  ;;  %v2188_v49 = vmul.f32 %v2186_v34, %v5432_v35  ;;  %v2191_v57 = vmul.f32 %v2186_v34, %v5428_v17  ;;  %v2190_v1 = vmul.f32 %v2186_v34, %v5440_v43 }
 0xd48   :  { %2171 = vrot.lane.b32.xlu1 %v2160_v32, %s3916_s28  ;;  %2169 = vrot.lane.b32.xlu2 %v2159_v44, %s3916_s28  ;;  %v5542_v32 = vpop.permute.xlu1 %1993 }
 0xd49   :  { %7100 = vst [vmem:[#allocation56_spill] sm:$0xff] %v5542_v32 }
 0xd4f   :  { %v2217_v44 = vpop.permute.xlu0 %2216 }
 0xd50   :  { %2198 = vrot.lane.b32.xlu1 %v2189_v46, %s3917_s29  ;;  %2196 = vrot.lane.b32.xlu2 %v2188_v49, %s3917_s29  ;;  %v2220_v41 = vmul.f32 %v2217_v44, %v5430_v15  ;;  %v2219_v47 = vmul.f32 %v2217_v44, %v5432_v35  ;;  %v2222_v49 = vmul.f32 %v2217_v44, %v5428_v17  ;;  %v5550_v34 = vpop.permute.xlu1 %2020 }
 0xd51   :  { %v2221_v46 = vmul.f32 %v2217_v44, %v5440_v43  ;;  %7101 = vst [vmem:[#allocation78_spill] sm:$0xff] %v5550_v34 }
 0xd58   :  { %2202 = vrot.lane.b32.xlu1 %v2191_v57, %s3917_s29  ;;  %2200 = vrot.lane.b32.xlu2 %v2190_v1, %s3917_s29  ;;  %v2248_v57 = vpop.permute.xlu0 %2247 }
 0xd59   :  { %v2251_v1 = vmul.f32 %v2248_v57, %v5430_v15  ;;  %v2250_v32 = vmul.f32 %v2248_v57, %v5432_v35  ;;  %v2252_v44 = vmul.f32 %v2248_v57, %v5440_v43 }
 0xd60   :  { %2229 = vrot.lane.b32.xlu1 %v2220_v41, %s3918_s30  ;;  %2227 = vrot.lane.b32.xlu2 %v2219_v47, %s3918_s30  ;;  %v5558_v41 = vpop.permute.xlu1 %2024  ;;  %v2253_v47 = vmul.f32 %v2248_v57, %v5428_v17 }
 0xd61   :  { %7102 = vst [vmem:[#allocation71_spill] sm:$0xff] %v5558_v41 }
 0xd68   :  { %2233 = vrot.lane.b32.xlu1 %v2222_v49, %s3918_s30  ;;  %2231 = vrot.lane.b32.xlu2 %v2221_v46, %s3918_s30  ;;  %v2279_v49 = vpop.permute.xlu0 %2278  ;;  %v5564_v46 = vpop.permute.xlu1 %2051 }
 0xd69   :  { %7103 = vst [vmem:[#allocation80_spill] sm:$0xff] %v5564_v46  ;;  %v2282_v34 = vmul.f32 %v2279_v49, %v5430_v15  ;;  %v2281_v8 = vmul.f32 %v2279_v49, %v5432_v35  ;;  %v2283_v57 = vmul.f32 %v2279_v49, %v5440_v43 }
 0xd70   :  { %2260 = vrot.lane.b32.xlu1 %v2251_v1, %s3920_s12  ;;  %2258 = vrot.lane.b32.xlu2 %v2250_v32, %s3920_s12  ;;  %v5570_v32 = vpop.permute.xlu1 %2055  ;;  %v2284_v1 = vmul.f32 %v2279_v49, %v5428_v17 }
 0xd71   :  { %7104 = vst [vmem:[#allocation79_spill] sm:$0xff] %v5570_v32 }
 0xd78   :  { %2264 = vrot.lane.b32.xlu1 %v2253_v47, %s3920_s12  ;;  %2262 = vrot.lane.b32.xlu2 %v2252_v44, %s3920_s12  ;;  %v2310_v47 = vpop.permute.xlu0 %2309  ;;  %v5576_v44 = vpop.permute.xlu1 %2103 }
 0xd79   :  { %7105 = vst [vmem:[#allocation69_spill] sm:$0xff] %v5576_v44  ;;  %v2313_v41 = vmul.f32 %v2310_v47, %v5430_v15  ;;  %v2312_v46 = vmul.f32 %v2310_v47, %v5432_v35  ;;  %v2314_v49 = vmul.f32 %v2310_v47, %v5440_v43 }
 0xd80   :  { %2291 = vrot.lane.b32.xlu1 %v2282_v34, %s3922_s13  ;;  %2289 = vrot.lane.b32.xlu2 %v2281_v8, %s3922_s13  ;;  %v5582_v8 = vpop.permute.xlu2 %2138  ;;  %v2315_v34 = vmul.f32 %v2310_v47, %v5428_v17  ;;  %v1298_v47 = vsel %vm111_vm0, %v5094_v50, %v5102_v19 }
 0xd81   :  { %7106 = vst [vmem:[#allocation81_spill] sm:$0xff] %v5582_v8 }
 0xd88   :  { %2295 = vrot.lane.b32.xlu1 %v2284_v1, %s3922_s13  ;;  %2293 = vrot.lane.b32.xlu2 %v2283_v57, %s3922_s13  ;;  %v5586_v1 = vpop.permute.xlu1 %2107 }
 0xd90   :  { %2322 = vrot.lane.b32.xlu1 %v2313_v41, %s3923_s14  ;;  %2320 = vrot.lane.b32.xlu2 %v2312_v46, %s3923_s14  ;;  %v5592_v32 = vpop.permute.xlu1 %2134 }
 0xd98   :  { %2326 = vrot.lane.b32.xlu1 %v2315_v34, %s3923_s14  ;;  %2324 = vrot.lane.b32.xlu2 %v2314_v49, %s3923_s14  ;;  %v5596_v41 = vpop.permute.xlu1 %2140  ;;  %v1299_v34 = vsel %vm111_vm0, %v5102_v19, %v5072_v48  ;;  %v1271_v49 = vmul.f32 %v5040_v59, %v5026_v9  ;;  %v1360_v19 = vsel %vm175_vm2, %v5122_v5, %v5362_v4 }
 0xd99   :  { %7109 = vst [vmem:[#allocation84_spill] sm:$0xff] %v5596_v41  ;;  %v1270_v41 = vmul.f32 %v5032_v58, %v5026_v9  ;;  %v1361_v58 = vsel %vm175_vm2, %v5362_v4, %v5127_v54  ;;  %v1300_v5 = vsel %vm111_vm0, %v5072_v48, %v5350_v22  ;;  %v1272_v4 = vmul.f32 %v5028_v53, %v5026_v9 }
 0xd9a   :  { %v5590_v57 = vpop.permute.xlu2 %2165  ;;  %v1306_v50 = vadd.f32 %v1299_v34, %v1271_v49  ;;  %v1331_v48 = vsel %vm143_vm1, %v5114_v0, %v5356_v25 }
 0xd9b   :  { %7107 = vst [vmem:[#allocation83_spill] sm:$0xff] %v5590_v57  ;;  %v1305_v43 = vadd.f32 %v1298_v47, %v1270_v41  ;;  %v1307_v53 = vadd.f32 %v1300_v5, %v1272_v4 }
 0xd9d   :  { %v1338_v49 = vadd.f32 %v1331_v48, %v1307_v53  ;;  %v1569_v48 = vsel %vm111_vm0, %v5426_v6, %v5168_v28  ;;  %v1601_v6 = vsel %vm143_vm1, %v5196_v30, %v5242_v56 }
 0xda2   :  { %v5594_v44 = vpop.permute.xlu2 %2169 }
 0xda3   :  { %7108 = vst [vmem:[#allocation82_spill] sm:$0xff] %v5594_v44 }
 0xdaa   :  { %v5598_v46 = vpop.permute.xlu2 %2196 }
 0xdab   :  { %7110 = vst [vmem:[#allocation85_spill] sm:$0xff] %v5598_v46  ;;  %v1329_v46 = vsel %vm143_vm1, %v5108_v63, %v5074_v16  ;;  %v1392_v63 = vsel %vm207_vm3, %v5378_v20, %v5132_v3 }
 0xdac   :  { %v1336_v59 = vadd.f32 %v1329_v46, %v1305_v43  ;;  %v1273_v43 = vmul.f32 %v5030_v36, %v5026_v9  ;;  %v1453_v9 = vsel %vm271_vm5, %v5138_v21, %v5400_v33  ;;  %v1454_v36 = vsel %vm271_vm5, %v5400_v33, %v5140_v52 }
 0xdad   :  { %v1485_v21 = vsel %vm303_vm6, %v5410_v31, %v5144_v45  ;;  %v1393_v33 = vsel %vm207_vm3, %v5132_v3, %v5385_v27 }
 0xdae   :  { %v1367_v41 = vadd.f32 %v1360_v19, %v1336_v59  ;;  %v1308_v46 = vadd.f32 %v5350_v22, %v1273_v43  ;;  %v1541_v43 = vmul.f32 %v5154_v60, %v5192_v7 }
 0xdb0   :  { %v1339_v22 = vadd.f32 %v5356_v25, %v1308_v46  ;;  %v1515_v25 = vsel %vm335_vm7, %v5146_v18, %v5418_v42 }
 0xdb2   :  { %v5600_v8 = vpop.permute.xlu1 %2167  ;;  %v5602_v17 = vpop.permute.xlu2 %2200  ;;  %v1370_v59 = vadd.f32 %v5370_v23, %v1339_v22  ;;  %v7116_v22 = vld [vmem:[#allocation49_spill] sm:$0xff] }
 0xdb3   :  { %7111 = vst [vmem:[#allocation86_spill] sm:$0xff] %v5600_v8 }
 0xdb4   :  { %7112 = vst [vmem:[#allocation87_spill] sm:$0xff] %v5602_v17  ;;  %v1330_v17 = vsel %vm143_vm1, %v5074_v16, %v5114_v0  ;;  %v1391_v16 = vsel %vm207_vm3, %v5130_v2, %v5378_v20  ;;  %v1422_v2 = vsel %vm239_vm4, %v5134_v38, %v5392_v61  ;;  %v1423_v20 = vsel %vm239_vm4, %v5392_v61, %v5136_v14 }
 0xdb5   :  { %v1337_v57 = vadd.f32 %v1330_v17, %v1306_v50  ;;  %v1398_v17 = vadd.f32 %v1391_v16, %v1367_v41  ;;  %v1362_v38 = vsel %vm175_vm2, %v5127_v54, %v5370_v23  ;;  %v1484_v50 = vsel %vm303_vm6, %v5142_v29, %v5410_v31 }
 0xdb6   :  { %v1516_v29 = vsel %vm335_vm7, %v5418_v42, %v5148_v26  ;;  %v1424_v31 = vsel %vm239_vm4, %v5136_v14, %v5396_v10  ;;  %v1401_v41 = vadd.f32 %v5385_v27, %v1370_v59  ;;  %v1455_v23 = vsel %vm271_vm5, %v5140_v52, %v5404_v55 }
 0xdb7   :  { %v1368_v47 = vadd.f32 %v1361_v58, %v1337_v57  ;;  %v1429_v61 = vadd.f32 %v1422_v2, %v1398_v17  ;;  %v1369_v58 = vadd.f32 %v1362_v38, %v1338_v49  ;;  %v1486_v14 = vsel %vm303_vm6, %v5144_v45, %v5414_v39  ;;  %v7114_v38 = vld [vmem:[#allocation13_spill] sm:$0xff]  ;;  %v7115_v49 = vld [vmem:[#allocation46_spill] sm:$0xff] }
 0xdb8   :  { %v1432_v42 = vadd.f32 %v5396_v10, %v1401_v41  ;;  %v1542_v2 = vmul.f32 %v5152_v37, %v5192_v7  ;;  %v1570_v10 = vsel %vm111_vm0, %v5168_v28, %v5442_v11  ;;  %v1517_v45 = vsel %vm335_vm7, %v5148_v26, %v5422_v24  ;;  %v7113_v26 = vld [vmem:[#allocation47_spill] sm:$0xff]  ;;  %v7122_v41 = vld [vmem:[#allocation36_spill] sm:$0xff] }
 0xdb9   :  { %v1399_v57 = vadd.f32 %v1392_v63, %v1368_v47  ;;  %v1460_v54 = vadd.f32 %v1453_v9, %v1429_v61  ;;  %v1400_v5 = vadd.f32 %v1393_v33, %v1369_v58  ;;  %v7118_v33 = vld [vmem:[#allocation17_spill] sm:$0xff] }
 0xdba   :  { %v5620_v44 = vpop.permute.xlu1 %2171  ;;  %v5628_v8 = vpop.permute.xlu2 %2227  ;;  %v1463_v52 = vadd.f32 %v5404_v55, %v1432_v42  ;;  %v1600_v55 = vsel %vm143_vm1, %v5447_v51, %v5196_v30  ;;  %v1544_v30 = vmul.f32 %v7115_v49, %v5192_v7  ;;  %v7124_v42 = vld [vmem:[#allocation53_spill] sm:$0xff] }
 0xdbb   :  { %v1430_v34 = vadd.f32 %v1423_v20, %v1399_v57  ;;  %v1491_v16 = vadd.f32 %v1484_v50, %v1460_v54  ;;  %v1431_v4 = vadd.f32 %v1424_v31, %v1400_v5  ;;  %v1543_v50 = vmul.f32 %v7116_v22, %v5192_v7  ;;  %v7120_v7 = vld [vmem:[#allocation48_spill] sm:$0xff] }
 0xdbc   :  { %v1494_v57 = vadd.f32 %v5414_v39, %v1463_v52  ;;  %v1632_v39 = vsel %vm175_vm2, %v5452_v62, %v7114_v38  ;;  %v1663_v54 = vsel %vm207_vm3, %v5456_v13, %v7118_v33 }
 0xdbd   :  { %v1461_v19 = vadd.f32 %v1454_v36, %v1430_v34  ;;  %v1522_v18 = vadd.f32 %v1515_v25, %v1491_v16  ;;  %v1462_v20 = vadd.f32 %v1455_v23, %v1431_v4  ;;  %v1631_v36 = vsel %vm175_vm2, %v7113_v26, %v5452_v62  ;;  %v7123_v4 = vld [vmem:[#allocation65_spill] sm:$0xff]  ;;  %v7131_v26 = vld [vmem:[#allocation66_spill] sm:$0xff] }
 0xdbe   :  { %v1525_v9 = vadd.f32 %v5422_v24, %v1494_v57  ;;  %v7117_v24 = vld [vmem:[#allocation51_spill] sm:$0xff]  ;;  %v1693_v16 = vsel %vm239_vm4, %v7120_v7, %v5460_v40 }
 0xdbf   :  { %v1492_v63 = vadd.f32 %v1485_v21, %v1461_v19  ;;  %v1545_v60 = vadd.f32 %v1541_v43, %v1522_v18  ;;  %v1493_v37 = vadd.f32 %v1486_v14, %v1462_v20  ;;  %v1662_v21 = vsel %vm207_vm3, %v7117_v24, %v5456_v13  ;;  %v7119_v19 = vld [vmem:[#allocation15_spill] sm:$0xff] }
 0xdc0   :  { %v1571_v62 = vsel %vm111_vm0, %v5442_v11, %v7119_v19  ;;  %v1602_v13 = vsel %vm143_vm1, %v5242_v56, %v7122_v41  ;;  %v1724_v14 = vsel %vm271_vm5, %v7124_v42, %v7123_v4  ;;  %v7125_v43 = vld [vmem:[#allocation19_spill] sm:$0xff]  ;;  %v7142_v42 = vld [vmem:[#allocation42_spill] sm:$0xff] }
 0xdc1   :  { %v1523_v47 = vadd.f32 %v1516_v29, %v1492_v63  ;;  %v1576_v46 = vadd.f32 %v1569_v48, %v1545_v60  ;;  %v1524_v28 = vadd.f32 %v1517_v45, %v1493_v37  ;;  %v1548_v29 = vadd.f32 %v1544_v30, %v1525_v9  ;;  %v7121_v63 = vld [vmem:[#allocation14_spill] sm:$0xff]  ;;  %v7126_v20 = vld [vmem:[#allocation63_spill] sm:$0xff]  ;;  %v7127_v45 = vld [vmem:[#allocation72_spill] sm:$0xff] }
 0xdc2   :  { %v5662_v0 = vpop.permute.xlu1 %2198  ;;  %v5684_v3 = vpop.permute.xlu2 %2231  ;;  %v1694_v5 = vsel %vm239_vm4, %v5460_v40, %v7121_v63  ;;  %v1633_v40 = vsel %vm175_vm2, %v7114_v38, %v7126_v20  ;;  %v7128_v60 = vld [vmem:[#allocation50_spill] sm:$0xff]  ;;  %v7129_v37 = vld [vmem:[#allocation16_spill] sm:$0xff] }
 0xdc3   :  { %v1546_v17 = vadd.f32 %v1542_v2, %v1523_v47  ;;  %v1607_v61 = vadd.f32 %v1600_v55, %v1576_v46  ;;  %v1547_v31 = vadd.f32 %v1543_v50, %v1524_v28  ;;  %v1579_v18 = vadd.f32 %v7119_v19, %v1548_v29  ;;  %v7130_v55 = vld [vmem:[#allocation33_spill] sm:$0xff] }
 0xdc4   :  { %v1725_v2 = vsel %vm271_vm5, %v7123_v4, %v7125_v43  ;;  %v1756_v57 = vsel %vm303_vm6, %v7127_v45, %v7129_v37 }
 0xdc5   :  { %v1577_v53 = vadd.f32 %v1570_v10, %v1546_v17  ;;  %v1638_v58 = vadd.f32 %v1631_v36, %v1607_v61  ;;  %v1578_v47 = vadd.f32 %v1571_v62, %v1547_v31  ;;  %v1610_v10 = vadd.f32 %v7122_v41, %v1579_v18  ;;  %v7132_v36 = vld [vmem:[#allocation55_spill] sm:$0xff]  ;;  %v7136_v31 = vld [vmem:[#allocation40_spill] sm:$0xff]  ;;  %v7139_v41 = vld [vmem:[#allocation18_spill] sm:$0xff] }
 0xdc6   :  { %v1755_v17 = vsel %vm303_vm6, %v7128_v60, %v7127_v45  ;;  %v1786_v38 = vsel %vm335_vm7, %v7132_v36, %v7131_v26  ;;  %v1757_v7 = vsel %vm303_vm6, %v7129_v37, %v7136_v31  ;;  %v7140_v18 = vld [vmem:[#allocation54_spill] sm:$0xff]  ;;  %v7146_v60 = vld [vmem:[#allocation57_spill] sm:$0xff] }
 0xdc7   :  { %v1608_v34 = vadd.f32 %v1601_v6, %v1577_v53  ;;  %v1669_v23 = vadd.f32 %v1662_v21, %v1638_v58  ;;  %v1609_v56 = vadd.f32 %v1602_v13, %v1578_v47  ;;  %v1664_v6 = vsel %vm207_vm3, %v7118_v33, %v7130_v55  ;;  %v7141_v47 = vld [vmem:[#allocation74_spill] sm:$0xff] }
 0xdc8   :  { %v1641_v9 = vadd.f32 %v7126_v20, %v1610_v10  ;;  %v1840_v4 = vsel %vm111_vm0, %v7141_v47, %v7140_v18  ;;  %v7145_v10 = vld [vmem:[#allocation70_spill] sm:$0xff] }
 0xdc9   :  { %v1639_v59 = vadd.f32 %v1632_v39, %v1608_v34  ;;  %v1700_v52 = vadd.f32 %v1693_v16, %v1669_v23  ;;  %v1640_v28 = vadd.f32 %v1633_v40, %v1609_v56  ;;  %v7133_v39 = vld [vmem:[#allocation21_spill] sm:$0xff]  ;;  %v7134_v34 = vld [vmem:[#allocation68_spill] sm:$0xff] }
 0xdca   :  { %v5698_v27 = vpop.permute.xlu1 %2202  ;;  %v5724_v51 = vpop.permute.xlu2 %2258  ;;  %v1787_v61 = vsel %vm335_vm7, %v7131_v26, %v7133_v39  ;;  %v1695_v49 = vsel %vm239_vm4, %v7121_v63, %v7134_v34  ;;  %v1672_v33 = vadd.f32 %v7130_v55, %v1641_v9  ;;  %v7137_v16 = vld [vmem:[#allocation20_spill] sm:$0xff]  ;;  %v7138_v63 = vld [vmem:[#allocation58_spill] sm:$0xff]  ;;  %v7144_v56 = vld [vmem:[#allocation25_spill] sm:$0xff] }
 0xdcb   :  { %v1670_v11 = vadd.f32 %v1663_v54, %v1639_v59  ;;  %v1731_v46 = vadd.f32 %v1724_v14, %v1700_v52  ;;  %v1671_v21 = vadd.f32 %v1664_v6, %v1640_v28  ;;  %v7135_v54 = vld [vmem:[#allocation35_spill] sm:$0xff]  ;;  %v1813_v13 = vmul.f32 %v7139_v41, %v7137_v16  ;;  %v7148_v9 = vld [vmem:[#allocation26_spill] sm:$0xff] }
 0xdcc   :  { %v1726_v19 = vsel %vm271_vm5, %v7125_v43, %v7135_v54  ;;  %v1703_v29 = vadd.f32 %v7134_v34, %v1672_v33  ;;  %v1841_v14 = vsel %vm111_vm0, %v7140_v18, %v7142_v42  ;;  %v7143_v43 = vld [vmem:[#allocation37_spill] sm:$0xff]  ;;  %v1871_v45 = vsel %vm143_vm1, %v7145_v10, %v7144_v56 }
 0xdcd   :  { %v1701_v48 = vadd.f32 %v1694_v5, %v1670_v11  ;;  %v1762_v30 = vadd.f32 %v1755_v17, %v1731_v46  ;;  %v1702_v59 = vadd.f32 %v1695_v49, %v1671_v21  ;;  %v1812_v5 = vmul.f32 %v7138_v63, %v7137_v16  ;;  %v7150_v49 = vld [vmem:[#allocation23_spill] sm:$0xff]  ;;  %v7156_v63 = vld [vmem:[#allocation29_spill] sm:$0xff] }
 0xdce   :  { %v1734_v11 = vadd.f32 %v7135_v54, %v1703_v29  ;;  %v1872_v17 = vsel %vm143_vm1, %v7144_v56, %v7146_v60  ;;  %v1903_v26 = vsel %vm175_vm2, %v5506_v12, %v7148_v9  ;;  %v7152_v21 = vld [vmem:[#allocation59_spill] sm:$0xff]  ;;  %v7153_v54 = vld [vmem:[#allocation24_spill] sm:$0xff] }
 0xdcf   :  { %v1732_v53 = vadd.f32 %v1725_v2, %v1701_v48  ;;  %v1793_v62 = vadd.f32 %v1786_v38, %v1762_v30  ;;  %v1733_v23 = vadd.f32 %v1726_v19, %v1702_v59  ;;  %v1788_v2 = vsel %vm335_vm7, %v7133_v39, %v7143_v43 }
 0xdd0   :  { %v1765_v48 = vadd.f32 %v7136_v31, %v1734_v11  ;;  %v1814_v30 = vmul.f32 %v7150_v49, %v7137_v16 }
 0xdd1   :  { %v1763_v22 = vadd.f32 %v1756_v57, %v1732_v53  ;;  %v1816_v20 = vadd.f32 %v1812_v5, %v1793_v62  ;;  %v1764_v52 = vadd.f32 %v1757_v7, %v1733_v23  ;;  %v7147_v53 = vld [vmem:[#allocation22_spill] sm:$0xff]  ;;  %v7155_v7 = vld [vmem:[#allocation43_spill] sm:$0xff]  ;;  %v7157_v5 = vld [vmem:[#allocation60_spill] sm:$0xff] }
 0xdd2   :  { %v5739_v25 = vpop.permute.xlu1 %2229  ;;  %v5780_v50 = vpop.permute.xlu2 %2262  ;;  %v1796_v46 = vadd.f32 %v7143_v43, %v1765_v48  ;;  %v1902_v28 = vsel %vm175_vm2, %v7147_v53, %v5506_v12  ;;  %v7154_v62 = vld [vmem:[#allocation30_spill] sm:$0xff]  ;;  %v1965_v41 = vsel %vm239_vm4, %v7155_v7, %v7157_v5  ;;  %v7166_v53 = vld [vmem:[#allocation75_spill] sm:$0xff] }
 0xdd3   :  { %v1794_v58 = vadd.f32 %v1787_v61, %v1763_v22  ;;  %v1847_v37 = vadd.f32 %v1840_v4, %v1816_v20  ;;  %v1795_v6 = vadd.f32 %v1788_v2, %v1764_v52  ;;  %v7149_v61 = vld [vmem:[#allocation52_spill] sm:$0xff]  ;;  %v7151_v22 = vld [vmem:[#allocation73_spill] sm:$0xff]  ;;  %v1842_v12 = vsel %vm111_vm0, %v7142_v42, %v7154_v62 }
 0xdd4   :  { %v1815_v34 = vmul.f32 %v7149_v61, %v7137_v16  ;;  %v1933_v33 = vsel %vm207_vm3, %v7152_v21, %v7151_v22  ;;  %v1934_v19 = vsel %vm207_vm3, %v7151_v22, %v7153_v54  ;;  %v1964_v16 = vsel %vm239_vm4, %v7156_v63, %v7155_v7  ;;  %v7159_v42 = vld [vmem:[#allocation45_spill] sm:$0xff]  ;;  %v7161_v2 = vld [vmem:[#allocation32_spill] sm:$0xff] }
 0xdd5   :  { %v1817_v40 = vadd.f32 %v1813_v13, %v1794_v58  ;;  %v1878_v36 = vadd.f32 %v1871_v45, %v1847_v37  ;;  %v1818_v31 = vadd.f32 %v1814_v30, %v1795_v6  ;;  %v7158_v13 = vld [vmem:[#allocation39_spill] sm:$0xff]  ;;  %v1996_v20 = vsel %vm271_vm5, %v7159_v42, %v7161_v2  ;;  %v7164_v37 = vld [vmem:[#allocation62_spill] sm:$0xff]  ;;  %v7165_v6 = vld [vmem:[#allocation28_spill] sm:$0xff] }
 0xdd6   :  { %v1819_v29 = vadd.f32 %v1815_v34, %v1796_v46  ;;  %v1873_v23 = vsel %vm143_vm1, %v7146_v60, %v7158_v13  ;;  %v7167_v61 = vld [vmem:[#allocation80_spill] sm:$0xff]  ;;  %v7169_v30 = vld [vmem:[#allocation34_spill] sm:$0xff]  ;;  %v7170_v21 = vld [vmem:[#allocation77_spill] sm:$0xff] }
 0xdd7   :  { %v1848_v57 = vadd.f32 %v1841_v14, %v1817_v40  ;;  %v1909_v58 = vadd.f32 %v1902_v28, %v1878_v36  ;;  %v1849_v4 = vadd.f32 %v1842_v12, %v1818_v31  ;;  %v7160_v14 = vld [vmem:[#allocation27_spill] sm:$0xff]  ;;  %v7162_v40 = vld [vmem:[#allocation76_spill] sm:$0xff]  ;;  %v1935_v28 = vsel %vm207_vm3, %v7153_v54, %v7166_v53 }
 0xdd8   :  { %v1850_v47 = vadd.f32 %v7154_v62, %v1819_v29  ;;  %v1995_v43 = vsel %vm271_vm5, %v7160_v14, %v7159_v42  ;;  %v1904_v52 = vsel %vm175_vm2, %v7148_v9, %v7162_v40  ;;  %v7168_v34 = vld [vmem:[#allocation64_spill] sm:$0xff]  ;;  %v2058_v22 = vsel %vm335_vm7, %v7167_v61, %v7169_v30  ;;  %v7174_v42 = vld [vmem:[#allocation38_spill] sm:$0xff]  ;;  %v7175_v14 = vld [vmem:[#allocation69_spill] sm:$0xff] }
 0xdd9   :  { %v1879_v38 = vadd.f32 %v1872_v17, %v1848_v57  ;;  %v1940_v11 = vadd.f32 %v1933_v33, %v1909_v58  ;;  %v1880_v45 = vadd.f32 %v1873_v23, %v1849_v4  ;;  %v7163_v17 = vld [vmem:[#allocation78_spill] sm:$0xff]  ;;  %v2057_v49 = vsel %vm335_vm7, %v7168_v34, %v7167_v61  ;;  %v7182_v34 = vld [vmem:[#allocation61_spill] sm:$0xff] }
 0xdda   :  { %v5782_v24 = vpop.permute.xlu1 %2233  ;;  %v5822_v39 = vpop.permute.xlu2 %2289  ;;  %v1881_v60 = vadd.f32 %v7158_v13, %v1850_v47  ;;  %v2026_v57 = vsel %vm303_vm6, %v7164_v37, %v7163_v17  ;;  %v2027_v46 = vsel %vm303_vm6, %v7163_v17, %v7165_v6  ;;  %v1966_v33 = vsel %vm239_vm4, %v7157_v5, %v7170_v21  ;;  %v7173_v13 = vld [vmem:[#allocation44_spill] sm:$0xff] }
 0xddb   :  { %v1910_v59 = vadd.f32 %v1903_v26, %v1879_v38  ;;  %v1971_v48 = vadd.f32 %v1964_v16, %v1940_v11  ;;  %v1911_v36 = vadd.f32 %v1904_v52, %v1880_v45  ;;  %v2083_v23 = vmul.f32 %v5432_v35, %v7173_v13 }
 0xddc   :  { %v1912_v38 = vadd.f32 %v7162_v40, %v1881_v60  ;;  %v2084_v11 = vmul.f32 %v5430_v15, %v7173_v13  ;;  %v7178_v60 = vld [vmem:[#allocation81_spill] sm:$0xff] }
 0xddd   :  { %v1941_v18 = vadd.f32 %v1934_v19, %v1910_v59  ;;  %v2002_v9 = vadd.f32 %v1995_v43, %v1971_v48  ;;  %v1942_v12 = vadd.f32 %v1935_v28, %v1911_v36  ;;  %v7171_v59 = vld [vmem:[#allocation56_spill] sm:$0xff]  ;;  %v2111_v43 = vsel %vm111_vm0, %v7175_v14, %v7174_v42  ;;  %v7180_v28 = vld [vmem:[#allocation83_spill] sm:$0xff] }
 0xdde   :  { %v1943_v58 = vadd.f32 %v7166_v53, %v1912_v38  ;;  %v1997_v29 = vsel %vm271_vm5, %v7161_v2, %v7171_v59  ;;  %v2112_v2 = vsel %vm111_vm0, %v7174_v42, %v5586_v1  ;;  %v7179_v53 = vld [vmem:[#allocation86_spill] sm:$0xff] }
 0xddf   :  { %v1972_v56 = vadd.f32 %v1965_v41, %v1941_v18  ;;  %v2033_v19 = vadd.f32 %v2026_v57, %v2002_v9  ;;  %v1973_v63 = vadd.f32 %v1966_v33, %v1942_v12  ;;  %v7172_v41 = vld [vmem:[#allocation71_spill] sm:$0xff]  ;;  %v2173_v9 = vsel %vm175_vm2, %v7180_v28, %v7179_v53  ;;  %v7186_v12 = vld [vmem:[#allocation41_spill] sm:$0xff] }
 0xde0   :  { %v1974_v16 = vadd.f32 %v7170_v21, %v1943_v58  ;;  %v2028_v5 = vsel %vm303_vm6, %v7165_v6, %v7172_v41  ;;  %v7184_v21 = vld [vmem:[#allocation85_spill] sm:$0xff]  ;;  %v2113_v58 = vsel %vm111_vm0, %v5586_v1, %v7186_v12 }
 0xde1   :  { %v2003_v26 = vadd.f32 %v1996_v20, %v1972_v56  ;;  %v2064_v31 = vadd.f32 %v2057_v49, %v2033_v19  ;;  %v2004_v47 = vadd.f32 %v1997_v29, %v1973_v63  ;;  %v7176_v20 = vld [vmem:[#allocation79_spill] sm:$0xff]  ;;  %v2086_v49 = vmul.f32 %v7182_v34, %v7173_v13 }
 0xde2   :  { %v5813_v55 = vpop.permute.xlu1 %2260  ;;  %v5878_v54 = vpop.permute.xlu2 %2293  ;;  %v2005_v4 = vadd.f32 %v7171_v59, %v1974_v16  ;;  %v2059_v40 = vsel %vm335_vm7, %v7169_v30, %v7176_v20  ;;  %v7177_v56 = vld [vmem:[#allocation67_spill] sm:$0xff]  ;;  %v2204_v33 = vsel %vm207_vm3, %v7184_v21, %v5662_v0  ;;  %v2235_v16 = vsel %vm239_vm4, %v5628_v8, %v5739_v25 }
 0xde3   :  { %v2034_v62 = vadd.f32 %v2027_v46, %v2003_v26  ;;  %v2087_v35 = vadd.f32 %v2083_v23, %v2064_v31  ;;  %v2035_v48 = vadd.f32 %v2028_v5, %v2004_v47  ;;  %v2142_v45 = vsel %vm143_vm1, %v5592_v32, %v7177_v56  ;;  %v7181_v26 = vld [vmem:[#allocation82_spill] sm:$0xff]  ;;  %v7183_v30 = vld [vmem:[#allocation31_spill] sm:$0xff]  ;;  %v7187_v5 = vld [vmem:[#allocation84_spill] sm:$0xff] }
 0xde4   :  { %v2036_v15 = vadd.f32 %v7172_v41, %v2005_v4  ;;  %v2143_v17 = vsel %vm143_vm1, %v7177_v56, %v7178_v60  ;;  %v2174_v36 = vsel %vm175_vm2, %v7179_v53, %v7181_v26  ;;  %v7185_v19 = vld [vmem:[#allocation87_spill] sm:$0xff]  ;;  %v2236_v41 = vsel %vm239_vm4, %v5739_v25, %v5684_v3 }
 0xde5   :  { %v2065_v7 = vadd.f32 %v2058_v22, %v2034_v62  ;;  %v2118_v37 = vadd.f32 %v2111_v43, %v2087_v35  ;;  %v2066_v6 = vadd.f32 %v2059_v40, %v2035_v48  ;;  %v2085_v22 = vmul.f32 %v7183_v30, %v7173_v13 }
 0xde6   :  { %v2067_v46 = vadd.f32 %v7176_v20, %v2036_v15  ;;  %v2205_v62 = vsel %vm207_vm3, %v5662_v0, %v7185_v19  ;;  %v2144_v0 = vsel %vm143_vm1, %v7178_v60, %v7187_v5  ;;  %v2266_v47 = vsel %vm271_vm5, %v5724_v51, %v5813_v55  ;;  %v2340_v51 = vld [vmem:[#allocation7 + $0x1] ss:$4 sm:$0xf] }
 0xde7   :  { %v2088_v52 = vadd.f32 %v2084_v11, %v2065_v7  ;;  %v2149_v38 = vadd.f32 %v2142_v45, %v2118_v37  ;;  %v2089_v63 = vadd.f32 %v2085_v22, %v2066_v6  ;;  %v2267_v8 = vsel %vm271_vm5, %v5813_v55, %v5780_v50 }
 0xde8   :  { %v2090_v7 = vadd.f32 %v2086_v49, %v2067_v46  ;;  %v2175_v25 = vsel %vm175_vm2, %v7181_v26, %v5620_v44  ;;  %v2206_v48 = vsel %vm207_vm3, %v7185_v19, %v5698_v27  ;;  %v2342_v60 = vperm.slane %v2340_v51, 0 }
 0xde9   :  { %v2119_v57 = vadd.f32 %v2112_v2, %v2088_v52  ;;  %v2180_v59 = vadd.f32 %v2173_v9, %v2149_v38  ;;  %v2120_v11 = vadd.f32 %v2113_v58, %v2089_v63  ;;  %v2345_v34 = vperm.slane %v2340_v51, 3 }
 0xdea   :  { %v5856_v10 = vpop.permute.xlu1 %2264  ;;  %v2321_v32 = vpop.permute.xlu2 %2320  ;;  %v2121_v1 = vadd.f32 %v7186_v12, %v2090_v7 }
 0xdeb   :  { %v2150_v61 = vadd.f32 %v2143_v17, %v2119_v57  ;;  %v2211_v13 = vadd.f32 %v2204_v33, %v2180_v59  ;;  %v2151_v14 = vadd.f32 %v2144_v0, %v2120_v11  ;;  %v2343_v17 = vperm.slane %v2340_v51, 1 }
 0xdec   :  { %v2152_v43 = vadd.f32 %v7187_v5, %v2121_v1  ;;  %v2268_v9 = vsel %vm271_vm5, %v5780_v50, %v5856_v10  ;;  %v2344_v50 = vperm.slane %v2340_v51, 2 }
 0xded   :  { %v2181_v29 = vadd.f32 %v2174_v36, %v2150_v61  ;;  %v2242_v4 = vadd.f32 %v2235_v16, %v2211_v13  ;;  %v2182_v52 = vadd.f32 %v2175_v25, %v2151_v14 }
 0xdee   :  { %v2183_v55 = vadd.f32 %v5620_v44, %v2152_v43  ;;  %v2420_v43 = vld [vmem:[#allocation4 + $0x8] sm:$0xff] }
 0xdef   :  { %v2212_v23 = vadd.f32 %v2205_v62, %v2181_v29  ;;  %v2273_v40 = vadd.f32 %v2266_v47, %v2242_v4  ;;  %v2213_v6 = vadd.f32 %v2206_v48, %v2182_v52  ;;  %2425 = vst [vmem:[#allocation1 + $0x10] ss:$2 sm:$0xff] %v2420_v43 }
 0xdf1   :  { %v2243_v42 = vadd.f32 %v2236_v41, %v2212_v23 }
 0xdf2   :  { %v2292_v18 = vpop.permute.xlu1 %2291  ;;  %v2325_v45 = vpop.permute.xlu2 %2324 }
 0xdf3   :  { %v2297_v2 = vsel %vm303_vm6, %v5822_v39, %v2292_v18  ;;  %v2298_v20 = vsel %vm303_vm6, %v2292_v18, %v5878_v54  ;;  %v2274_v35 = vadd.f32 %v2267_v8, %v2243_v42  ;;  %v2214_v39 = vadd.f32 %v5698_v27, %v2183_v55 }
 0xdf4   :  { %v2304_v15 = vadd.f32 %v2297_v2, %v2273_v40  ;;  %v2237_v18 = vsel %vm239_vm4, %v5684_v3, %v5782_v24  ;;  %v2419_v2 = vld [vmem:[#allocation4] sm:$0xff] }
 0xdf5   :  { %v2305_v56 = vadd.f32 %v2298_v20, %v2274_v35  ;;  %v2245_v28 = vadd.f32 %v5782_v24, %v2214_v39  ;;  %v2244_v27 = vadd.f32 %v2237_v18, %v2213_v6  ;;  %2423 = vst [vmem:[#allocation1] ss:$2 sm:$0xff] %v2419_v2  ;;  %v2394_v39 = vld [vmem:[%s6665_s7] sm:$0xf]  ;;  %v7189_v6 = vmov 1  }
 0xdf6   :  { %v2429_v51 = vld.sshfl [vmem:[#allocation1 + $0x18] sm:$0xff pattern:$0x75316420] }
 0xdf7   :  { %v2276_v36 = vadd.f32 %v5856_v10, %v2245_v28  ;;  %v2275_v61 = vadd.f32 %v2268_v9, %v2244_v27  ;;  %v2428_v9 = vld.sshfl [vmem:[#allocation1 + $0x10] sm:$0xff pattern:$0x75316420]  ;;  %v7190_v27 = vmov 2  }
 0xdfa   :  { %v2296_v31 = vpop.permute.xlu1 %2295 }
 0xdfb   :  { %v2299_v38 = vsel %vm303_vm6, %v5878_v54, %v2296_v31 }
 0xdfc   :  { %v2306_v49 = vadd.f32 %v2299_v38, %v2275_v61  ;;  %v2427_v28 = vld.sshfl [vmem:[#allocation1 + $0x8] sm:$0xff pattern:$0x75316420] }
 0xe02   :  { %v2323_v37 = vpop.permute.xlu1 %2322 }
 0xe03   :  { %v2328_v57 = vsel %vm335_vm7, %v2321_v32, %v2323_v37  ;;  %v2329_v44 = vsel %vm335_vm7, %v2323_v37, %v2325_v45  ;;  %v2307_v32 = vadd.f32 %v2296_v31, %v2276_v36 }
 0xe04   :  { %v5963_v46 = vadd.f32 %v2328_v57, %v2304_v15  ;;  %v5965_v53 = vadd.f32 %v2329_v44, %v2305_v56  ;;  %v2381_v15 = vld [vmem:[%s6664_s6] sm:$0xf]  ;;  %v7188_v57 = vmov 3  }
 0xe05   :  { %v2426_v44 = vld.sshfl [vmem:[#allocation1] sm:$0xff pattern:$0x75316420] }
 0xe06   :  { %v2350_v26 = vmul.f32 %v2342_v60, %v5963_v46  ;;  %v2351_v3 = vmul.f32 %v2343_v17, %v5965_v53  ;;  %v6000_v17 = vld [vmem:[%s6666_s8] sm:$0xf] }
 0xe08   :  { %v2365_v24 = vmul.f32 %v2350_v26, %v5963_v46  ;;  %v2366_v30 = vmul.f32 %v2351_v3, %v5965_v53  ;;  %v2354_v10 = vsel %vm1174_vm8, %v2350_v26, 0.0  ;;  %v2355_v54 = vsel %vm1174_vm8, %v2351_v3, 0.0 }
 0xe09   :  { %v2356_v29 = vadd.f32 %v2355_v54, %v2354_v10 }
 0xe0a   :  { %v2327_v22 = vpop.permute.xlu1 %2326  ;;  %v2369_v58 = vsel %vm1174_vm8, %v2365_v24, 0.0  ;;  %v2370_v59 = vsel %vm1174_vm8, %v2366_v30, 0.0 }
 0xe0b   :  { %v2330_v21 = vsel %vm335_vm7, %v2325_v45, %v2327_v22  ;;  %v5979_v33 = vadd.f32 %v2327_v22, %v2307_v32  ;;  %v2371_v41 = vadd.f32 %v2370_v59, %v2369_v58 }
 0xe0c   :  { %v5981_v19 = vadd.f32 %v2330_v21, %v2306_v49 }
 0xe0d   :  { %v2353_v62 = vmul.f32 %v2345_v34, %v5979_v33 }
 0xe0e   :  { %v2352_v12 = vmul.f32 %v2344_v50, %v5981_v19 }
 0xe0f   :  { %v2368_v63 = vmul.f32 %v2353_v62, %v5979_v33  ;;  %v2360_v5 = vsel %vm2359_vm15, %v2353_v62, 0.0 }
 0xe10   :  { %v2357_v31 = vsel %vm1174_vm8, %v2352_v12, 0.0  ;;  %v2367_v7 = vmul.f32 %v2352_v12, %v5981_v19 }
 0xe11   :  { %v2358_v16 = vadd.f32 %v2357_v31, %v2356_v29  ;;  %v2374_v1 = vsel %vm2359_vm15, %v2368_v63, 0.0 }
 0xe12   :  { %v2372_v0 = vsel %vm1174_vm8, %v2367_v7, 0.0 }
 0xe13   :  { %v2361_v13 = vadd.f32 %v2360_v5, %v2358_v16  ;;  %v2373_v23 = vadd.f32 %v2372_v0, %v2371_v41 }
 0xe15   :  { %2362 = vadd.xlane.f32.xlu0 %v2361_v13  ;;  %v2375_v11 = vadd.f32 %v2374_v1, %v2373_v23 }
 0xe17   :  { %2376 = vadd.xlane.f32.xlu2 %v2375_v11 }
 0xe29   :  { %2436 = vrot.lane.b32.xlu0 %v2429_v51, %s3923_s14 }
 0xe2f   :  { %2467 = vperm.xlu2 %3780, %v6000_v17  }
 0xe37   :  { %3783 = vset.pattern.permute.xlu2 %v7188_v57  ;;  %v7194_v57 = vmov 6  }
 0xe88   :  { %v2363_v47 = vpop.xlane.xlu0 %2362 }
 0xe89   :  { %v2364_v8 = vmul.f32 0.0034722222, %v2363_v47 }
 0xe8a   :  { %v2377_v25 = vpop.xlane.xlu2 %2376 }
 0xe8b   :  { %v2379_v4 = vmul.f32 %v2364_v8, %v2364_v8  ;;  %v2378_v42 = vmul.f32 0.0034722222, %v2377_v25 }
 0xe8d   :  { %v2380_v14 = vsub.f32 %v2378_v42, %v2379_v4  ;;  %v7191_v42 = vmov 26  }
 0xe8f   :  { %v2382_v20 = vadd.f32 1e-05, %v2380_v14 }
 0xe91   :  { %3820 = vrsqrt.f32 %v2382_v20  ;;  %vm2389_vm10 = vweird.f32 %v2382_v20 }
 0xe97   :  { %v3821_v40 = vpop.eup %3820 }
 0xe98   :  { %v2384_v35 = vmul.f32 %v3821_v40, %v2382_v20  ;;  %vm2390_vm9 = vweird.f32 %v3821_v40 }
 0xe99   :  { %vm2391_vm11 = vmor %vm2389_vm10, %vm2390_vm9 }
 0xe9a   :  { %v2385_v52 = vmul.f32 %v3821_v40, %v2384_v35 }
 0xe9b   :  { %v2437_v30 = vpop.permute.xlu0 %2436 }
 0xe9c   :  { %v2386_v55 = vmul.f32 0.5, %v2385_v52  ;;  %v7192_v52 = vmov 10  }
 0xe9e   :  { %v2387_v48 = vsub.f32 1.5, %v2386_v55  ;;  %v6053_v55 = vpop.permute.xlu2 %2467 }
 0xea0   :  { %v2388_v56 = vmul.f32 %v3821_v40, %v2387_v48 }
 0xea2   :  { %v2392_v45 = vsel %vm2391_vm11, %v3821_v40, %v2388_v56 }
 0xea3   :  { %v2393_v60 = vmul.f32 %v2392_v45, %v2381_v15 }
 0xea5   :  { %2399 = vperm.xlu1 %3779, %v2393_v60   ;;  %v2395_v37 = vmul.f32 %v2393_v60, %v2364_v8 }
 0xea7   :  { %v2396_v18 = vsub.f32 %v2394_v39, %v2395_v37 }
 0xead   :  { %2408 = vperm.xlu1 %3779, %v2396_v18   ;;  %v7193_v18 = vmov 5  }
 0xeb5   :  { %2430 = vrot.lane.b32.xlu1 %v2426_v44, %s3923_s14  ;;  %v7195_v44 = vmov 7  }
 0xeb6   :  { %3781 = vset.pattern.permute.xlu1 %v7189_v6  ;;  %v7196_v6 = vmov 8  }
 0xebd   :  { %2432 = vrot.lane.b32.xlu1 %v2427_v28, %s3923_s14  ;;  %v7197_v28 = vmov 9  }
 0xec5   :  { %2434 = vrot.lane.b32.xlu1 %v2428_v9, %s3923_s14  ;;  %v7198_v9 = vmov 12  }
 0xecd   :  { %2488 = vperm.xlu1 %3781, %v6000_v17  }
 0xed5   :  { %3782 = vset.pattern.permute.xlu1 %v7190_v27 }
 0xf17   :  { %v2400_v26 = vpop.permute.xlu1 %2399 }
 0xf18   :  { %v2405_v38 = vmul.f32 %v2400_v26, %v5979_v33  ;;  %v2403_v34 = vmul.f32 %v2400_v26, %v5965_v53  ;;  %v2404_v49 = vmul.f32 %v2400_v26, %v5981_v19  ;;  %v2402_v22 = vmul.f32 %v2400_v26, %v5963_v46 }
 0xf1f   :  { %v2409_v3 = vpop.permute.xlu1 %2408 }
 0xf20   :  { %v2414_v61 = vadd.f32 %v2409_v3, %v2405_v38  ;;  %v2412_v50 = vadd.f32 %v2409_v3, %v2403_v34  ;;  %v2413_v21 = vadd.f32 %v2409_v3, %v2404_v49  ;;  %v2411_v54 = vadd.f32 %v2409_v3, %v2402_v22 }
 0xf22   :  { %v2418_v24 = vmax.f32 %v2414_v61, 0.0  ;;  %v2416_v62 = vmax.f32 %v2412_v50, 0.0  ;;  %v2417_v12 = vmax.f32 %v2413_v21, 0.0  ;;  %v2415_v19 = vmax.f32 %v2411_v54, 0.0 }
 0xf24   :  { %v2448_v10 = vadd.f32 %v2437_v30, %v2418_v24 }
 0xf26   :  { %v2454_v29 = vrot.slane %v2448_v10, 4 }
 0xf27   :  { %v2431_v36 = vpop.permute.xlu1 %2430 }
 0xf2f   :  { %v2433_v32 = vpop.permute.xlu1 %2432 }
 0xf30   :  { %v2438_v33 = vsel %vm335_vm7, %v2431_v36, %v2433_v32 }
 0xf31   :  { %v2445_v7 = vadd.f32 %v2438_v33, %v2415_v19 }
 0xf37   :  { %v2435_v58 = vpop.permute.xlu1 %2434 }
 0xf38   :  { %v2439_v59 = vsel %vm335_vm7, %v2433_v32, %v2435_v58  ;;  %v2440_v53 = vsel %vm335_vm7, %v2435_v58, %v2437_v30 }
 0xf39   :  { %v2446_v31 = vadd.f32 %v2439_v59, %v2416_v62  ;;  %v2447_v46 = vadd.f32 %v2440_v53, %v2417_v12 }
 0xf3b   :  { %v2453_v63 = vrot.slane %v2446_v31, 4  ;;  %v2456_v16 = vsel %vm1174_vm8, %v2447_v46, %v2454_v29 }
 0xf3c   :  { %2462 = vst.msk [vmem:[#allocation3 + $0x8] sm:$0xff] %vm2461_vm13, %v2456_v16 }
 0xf3d   :  { %v2455_v41 = vsel %vm1174_vm8, %v2445_v7, %v2453_v63 }
 0xf3e   :  { %2459 = vst [vmem:[#allocation3] sm:$0xff] %v2455_v41 }
 0xf3f   :  { %v2489_v0 = vpop.permute.xlu1 %2488 }
 0xf45   :  { %v2463_v5 = vld [vmem:[#allocation3] ss:$4 sm:$0xf] }
 0xf46   :  { %v6023_v13 = vperm.slane %v2463_v5, 0  ;;  %v6025_v23 = vperm.slane %v2463_v5, 2  ;;  %v6027_v1 = vperm.slane %v2463_v5, 3  ;;  %v6035_v25 = vperm.slane %v2463_v5, 1 }
 0xf48   :  { %v2494_v11 = vmul.f32 %v2489_v0, %v6027_v1  ;;  %v2493_v47 = vmul.f32 %v2489_v0, %v6025_v23  ;;  %v2491_v8 = vmul.f32 %v2489_v0, %v6023_v13  ;;  %v2492_v4 = vmul.f32 %v2489_v0, %v6035_v25 }
 0xf49   :  { %v2479_v61 = vmul.f32 %v6023_v13, %v6053_v55 }
 0xf4a   :  { %2505 = vrot.lane.b32.xlu2 %v2494_v11, %s3915_s27  ;;  %2503 = vrot.lane.b32.xlu0 %v2493_v47, %s3915_s27 }
 0xf4b   :  { %2499 = vrot.lane.b32.xlu1 %v2491_v8, %s3915_s27 }
 0xf53   :  { %2501 = vrot.lane.b32.xlu1 %v2492_v4, %s3915_s27 }
 0xf5b   :  { %2519 = vperm.xlu1 %3782, %v6000_v17  }
 0xf63   :  { %3806 = vset.pattern.permute.xlu1 %v7191_v42 }
 0xfa4   :  { %v6055_v48 = vpop.permute.xlu2 %2505 }
 0xfbc   :  { %v6079_v27 = vpop.permute.xlu0 %2503 }
 0xfbd   :  { %v2500_v14 = vpop.permute.xlu1 %2499 }
 0xfc5   :  { %v6041_v43 = vpop.permute.xlu1 %2501 }
 0xfc6   :  { %v2507_v38 = vsel %vm111_vm0, %v2500_v14, %v6041_v43 }
 0xfc7   :  { %v2514_v34 = vadd.f32 %v2507_v38, %v2479_v61  ;;  %v2508_v38 = vsel %vm111_vm0, %v6041_v43, %v6079_v27  ;;  %v2481_v43 = vmul.f32 %v6025_v23, %v6053_v55 }
 0xfcd   :  { %v2520_v2 = vpop.permute.xlu1 %2519 }
 0xfce   :  { %v2524_v20 = vmul.f32 %v2520_v2, %v6025_v23  ;;  %v2523_v51 = vmul.f32 %v2520_v2, %v6035_v25  ;;  %v2522_v40 = vmul.f32 %v2520_v2, %v6023_v13  ;;  %v2525_v35 = vmul.f32 %v2520_v2, %v6027_v1 }
 0xfd0   :  { %2534 = vrot.lane.b32.xlu1 %v2524_v20, %s3914_s2  ;;  %2532 = vrot.lane.b32.xlu2 %v2523_v51, %s3914_s2  ;;  %v7199_v20 = vmov 11  }
 0xfd1   :  { %2530 = vrot.lane.b32.xlu0 %v2522_v40, %s3914_s2 }
 0xfd8   :  { %2550 = vperm.xlu2 %3783, %v6000_v17  }
 0xfd9   :  { %2536 = vrot.lane.b32.xlu0 %v2525_v35, %s3914_s2 }
 0xfe0   :  { %3790 = vset.pattern.permute.xlu2 %v7192_v52 }
0x102a   :  { %v6057_v15 = vpop.permute.xlu2 %2532 }
0x1032   :  { %v2551_v56 = vpop.permute.xlu2 %2550 }
0x1033   :  { %v2555_v45 = vmul.f32 %v2551_v56, %v6025_v23  ;;  %v2553_v60 = vmul.f32 %v2551_v56, %v6023_v13  ;;  %v2554_v37 = vmul.f32 %v2551_v56, %v6035_v25  ;;  %v2556_v39 = vmul.f32 %v2551_v56, %v6027_v1 }
0x1035   :  { %2565 = vrot.lane.b32.xlu2 %v2555_v45, %s3916_s28  ;;  %2561 = vrot.lane.b32.xlu1 %v2553_v60, %s3916_s28 }
0x1036   :  { %2563 = vrot.lane.b32.xlu0 %v2554_v37, %s3916_s28 }
0x103d   :  { %2567 = vrot.lane.b32.xlu1 %v2556_v39, %s3916_s28 }
0x103e   :  { %2581 = vperm.xlu0 %3784, %v6000_v17  }
0x1042   :  { %v6081_v3 = vpop.permute.xlu1 %2534 }
0x1043   :  { %v2531_v26 = vpop.permute.xlu0 %2530 }
0x1044   :  { %v2538_v32 = vsel %vm143_vm1, %v2531_v26, %v6057_v15 }
0x1045   :  { %v2545_v24 = vadd.f32 %v2538_v32, %v2514_v34  ;;  %v2480_v32 = vmul.f32 %v6035_v25, %v6053_v55  ;;  %v2539_v34 = vsel %vm143_vm1, %v6057_v15, %v6081_v3  ;;  %v2509_v15 = vsel %vm111_vm0, %v6079_v27, %v6055_v48 }
0x1046   :  { %3785 = vset.pattern.permute.xlu0 %v7193_v18 }
0x1047   :  { %2612 = vperm.xlu0 %3785, %v6000_v17  }
0x104b   :  { %v6083_v36 = vpop.permute.xlu0 %2536 }
0x104f   :  { %3786 = vset.pattern.permute.xlu0 %v7194_v57 }
0x1050   :  { %2643 = vperm.xlu0 %3786, %v6000_v17  }
0x1058   :  { %3787 = vset.pattern.permute.xlu0 %v7195_v44 }
0x1059   :  { %2674 = vperm.xlu0 %3787, %v6000_v17  }
0x1061   :  { %3788 = vset.pattern.permute.xlu0 %v7196_v6 }
0x1062   :  { %2705 = vperm.xlu0 %3788, %v6000_v17  }
0x106a   :  { %3789 = vset.pattern.permute.xlu0 %v7197_v28 }
0x106b   :  { %2738 = vperm.xlu0 %3789, %v6000_v17  }
0x1073   :  { %3792 = vset.pattern.permute.xlu0 %v7198_v9 }
0x108f   :  { %v2566_v2 = vpop.permute.xlu2 %2565 }
0x10a7   :  { %v2562_v49 = vpop.permute.xlu1 %2561 }
0x10a8   :  { %v6091_v30 = vpop.permute.xlu0 %2563 }
0x10a9   :  { %v2569_v22 = vsel %vm175_vm2, %v2562_v49, %v6091_v30  ;;  %v2515_v49 = vadd.f32 %v2508_v38, %v2480_v32 }
0x10aa   :  { %v6095_v50 = vadd.f32 %v2569_v22, %v2545_v24  ;;  %v2736_v24 = vld [vmem:[#allocation3 + $0x1] ss:$4 sm:$0xf]  ;;  %v2570_v22 = vsel %vm175_vm2, %v6091_v30, %v2566_v2 }
0x10b0   :  { %v2582_v21 = vpop.permute.xlu0 %2581 }
0x10b1   :  { %v2584_v10 = vmul.f32 %v2582_v21, %v6023_v13  ;;  %v2585_v54 = vmul.f32 %v2582_v21, %v6035_v25  ;;  %v2586_v62 = vmul.f32 %v2582_v21, %v6025_v23  ;;  %v2587_v12 = vmul.f32 %v2582_v21, %v6027_v1 }
0x10b2   :  { %v2546_v21 = vadd.f32 %v2539_v34, %v2515_v49 }
0x10b3   :  { %2594 = vrot.lane.b32.xlu1 %v2585_v54, %s3917_s29  ;;  %2592 = vrot.lane.b32.xlu2 %v2584_v10, %s3917_s29 }
0x10b9   :  { %v2613_v58 = vpop.permute.xlu0 %2612 }
0x10ba   :  { %v2616_v33 = vmul.f32 %v2613_v58, %v6035_v25  ;;  %v2615_v59 = vmul.f32 %v2613_v58, %v6023_v13  ;;  %v2618_v53 = vmul.f32 %v2613_v58, %v6027_v1  ;;  %v2617_v29 = vmul.f32 %v2613_v58, %v6025_v23 }
0x10bb   :  { %2598 = vrot.lane.b32.xlu1 %v2587_v12, %s3917_s29  ;;  %2596 = vrot.lane.b32.xlu2 %v2586_v62, %s3917_s29  ;;  %v2577_v62 = vadd.f32 %v2570_v22, %v2546_v21  ;;  %v6161_v12 = vperm.slane %v2736_v24, 0  ;;  %v7200_v22 = vmov 19  }
0x10c2   :  { %v2644_v19 = vpop.permute.xlu0 %2643 }
0x10c3   :  { %2625 = vrot.lane.b32.xlu1 %v2616_v33, %s3918_s30  ;;  %2623 = vrot.lane.b32.xlu2 %v2615_v59, %s3918_s30  ;;  %v2647_v31 = vmul.f32 %v2644_v19, %v6035_v25  ;;  %v2646_v46 = vmul.f32 %v2644_v19, %v6023_v13  ;;  %v2649_v7 = vmul.f32 %v2644_v19, %v6027_v1  ;;  %v6172_v59 = vperm.slane %v2736_v24, 3 }
0x10c4   :  { %v2648_v63 = vmul.f32 %v2644_v19, %v6025_v23 }
0x10cb   :  { %2629 = vrot.lane.b32.xlu1 %v2618_v53, %s3918_s30  ;;  %2627 = vrot.lane.b32.xlu2 %v2617_v29, %s3918_s30  ;;  %v2675_v16 = vpop.permute.xlu0 %2674 }
0x10cc   :  { %v2678_v41 = vmul.f32 %v2675_v16, %v6035_v25  ;;  %v2677_v5 = vmul.f32 %v2675_v16, %v6023_v13  ;;  %v2680_v0 = vmul.f32 %v2675_v16, %v6027_v1  ;;  %v2679_v11 = vmul.f32 %v2675_v16, %v6025_v23 }
0x10cd   :  { %v2516_v16 = vadd.f32 %v2509_v15, %v2481_v43 }
0x10d3   :  { %2656 = vrot.lane.b32.xlu1 %v2647_v31, %s3920_s12  ;;  %2654 = vrot.lane.b32.xlu2 %v2646_v46, %s3920_s12  ;;  %v2540_v46 = vsel %vm143_vm1, %v6081_v3, %v6083_v36 }
0x10d4   :  { %v2706_v47 = vpop.permute.xlu0 %2705 }
0x10d5   :  { %v2709_v8 = vmul.f32 %v2706_v47, %v6035_v25  ;;  %v2708_v4 = vmul.f32 %v2706_v47, %v6023_v13  ;;  %v2711_v42 = vmul.f32 %v2706_v47, %v6027_v1  ;;  %v2710_v14 = vmul.f32 %v2706_v47, %v6025_v23  ;;  %v6139_v13 = vpop.permute.xlu1 %2567 }
0x10d6   :  { %v6163_v25 = vperm.slane %v2736_v24, 1 }
0x10db   :  { %2660 = vrot.lane.b32.xlu1 %v2649_v7, %s3920_s12  ;;  %2658 = vrot.lane.b32.xlu2 %v2648_v63, %s3920_s12 }
0x10e3   :  { %2687 = vrot.lane.b32.xlu1 %v2678_v41, %s3922_s13  ;;  %2685 = vrot.lane.b32.xlu2 %v2677_v5, %s3922_s13 }
0x10eb   :  { %2691 = vrot.lane.b32.xlu1 %v2680_v0, %s3922_s13  ;;  %2689 = vrot.lane.b32.xlu2 %v2679_v11, %s3922_s13  ;;  %v2547_v11 = vadd.f32 %v2540_v46, %v2516_v16  ;;  %v7204_v16 = vmov 16  }
0x10f3   :  { %2718 = vrot.lane.b32.xlu1 %v2709_v8, %s3923_s14  ;;  %2716 = vrot.lane.b32.xlu2 %v2708_v4, %s3923_s14 }
0x10fb   :  { %2722 = vrot.lane.b32.xlu1 %v2711_v42, %s3923_s14  ;;  %2720 = vrot.lane.b32.xlu2 %v2710_v14, %s3923_s14  ;;  %v6192_v14 = vperm.slane %v2736_v24, 2 }
0x1103   :  { %2759 = vperm.xlu2 %3790, %v6000_v17  }
0x110b   :  { %3791 = vset.pattern.permute.xlu2 %v7199_v20 }
0x110d   :  { %v2593_v51 = vpop.permute.xlu2 %2592 }
0x1115   :  { %v2597_v40 = vpop.permute.xlu2 %2596 }
0x111d   :  { %v2624_v35 = vpop.permute.xlu2 %2623 }
0x1125   :  { %v2595_v52 = vpop.permute.xlu1 %2594  ;;  %v2628_v56 = vpop.permute.xlu2 %2627 }
0x1126   :  { %v2600_v10 = vsel %vm207_vm3, %v2593_v51, %v2595_v52  ;;  %v2601_v54 = vsel %vm207_vm3, %v2595_v52, %v2597_v40 }
0x1127   :  { %v2607_v23 = vadd.f32 %v2600_v10, %v6095_v50  ;;  %v2608_v29 = vadd.f32 %v2601_v54, %v2577_v62  ;;  %v2571_v50 = vsel %vm175_vm2, %v2566_v2, %v6139_v13 }
0x1128   :  { %v2578_v42 = vadd.f32 %v2571_v50, %v2547_v11  ;;  %v7207_v50 = vmov 21  }
0x112d   :  { %v6141_v45 = vpop.permute.xlu1 %2598  ;;  %v2655_v60 = vpop.permute.xlu2 %2654 }
0x112e   :  { %v2602_v4 = vsel %vm207_vm3, %v2597_v40, %v6141_v45 }
0x1135   :  { %v2626_v37 = vpop.permute.xlu1 %2625  ;;  %v2659_v39 = vpop.permute.xlu2 %2658 }
0x1136   :  { %v2631_v30 = vsel %vm239_vm4, %v2624_v35, %v2626_v37  ;;  %v2632_v33 = vsel %vm239_vm4, %v2626_v37, %v2628_v56  ;;  %v2609_v37 = vadd.f32 %v2602_v4, %v2578_v42 }
0x1137   :  { %v2638_v41 = vadd.f32 %v2631_v30, %v2607_v23  ;;  %v2639_v5 = vadd.f32 %v2632_v33, %v2608_v29  ;;  %v7201_v23 = vmov 13  }
0x113d   :  { %v6143_v18 = vpop.permute.xlu1 %2629  ;;  %v2686_v57 = vpop.permute.xlu2 %2685 }
0x113e   :  { %v2633_v2 = vsel %vm239_vm4, %v2628_v56, %v6143_v18 }
0x113f   :  { %v2640_v38 = vadd.f32 %v2633_v2, %v2609_v37 }
0x1145   :  { %v2657_v44 = vpop.permute.xlu1 %2656  ;;  %v2690_v6 = vpop.permute.xlu2 %2689 }
0x1146   :  { %v2662_v27 = vsel %vm271_vm5, %v2655_v60, %v2657_v44  ;;  %v2663_v7 = vsel %vm271_vm5, %v2657_v44, %v2659_v39 }
0x1147   :  { %v2669_v47 = vadd.f32 %v2662_v27, %v2638_v41  ;;  %v2670_v8 = vadd.f32 %v2663_v7, %v2639_v5  ;;  %v7202_v7 = vmov 14   ;;  %v7205_v41 = vmov 17  }
0x1148   :  { %v7206_v5 = vmov 18  }
0x114d   :  { %v6145_v28 = vpop.permute.xlu1 %2660  ;;  %v2717_v9 = vpop.permute.xlu2 %2716 }
0x114e   :  { %v2664_v40 = vsel %vm271_vm5, %v2659_v39, %v6145_v28 }
0x114f   :  { %v2671_v32 = vadd.f32 %v2664_v40, %v2640_v38 }
0x1155   :  { %v2688_v26 = vpop.permute.xlu1 %2687  ;;  %v2721_v61 = vpop.permute.xlu2 %2720 }
0x1156   :  { %v2693_v0 = vsel %vm303_vm6, %v2686_v57, %v2688_v26  ;;  %v2694_v3 = vsel %vm303_vm6, %v2688_v26, %v2690_v6 }
0x1157   :  { %v2700_v20 = vadd.f32 %v2693_v0, %v2669_v47  ;;  %v2701_v51 = vadd.f32 %v2694_v3, %v2670_v8 }
0x115d   :  { %v6165_v58 = vpop.permute.xlu1 %2691  ;;  %v2760_v53 = vpop.permute.xlu2 %2759 }
0x115e   :  { %v2762_v19 = vmul.f32 %v2760_v53, %v6161_v12  ;;  %v2763_v31 = vmul.f32 %v2760_v53, %v6163_v25  ;;  %v2765_v63 = vmul.f32 %v2760_v53, %v6172_v59  ;;  %v2764_v57 = vmul.f32 %v2760_v53, %v6192_v14 }
0x115f   :  { %v2695_v56 = vsel %vm303_vm6, %v2690_v6, %v6165_v58 }
0x1160   :  { %2772 = vrot.lane.b32.xlu2 %v2763_v31, %s3915_s27  ;;  %2770 = vrot.lane.b32.xlu1 %v2762_v19, %s3915_s27 }
0x1161   :  { %2776 = vrot.lane.b32.xlu0 %v2765_v63, %s3915_s27  ;;  %v7203_v63 = vmov 15  }
0x1165   :  { %v2719_v35 = vpop.permute.xlu1 %2718 }
0x1166   :  { %v2724_v52 = vsel %vm335_vm7, %v2717_v9, %v2719_v35  ;;  %v2725_v60 = vsel %vm335_vm7, %v2719_v35, %v2721_v61  ;;  %v2702_v9 = vadd.f32 %v2695_v56, %v2671_v32 }
0x1167   :  { %v2731_v44 = vadd.f32 %v2724_v52, %v2700_v20  ;;  %v2732_v26 = vadd.f32 %v2725_v60, %v2701_v51 }
0x1168   :  { %2790 = vperm.xlu2 %3791, %v6000_v17   ;;  %2774 = vrot.lane.b32.xlu1 %v2764_v57, %s3915_s27 }
0x116d   :  { %v6205_v34 = vpop.permute.xlu1 %2722 }
0x116e   :  { %v2726_v49 = vsel %vm335_vm7, %v2721_v61, %v6205_v34  ;;  %v6219_v61 = vpop.permute.xlu0 %2738 }
0x116f   :  { %v6209_v24 = vadd.f32 %v2726_v49, %v2702_v9  ;;  %v2750_v62 = vmul.f32 %v6161_v12, %v6219_v61  ;;  %v2751_v29 = vmul.f32 %v6163_v25, %v6219_v61 }
0x1170   :  { %3799 = vset.pattern.permute.xlu2 %v7200_v22 }
0x1171   :  { %v2754_v30 = vadd.f32 %v2750_v62, %v2731_v44  ;;  %v2755_v31 = vadd.f32 %v2751_v29, %v2732_v26 }
0x11ba   :  { %v2773_v39 = vpop.permute.xlu2 %2772 }
0x11c2   :  { %v2791_v21 = vpop.permute.xlu2 %2790 }
0x11c3   :  { %v2793_v10 = vmul.f32 %v2791_v21, %v6161_v12  ;;  %v2794_v54 = vmul.f32 %v2791_v21, %v6163_v25  ;;  %v2795_v43 = vmul.f32 %v2791_v21, %v6192_v14  ;;  %v2796_v6 = vmul.f32 %v2791_v21, %v6172_v59 }
0x11c5   :  { %2805 = vrot.lane.b32.xlu2 %v2795_v43, %s3914_s2  ;;  %2803 = vrot.lane.b32.xlu0 %v2794_v54, %s3914_s2 }
0x11c6   :  { %2801 = vrot.lane.b32.xlu1 %v2793_v10, %s3914_s2 }
0x11cd   :  { %2821 = vperm.xlu0 %3792, %v6000_v17  }
0x11ce   :  { %2807 = vrot.lane.b32.xlu1 %v2796_v6, %s3914_s2 }
0x11d2   :  { %v2771_v15 = vpop.permute.xlu1 %2770 }
0x11d3   :  { %v2778_v33 = vsel %vm111_vm0, %v2771_v15, %v2773_v39  ;;  %v6245_v0 = vpop.permute.xlu0 %2776 }
0x11d4   :  { %v2785_v53 = vadd.f32 %v2778_v33, %v2754_v30 }
0x11d5   :  { %3793 = vset.pattern.permute.xlu0 %v7201_v23 }
0x11d6   :  { %2852 = vperm.xlu0 %3793, %v6000_v17  }
0x11da   :  { %v6230_v19 = vpop.permute.xlu1 %2774 }
0x11db   :  { %v2779_v46 = vsel %vm111_vm0, %v2773_v39, %v6230_v19 }
0x11dc   :  { %v2786_v27 = vadd.f32 %v2779_v46, %v2755_v31 }
0x11de   :  { %3794 = vset.pattern.permute.xlu0 %v7202_v7 }
0x11df   :  { %2883 = vperm.xlu0 %3794, %v6000_v17  }
0x11e7   :  { %3795 = vset.pattern.permute.xlu0 %v7203_v63 }
0x11e8   :  { %2914 = vperm.xlu0 %3795, %v6000_v17  }
0x11f0   :  { %3796 = vset.pattern.permute.xlu0 %v7204_v16 }
0x11f1   :  { %2945 = vperm.xlu0 %3796, %v6000_v17  }
0x11f9   :  { %3797 = vset.pattern.permute.xlu0 %v7205_v41  ;;  %v7208_v41 = vmov 20  }
0x11fa   :  { %2976 = vperm.xlu0 %3797, %v6000_v17  }
0x1202   :  { %3798 = vset.pattern.permute.xlu0 %v7206_v5 }
0x1203   :  { %3009 = vperm.xlu0 %3798, %v6000_v17  }
0x120b   :  { %3801 = vset.pattern.permute.xlu0 %v7207_v50 }
0x121f   :  { %v6247_v3 = vpop.permute.xlu2 %2805 }
0x1237   :  { %v2804_v11 = vpop.permute.xlu0 %2803 }
0x1238   :  { %v2802_v47 = vpop.permute.xlu1 %2801  ;;  %v2810_v8 = vsel %vm143_vm1, %v2804_v11, %v6247_v3 }
0x1239   :  { %v2809_v4 = vsel %vm143_vm1, %v2802_v47, %v2804_v11  ;;  %v6252_v42 = vadd.f32 %v2810_v8, %v2786_v27  ;;  %v2482_v27 = vmul.f32 %v6027_v1, %v6053_v55 }
0x123a   :  { %v6254_v20 = vadd.f32 %v2809_v4, %v2785_v53  ;;  %v2752_v4 = vmul.f32 %v6192_v14, %v6219_v61 }
0x123f   :  { %v2822_v51 = vpop.permute.xlu0 %2821 }
0x1240   :  { %v2824_v35 = vmul.f32 %v2822_v51, %v6161_v12  ;;  %v2825_v2 = vmul.f32 %v2822_v51, %v6163_v25  ;;  %v2826_v52 = vmul.f32 %v2822_v51, %v6192_v14  ;;  %v2827_v60 = vmul.f32 %v2822_v51, %v6172_v59  ;;  %v2808_v5 = vpop.permute.xlu1 %2807 }
0x1242   :  { %2834 = vrot.lane.b32.xlu1 %v2825_v2, %s3916_s28  ;;  %2832 = vrot.lane.b32.xlu2 %v2824_v35, %s3916_s28  ;;  %v2811_v35 = vsel %vm143_vm1, %v6247_v3, %v2808_v5 }
0x1248   :  { %v2853_v37 = vpop.permute.xlu0 %2852 }
0x1249   :  { %v2856_v57 = vmul.f32 %v2853_v37, %v6163_v25  ;;  %v2855_v44 = vmul.f32 %v2853_v37, %v6161_v12  ;;  %v2858_v26 = vmul.f32 %v2853_v37, %v6172_v59  ;;  %v2857_v40 = vmul.f32 %v2853_v37, %v6192_v14 }
0x124a   :  { %2838 = vrot.lane.b32.xlu1 %v2827_v60, %s3916_s28  ;;  %2836 = vrot.lane.b32.xlu2 %v2826_v52, %s3916_s28 }
0x1251   :  { %v2884_v38 = vpop.permute.xlu0 %2883 }
0x1252   :  { %2865 = vrot.lane.b32.xlu1 %v2856_v57, %s3917_s29  ;;  %2863 = vrot.lane.b32.xlu2 %v2855_v44, %s3917_s29  ;;  %v2887_v56 = vmul.f32 %v2884_v38, %v6163_v25  ;;  %v2886_v32 = vmul.f32 %v2884_v38, %v6161_v12  ;;  %v2889_v9 = vmul.f32 %v2884_v38, %v6172_v59 }
0x1253   :  { %v2888_v49 = vmul.f32 %v2884_v38, %v6192_v14 }
0x125a   :  { %2869 = vrot.lane.b32.xlu1 %v2858_v26, %s3917_s29  ;;  %2867 = vrot.lane.b32.xlu2 %v2857_v40, %s3917_s29  ;;  %v2915_v22 = vpop.permute.xlu0 %2914 }
0x125b   :  { %v2918_v39 = vmul.f32 %v2915_v22, %v6163_v25  ;;  %v2917_v21 = vmul.f32 %v2915_v22, %v6161_v12  ;;  %v2920_v10 = vmul.f32 %v2915_v22, %v6172_v59  ;;  %v2919_v54 = vmul.f32 %v2915_v22, %v6192_v14 }
0x1262   :  { %2896 = vrot.lane.b32.xlu1 %v2887_v56, %s3918_s30  ;;  %2894 = vrot.lane.b32.xlu2 %v2886_v32, %s3918_s30 }
0x1263   :  { %v2946_v43 = vpop.permute.xlu0 %2945 }
0x1264   :  { %v2949_v6 = vmul.f32 %v2946_v43, %v6163_v25  ;;  %v2948_v62 = vmul.f32 %v2946_v43, %v6161_v12  ;;  %v2951_v15 = vmul.f32 %v2946_v43, %v6172_v59  ;;  %v2950_v30 = vmul.f32 %v2946_v43, %v6192_v14 }
0x126a   :  { %2900 = vrot.lane.b32.xlu1 %v2889_v9, %s3918_s30  ;;  %2898 = vrot.lane.b32.xlu2 %v2888_v49, %s3918_s30 }
0x126c   :  { %v2977_v33 = vpop.permute.xlu0 %2976 }
0x126d   :  { %v2980_v53 = vmul.f32 %v2977_v33, %v6163_v25  ;;  %v2979_v23 = vmul.f32 %v2977_v33, %v6161_v12  ;;  %v2982_v29 = vmul.f32 %v2977_v33, %v6172_v59  ;;  %v2981_v31 = vmul.f32 %v2977_v33, %v6192_v14 }
0x126e   :  { %v2517_v12 = vadd.f32 %v6055_v48, %v2482_v27  ;;  %v2753_v48 = vmul.f32 %v6172_v59, %v6219_v61 }
0x1270   :  { %v2548_v7 = vadd.f32 %v6083_v36, %v2517_v12 }
0x1272   :  { %2927 = vrot.lane.b32.xlu1 %v2918_v39, %s3920_s12  ;;  %2925 = vrot.lane.b32.xlu2 %v2917_v21, %s3920_s12  ;;  %v2579_v63 = vadd.f32 %v6139_v13, %v2548_v7 }
0x1274   :  { %v2610_v16 = vadd.f32 %v6141_v45, %v2579_v63 }
0x1276   :  { %v2641_v50 = vadd.f32 %v6143_v18, %v2610_v16 }
0x1278   :  { %v2672_v47 = vadd.f32 %v6145_v28, %v2641_v50 }
0x127a   :  { %2931 = vrot.lane.b32.xlu1 %v2920_v10, %s3920_s12  ;;  %2929 = vrot.lane.b32.xlu2 %v2919_v54, %s3920_s12  ;;  %v2703_v1 = vadd.f32 %v6165_v58, %v2672_v47  ;;  %v2780_v58 = vsel %vm111_vm0, %v6230_v19, %v6245_v0  ;;  %v3007_v47 = vld [vmem:[#allocation3 + $0x2] ss:$4 sm:$0xf] }
0x127c   :  { %v2734_v55 = vadd.f32 %v6205_v34, %v2703_v1  ;;  %v2756_v34 = vadd.f32 %v2752_v4, %v6209_v24  ;;  %v6343_v1 = vperm.slane %v3007_v47, 0 }
0x127e   :  { %v2757_v51 = vadd.f32 %v2753_v48, %v2734_v55  ;;  %v2787_v2 = vadd.f32 %v2780_v58, %v2756_v34  ;;  %v6345_v55 = vperm.slane %v3007_v47, 1  ;;  %v6358_v58 = vperm.slane %v3007_v47, 2 }
0x1280   :  { %v2788_v59 = vadd.f32 %v6245_v0, %v2757_v51  ;;  %v2818_v60 = vadd.f32 %v2811_v35, %v2787_v2 }
0x1282   :  { %2958 = vrot.lane.b32.xlu1 %v2949_v6, %s3922_s13  ;;  %2956 = vrot.lane.b32.xlu2 %v2948_v62, %s3922_s13  ;;  %v2819_v52 = vadd.f32 %v2808_v5, %v2788_v59 }
0x128a   :  { %2962 = vrot.lane.b32.xlu1 %v2951_v15, %s3922_s13  ;;  %2960 = vrot.lane.b32.xlu2 %v2950_v30, %s3922_s13 }
0x1292   :  { %2989 = vrot.lane.b32.xlu1 %v2980_v53, %s3923_s14  ;;  %2987 = vrot.lane.b32.xlu2 %v2979_v23, %s3923_s14 }
0x129a   :  { %2993 = vrot.lane.b32.xlu1 %v2982_v29, %s3923_s14  ;;  %2991 = vrot.lane.b32.xlu2 %v2981_v31, %s3923_s14 }
0x129c   :  { %v2833_v46 = vpop.permute.xlu2 %2832 }
0x12a2   :  { %3030 = vperm.xlu2 %3799, %v6000_v17  }
0x12a4   :  { %v2837_v25 = vpop.permute.xlu2 %2836 }
0x12aa   :  { %3800 = vset.pattern.permute.xlu2 %v7208_v41 }
0x12ac   :  { %v2864_v11 = vpop.permute.xlu2 %2863 }
0x12b4   :  { %v2835_v8 = vpop.permute.xlu1 %2834  ;;  %v2868_v45 = vpop.permute.xlu2 %2867 }
0x12b5   :  { %v2840_v36 = vsel %vm175_vm2, %v2833_v46, %v2835_v8  ;;  %v2841_v13 = vsel %vm175_vm2, %v2835_v8, %v2837_v25 }
0x12b6   :  { %v2847_v18 = vadd.f32 %v2840_v36, %v6254_v20  ;;  %v2848_v28 = vadd.f32 %v2841_v13, %v6252_v42  ;;  %v6350_v13 = vperm.slane %v3007_v47, 3 }
0x12bc   :  { %v2839_v14 = vpop.permute.xlu1 %2838  ;;  %v2895_v42 = vpop.permute.xlu2 %2894 }
0x12bd   :  { %v2842_v61 = vsel %vm175_vm2, %v2837_v25, %v2839_v14  ;;  %v2850_v20 = vadd.f32 %v2839_v14, %v2819_v52 }
0x12be   :  { %v2849_v37 = vadd.f32 %v2842_v61, %v2818_v60 }
0x12c4   :  { %v2866_v57 = vpop.permute.xlu1 %2865  ;;  %v2899_v24 = vpop.permute.xlu2 %2898 }
0x12c5   :  { %v2871_v44 = vsel %vm207_vm3, %v2864_v11, %v2866_v57  ;;  %v2872_v19 = vsel %vm207_vm3, %v2866_v57, %v2868_v45 }
0x12c6   :  { %v2878_v26 = vadd.f32 %v2871_v44, %v2847_v18  ;;  %v2879_v0 = vadd.f32 %v2872_v19, %v2848_v28 }
0x12cc   :  { %v2870_v40 = vpop.permute.xlu1 %2869  ;;  %v2926_v56 = vpop.permute.xlu2 %2925 }
0x12cd   :  { %v2873_v3 = vsel %vm207_vm3, %v2868_v45, %v2870_v40  ;;  %v2881_v38 = vadd.f32 %v2870_v40, %v2850_v20 }
0x12ce   :  { %v2880_v32 = vadd.f32 %v2873_v3, %v2849_v37 }
0x12d4   :  { %v2897_v9 = vpop.permute.xlu1 %2896  ;;  %v2930_v39 = vpop.permute.xlu2 %2929 }
0x12d5   :  { %v2902_v49 = vsel %vm239_vm4, %v2895_v42, %v2897_v9  ;;  %v2903_v22 = vsel %vm239_vm4, %v2897_v9, %v2899_v24  ;;  %v7209_v42 = vmov 25   ;;  %v7210_v9 = vmov 22  }
0x12d6   :  { %v2909_v21 = vadd.f32 %v2902_v49, %v2878_v26  ;;  %v2910_v10 = vadd.f32 %v2903_v22, %v2879_v0  ;;  %v6379_v0 = vpop.permute.xlu0 %3009 }
0x12d7   :  { %v3021_v40 = vmul.f32 %v6343_v1, %v6379_v0  ;;  %v3022_v49 = vmul.f32 %v6345_v55, %v6379_v0 }
0x12dc   :  { %v2901_v54 = vpop.permute.xlu1 %2900  ;;  %v2957_v62 = vpop.permute.xlu2 %2956 }
0x12dd   :  { %v2904_v43 = vsel %vm239_vm4, %v2899_v24, %v2901_v54  ;;  %v2912_v6 = vadd.f32 %v2901_v54, %v2881_v38  ;;  %v7211_v54 = vmov 23  }
0x12de   :  { %v2911_v15 = vadd.f32 %v2904_v43, %v2880_v32  ;;  %v7212_v43 = vmov 24  }
0x12e4   :  { %v2928_v30 = vpop.permute.xlu1 %2927  ;;  %v2961_v23 = vpop.permute.xlu2 %2960 }
0x12e5   :  { %v2933_v33 = vsel %vm271_vm5, %v2926_v56, %v2928_v30  ;;  %v2934_v53 = vsel %vm271_vm5, %v2928_v30, %v2930_v39 }
0x12e6   :  { %v2940_v29 = vadd.f32 %v2933_v33, %v2909_v21  ;;  %v2941_v31 = vadd.f32 %v2934_v53, %v2910_v10 }
0x12ec   :  { %v2932_v46 = vpop.permute.xlu1 %2931  ;;  %v2988_v12 = vpop.permute.xlu2 %2987 }
0x12ed   :  { %v2935_v27 = vsel %vm271_vm5, %v2930_v39, %v2932_v46  ;;  %v2943_v25 = vadd.f32 %v2932_v46, %v2912_v6  ;;  %v7213_v6 = vmov 28  }
0x12ee   :  { %v2942_v7 = vadd.f32 %v2935_v27, %v2911_v15  ;;  %v7215_v15 = vmov 0  }
0x12f4   :  { %v2959_v63 = vpop.permute.xlu1 %2958  ;;  %v2992_v5 = vpop.permute.xlu2 %2991 }
0x12f5   :  { %v2964_v16 = vsel %vm303_vm6, %v2957_v62, %v2959_v63  ;;  %v2965_v41 = vsel %vm303_vm6, %v2959_v63, %v2961_v23  ;;  %v7214_v62 = vmov 33  }
0x12f6   :  { %v2971_v50 = vadd.f32 %v2964_v16, %v2940_v29  ;;  %v2972_v11 = vadd.f32 %v2965_v41, %v2941_v31 }
0x12fc   :  { %v2963_v8 = vpop.permute.xlu1 %2962  ;;  %v3031_v45 = vpop.permute.xlu2 %3030 }
0x12fd   :  { %v2966_v48 = vsel %vm303_vm6, %v2961_v23, %v2963_v8  ;;  %v6348_v36 = vadd.f32 %v2963_v8, %v2943_v25  ;;  %v3033_v18 = vmul.f32 %v3031_v45, %v6343_v1  ;;  %v3034_v28 = vmul.f32 %v3031_v45, %v6345_v55 }
0x12fe   :  { %v2973_v4 = vadd.f32 %v2966_v48, %v2942_v7  ;;  %v3036_v51 = vmul.f32 %v3031_v45, %v6350_v13  ;;  %v3035_v2 = vmul.f32 %v3031_v45, %v6358_v58 }
0x12ff   :  { %3043 = vrot.lane.b32.xlu2 %v3034_v28, %s3915_s27  ;;  %3041 = vrot.lane.b32.xlu1 %v3033_v18, %s3915_s27 }
0x1300   :  { %3047 = vrot.lane.b32.xlu0 %v3036_v51, %s3915_s27 }
0x1304   :  { %v2990_v34 = vpop.permute.xlu1 %2989 }
0x1305   :  { %v2995_v59 = vsel %vm335_vm7, %v2988_v12, %v2990_v34  ;;  %v2996_v35 = vsel %vm335_vm7, %v2990_v34, %v2992_v5  ;;  %v6445_v34 = vld [vmem:[%s6666_s8] sm:$0xf] }
0x1306   :  { %v3002_v52 = vadd.f32 %v2995_v59, %v2971_v50  ;;  %v3003_v60 = vadd.f32 %v2996_v35, %v2972_v11  ;;  %v7216_v59 = vmov 30   ;;  %v7217_v35 = vmov 29  }
0x1307   :  { %3061 = vperm.xlu2 %3800, %v6000_v17   ;;  %3045 = vrot.lane.b32.xlu1 %v3035_v2, %s3915_s27  ;;  %v7218_v2 = vmov 32  }
0x1308   :  { %v3025_v38 = vadd.f32 %v3021_v40, %v3002_v52  ;;  %v3026_v39 = vadd.f32 %v3022_v49, %v3003_v60  ;;  %v7219_v52 = vmov 31   ;;  %v7220_v60 = vmov 35  }
0x1309   :  { %v3023_v49 = vmul.f32 %v6358_v58, %v6379_v0 }
0x130c   :  { %v6365_v14 = vpop.permute.xlu1 %2993 }
0x130d   :  { %v2997_v61 = vsel %vm335_vm7, %v2992_v5, %v6365_v14  ;;  %v3005_v40 = vadd.f32 %v6365_v14, %v6348_v36 }
0x130e   :  { %v6369_v20 = vadd.f32 %v2997_v61, %v2973_v4  ;;  %v7221_v61 = vmov 34  }
0x130f   :  { %3805 = vset.pattern.permute.xlu2 %v7209_v42 }
0x1310   :  { %v3027_v14 = vadd.f32 %v3023_v49, %v6369_v20 }
0x1359   :  { %v3044_v37 = vpop.permute.xlu2 %3043 }
0x1361   :  { %v3062_v57 = vpop.permute.xlu2 %3061 }
0x1362   :  { %v3064_v44 = vmul.f32 %v3062_v57, %v6343_v1  ;;  %v3065_v19 = vmul.f32 %v3062_v57, %v6345_v55  ;;  %v3066_v24 = vmul.f32 %v3062_v57, %v6358_v58  ;;  %v3067_v26 = vmul.f32 %v3062_v57, %v6350_v13 }
0x1364   :  { %3076 = vrot.lane.b32.xlu2 %v3066_v24, %s3914_s2  ;;  %3074 = vrot.lane.b32.xlu0 %v3065_v19, %s3914_s2 }
0x1365   :  { %3072 = vrot.lane.b32.xlu1 %v3064_v44, %s3914_s2  ;;  %v7222_v44 = vmov 27  }
0x136c   :  { %3092 = vperm.xlu0 %3801, %v6000_v17  }
0x136d   :  { %3078 = vrot.lane.b32.xlu1 %v3067_v26, %s3914_s2 }
0x1371   :  { %v3042_v3 = vpop.permute.xlu1 %3041 }
0x1372   :  { %v3049_v56 = vsel %vm111_vm0, %v3042_v3, %v3044_v37  ;;  %v6403_v30 = vpop.permute.xlu0 %3047 }
0x1373   :  { %v3056_v32 = vadd.f32 %v3049_v56, %v3025_v38  ;;  %v3024_v38 = vmul.f32 %v6350_v13, %v6379_v0 }
0x1374   :  { %3802 = vset.pattern.permute.xlu0 %v7210_v9 }
0x1375   :  { %3123 = vperm.xlu0 %3802, %v6000_v17  }
0x1379   :  { %v6390_v22 = vpop.permute.xlu1 %3045 }
0x137a   :  { %v3050_v21 = vsel %vm111_vm0, %v3044_v37, %v6390_v22  ;;  %v3051_v36 = vsel %vm111_vm0, %v6390_v22, %v6403_v30 }
0x137b   :  { %v3057_v10 = vadd.f32 %v3050_v21, %v3026_v39 }
0x137d   :  { %3803 = vset.pattern.permute.xlu0 %v7211_v54 }
0x137e   :  { %3154 = vperm.xlu0 %3803, %v6000_v17  }
0x1386   :  { %3804 = vset.pattern.permute.xlu0 %v7212_v43 }
0x1387   :  { %3185 = vperm.xlu0 %3804, %v6000_v17  }
0x138f   :  { %3807 = vset.pattern.permute.xlu0 %v7213_v6  ;;  %v3058_v6 = vadd.f32 %v3051_v36, %v3027_v14 }
0x1390   :  { %3301 = vperm.xlu0 %3807, %v6000_v17  }
0x1398   :  { %3812 = vset.pattern.permute.xlu0 %v7214_v62 }
0x1399   :  { %3456 = vperm.xlu0 %3812, %v6000_v17  }
0x13a1   :  { %3817 = vset.pattern.permute.xlu0 %v7215_v15 }
0x13be   :  { %v6405_v33 = vpop.permute.xlu2 %3076 }
0x13d6   :  { %v3075_v53 = vpop.permute.xlu0 %3074 }
0x13d7   :  { %v3073_v23 = vpop.permute.xlu1 %3072  ;;  %v3081_v29 = vsel %vm143_vm1, %v3075_v53, %v6405_v33 }
0x13d8   :  { %v3080_v31 = vsel %vm143_vm1, %v3073_v23, %v3075_v53  ;;  %v6410_v46 = vadd.f32 %v3081_v29, %v3057_v10  ;;  %v3028_v10 = vadd.f32 %v3024_v38, %v3005_v40 }
0x13d9   :  { %v6412_v27 = vadd.f32 %v3080_v31, %v3056_v32 }
0x13da   :  { %v3059_v54 = vadd.f32 %v6403_v30, %v3028_v10 }
0x13de   :  { %v3093_v25 = vpop.permute.xlu0 %3092 }
0x13df   :  { %v3095_v17 = vmul.f32 %v3093_v25, %v6343_v1  ;;  %v3096_v12 = vmul.f32 %v3093_v25, %v6345_v55  ;;  %v3097_v7 = vmul.f32 %v3093_v25, %v6358_v58  ;;  %v3098_v63 = vmul.f32 %v3093_v25, %v6350_v13  ;;  %v3079_v24 = vpop.permute.xlu1 %3078 }
0x13e0   :  { %v3082_v43 = vsel %vm143_vm1, %v6405_v33, %v3079_v24  ;;  %v3090_v62 = vadd.f32 %v3079_v24, %v3059_v54 }
0x13e1   :  { %3105 = vrot.lane.b32.xlu1 %v3096_v12, %s3916_s28  ;;  %3103 = vrot.lane.b32.xlu2 %v3095_v17, %s3916_s28  ;;  %v3089_v53 = vadd.f32 %v3082_v43, %v3058_v6 }
0x13e7   :  { %v3124_v16 = vpop.permute.xlu0 %3123 }
0x13e8   :  { %v3127_v41 = vmul.f32 %v3124_v16, %v6345_v55  ;;  %v3126_v5 = vmul.f32 %v3124_v16, %v6343_v1  ;;  %v3129_v50 = vmul.f32 %v3124_v16, %v6350_v13  ;;  %v3128_v11 = vmul.f32 %v3124_v16, %v6358_v58 }
0x13e9   :  { %3109 = vrot.lane.b32.xlu1 %v3098_v63, %s3916_s28  ;;  %3107 = vrot.lane.b32.xlu2 %v3097_v7, %s3916_s28 }
0x13f0   :  { %v3155_v47 = vpop.permute.xlu0 %3154 }
0x13f1   :  { %3136 = vrot.lane.b32.xlu1 %v3127_v41, %s3917_s29  ;;  %3134 = vrot.lane.b32.xlu2 %v3126_v5, %s3917_s29  ;;  %v3158_v8 = vmul.f32 %v3155_v47, %v6345_v55  ;;  %v3157_v48 = vmul.f32 %v3155_v47, %v6343_v1  ;;  %v3160_v45 = vmul.f32 %v3155_v47, %v6350_v13 }
0x13f2   :  { %v3159_v4 = vmul.f32 %v3155_v47, %v6358_v58 }
0x13f9   :  { %3140 = vrot.lane.b32.xlu1 %v3129_v50, %s3917_s29  ;;  %3138 = vrot.lane.b32.xlu2 %v3128_v11, %s3917_s29  ;;  %v3186_v18 = vpop.permute.xlu0 %3185 }
0x13fa   :  { %v3189_v28 = vmul.f32 %v3186_v18, %v6345_v55  ;;  %v3188_v51 = vmul.f32 %v3186_v18, %v6343_v1  ;;  %v3191_v42 = vmul.f32 %v3186_v18, %v6350_v13  ;;  %v3190_v37 = vmul.f32 %v3186_v18, %v6358_v58 }
0x1401   :  { %3167 = vrot.lane.b32.xlu1 %v3158_v8, %s3918_s30  ;;  %3165 = vrot.lane.b32.xlu2 %v3157_v48, %s3918_s30 }
0x1402   :  { %v3302_v40 = vpop.permute.xlu0 %3301 }
0x1409   :  { %3171 = vrot.lane.b32.xlu1 %v3160_v45, %s3918_s30  ;;  %3169 = vrot.lane.b32.xlu2 %v3159_v4, %s3918_s30 }
0x1411   :  { %3198 = vrot.lane.b32.xlu1 %v3189_v28, %s3920_s12  ;;  %3196 = vrot.lane.b32.xlu2 %v3188_v51, %s3920_s12 }
0x1419   :  { %3247 = vperm.xlu1 %3806, %v6445_v34   ;;  %3216 = vperm.xlu2 %3805, %v6445_v34  }
0x1421   :  { %3809 = vset.pattern.permute.xlu1 %v7216_v59  ;;  %3808 = vset.pattern.permute.xlu2 %v7217_v35 }
0x1422   :  { %3363 = vperm.xlu1 %3809, %v6445_v34   ;;  %3332 = vperm.xlu2 %3808, %v6445_v34  }
0x142a   :  { %3811 = vset.pattern.permute.xlu1 %v7218_v2  ;;  %3810 = vset.pattern.permute.xlu2 %v7219_v52 }
0x142b   :  { %3425 = vperm.xlu1 %3811, %v6445_v34   ;;  %3394 = vperm.xlu2 %3810, %v6445_v34  }
0x1433   :  { %3814 = vset.pattern.permute.xlu1 %v7220_v60  ;;  %3813 = vset.pattern.permute.xlu2 %v7221_v61 }
0x1434   :  { %3518 = vperm.xlu1 %3814, %v6445_v34   ;;  %3487 = vperm.xlu2 %3813, %v6445_v34  }
0x143b   :  { %v3104_v57 = vpop.permute.xlu2 %3103 }
0x143c   :  { %3202 = vrot.lane.b32.xlu1 %v3191_v42, %s3920_s12  ;;  %3200 = vrot.lane.b32.xlu2 %v3190_v37, %s3920_s12 }
0x143d   :  { %3815 = vset.pattern.permute.xlu2 %v7222_v44 }
0x1443   :  { %v3108_v19 = vpop.permute.xlu2 %3107 }
0x144b   :  { %v3135_v26 = vpop.permute.xlu2 %3134 }
0x1453   :  { %v3106_v3 = vpop.permute.xlu1 %3105  ;;  %v3139_v9 = vpop.permute.xlu2 %3138 }
0x1454   :  { %v3111_v56 = vsel %vm175_vm2, %v3104_v57, %v3106_v3  ;;  %v3112_v32 = vsel %vm175_vm2, %v3106_v3, %v3108_v19 }
0x1455   :  { %v3118_v39 = vadd.f32 %v3111_v56, %v6412_v27  ;;  %v3119_v21 = vadd.f32 %v3112_v32, %v6410_v46 }
0x145b   :  { %v3110_v0 = vpop.permute.xlu1 %3109  ;;  %v3166_v31 = vpop.permute.xlu2 %3165 }
0x145c   :  { %v3113_v23 = vsel %vm175_vm2, %v3108_v19, %v3110_v0  ;;  %v3121_v29 = vadd.f32 %v3110_v0, %v3090_v62 }
0x145d   :  { %v3120_v46 = vadd.f32 %v3113_v23, %v3089_v53 }
0x1463   :  { %v3137_v27 = vpop.permute.xlu1 %3136  ;;  %v3170_v20 = vpop.permute.xlu2 %3169 }
0x1464   :  { %v3142_v25 = vsel %vm207_vm3, %v3135_v26, %v3137_v27  ;;  %v3143_v22 = vsel %vm207_vm3, %v3137_v27, %v3139_v9  ;;  %v3278_v26 = vld [vmem:[#allocation3 + $0x3] ss:$4 sm:$0xf] }
0x1465   :  { %v3149_v17 = vadd.f32 %v3142_v25, %v3118_v39  ;;  %v3150_v30 = vadd.f32 %v3143_v22, %v3119_v21  ;;  %v6509_v3 = vperm.slane %v3278_v26, 0  ;;  %v6521_v49 = vperm.slane %v3278_v26, 1 }
0x1466   :  { %v6523_v39 = vperm.slane %v3278_v26, 3 }
0x1467   :  { %v3305_v21 = vmul.f32 %v3302_v40, %v6521_v49 }
0x1468   :  { %v3307_v10 = vmul.f32 %v3302_v40, %v6523_v39 }
0x146b   :  { %v3141_v12 = vpop.permute.xlu1 %3140  ;;  %v3197_v63 = vpop.permute.xlu2 %3196 }
0x146c   :  { %v3144_v33 = vsel %vm207_vm3, %v3139_v9, %v3141_v12  ;;  %v3152_v7 = vadd.f32 %v3141_v12, %v3121_v29  ;;  %v6519_v9 = vperm.slane %v3278_v26, 2 }
0x146d   :  { %v3151_v16 = vadd.f32 %v3144_v33, %v3120_v46  ;;  %v3457_v33 = vpop.permute.xlu0 %3456 }
0x1473   :  { %v3168_v41 = vpop.permute.xlu1 %3167  ;;  %v3217_v11 = vpop.permute.xlu2 %3216 }
0x1474   :  { %v3173_v5 = vsel %vm239_vm4, %v3166_v31, %v3168_v41  ;;  %v3174_v50 = vsel %vm239_vm4, %v3168_v41, %v3170_v20  ;;  %v3219_v48 = vmul.f32 %v3217_v11, %v6343_v1  ;;  %v3220_v45 = vmul.f32 %v3217_v11, %v6345_v55 }
0x1475   :  { %v3180_v47 = vadd.f32 %v3173_v5, %v3149_v17  ;;  %v3181_v8 = vadd.f32 %v3174_v50, %v3150_v30  ;;  %v3221_v4 = vmul.f32 %v3217_v11, %v6358_v58  ;;  %v3222_v59 = vmul.f32 %v3217_v11, %v6350_v13 }
0x1476   :  { %3229 = vrot.lane.b32.xlu2 %v3220_v45, %s3922_s13  ;;  %3227 = vrot.lane.b32.xlu0 %v3219_v48, %s3922_s13  ;;  %v3462_v41 = vmul.f32 %v3457_v33, %v6523_v39  ;;  %v3461_v5 = vmul.f32 %v3457_v33, %v6519_v9 }
0x1477   :  { %3231 = vrot.lane.b32.xlu1 %v3221_v4, %s3922_s13 }
0x147b   :  { %v3172_v18 = vpop.permute.xlu1 %3171 }
0x147c   :  { %v3175_v28 = vsel %vm239_vm4, %v3170_v20, %v3172_v18  ;;  %v3183_v51 = vadd.f32 %v3172_v18, %v3152_v7  ;;  %v3333_v2 = vpop.permute.xlu2 %3332  ;;  %v3459_v7 = vmul.f32 %v3457_v33, %v6509_v3 }
0x147d   :  { %v3182_v35 = vadd.f32 %v3175_v28, %v3151_v16  ;;  %v3336_v36 = vmul.f32 %v3333_v2, %v6521_v49  ;;  %v3335_v14 = vmul.f32 %v3333_v2, %v6509_v3  ;;  %v3337_v54 = vmul.f32 %v3333_v2, %v6519_v9 }
0x147e   :  { %3233 = vrot.lane.b32.xlu0 %v3222_v59, %s3922_s13  ;;  %v3338_v62 = vmul.f32 %v3333_v2, %v6523_v39  ;;  %v3460_v16 = vmul.f32 %v3457_v33, %v6521_v49 }
0x1483   :  { %v3199_v52 = vpop.permute.xlu1 %3198 }
0x1484   :  { %v3204_v60 = vsel %vm271_vm5, %v3197_v63, %v3199_v52 }
0x1485   :  { %v6499_v61 = vadd.f32 %v3204_v60, %v3180_v47  ;;  %v3395_v42 = vpop.permute.xlu2 %3394 }
0x1486   :  { %v3397_v27 = vmul.f32 %v3395_v42, %v6509_v3  ;;  %v3399_v25 = vmul.f32 %v3395_v42, %v6519_v9  ;;  %v3398_v22 = vmul.f32 %v3395_v42, %v6521_v49  ;;  %v3400_v20 = vmul.f32 %v3395_v42, %v6523_v39 }
0x148b   :  { %v3248_v37 = vpop.permute.xlu1 %3247 }
0x148c   :  { %v3250_v57 = vmul.f32 %v3248_v37, %v6343_v1  ;;  %v3251_v44 = vmul.f32 %v3248_v37, %v6345_v55  ;;  %v3252_v19 = vmul.f32 %v3248_v37, %v6358_v58  ;;  %v3253_v38 = vmul.f32 %v3248_v37, %v6350_v13 }
0x148d   :  { %v3304_v1 = vmul.f32 %v3302_v40, %v6509_v3  ;;  %v3306_v13 = vmul.f32 %v3302_v40, %v6519_v9 }
0x148e   :  { %3260 = vrot.lane.b32.xlu1 %v3251_v44, %s3923_s14  ;;  %3258 = vrot.lane.b32.xlu2 %v3250_v57, %s3923_s14  ;;  %v6507_v24 = vpop.permute.xlu2 %3487 }
0x148f   :  { %3262 = vrot.lane.b32.xlu0 %v3252_v19, %s3923_s14  ;;  %v3490_v50 = vmul.f32 %v6507_v24, %v6509_v3  ;;  %v3492_v11 = vmul.f32 %v6507_v24, %v6519_v9  ;;  %v3491_v47 = vmul.f32 %v6507_v24, %v6521_v49 }
0x1494   :  { %v3364_v56 = vpop.permute.xlu1 %3363 }
0x1495   :  { %v3366_v6 = vmul.f32 %v3364_v56, %v6509_v3  ;;  %v3369_v31 = vmul.f32 %v3364_v56, %v6523_v39  ;;  %v3368_v46 = vmul.f32 %v3364_v56, %v6519_v9 }
0x1496   :  { %3264 = vrot.lane.b32.xlu1 %v3253_v38, %s3923_s14  ;;  %3280 = vperm.xlu2 %3815, %v6445_v34   ;;  %v3201_v55 = vpop.permute.xlu2 %3200 }
0x1497   :  { %3312 = vrot.lane.b32.xlu0 %v3304_v1, %s3915_s27  ;;  %v3205_v58 = vsel %vm271_vm5, %v3199_v52, %v3201_v55 }
0x1498   :  { %v6517_v32 = vadd.f32 %v3205_v58, %v3181_v8  ;;  %v3493_v8 = vmul.f32 %v6507_v24, %v6523_v39 }
0x149d   :  { %v3426_v34 = vpop.permute.xlu1 %3425 }
0x149e   :  { %3316 = vrot.lane.b32.xlu1 %v3306_v13, %s3915_s27  ;;  %3314 = vrot.lane.b32.xlu2 %v3305_v21, %s3915_s27  ;;  %v3429_v17 = vmul.f32 %v3426_v34, %v6521_v49  ;;  %v3428_v30 = vmul.f32 %v3426_v34, %v6509_v3  ;;  %v3430_v12 = vmul.f32 %v3426_v34, %v6519_v9 }
0x149f   :  { %3318 = vrot.lane.b32.xlu0 %v3307_v10, %s3915_s27  ;;  %3816 = vset.pattern.permute.xlu2 %v7215_v15  ;;  %v3367_v15 = vmul.f32 %v3364_v56, %v6521_v49  ;;  %v3431_v63 = vmul.f32 %v3426_v34, %v6523_v39 }
0x14a6   :  { %v6535_v43 = vpop.permute.xlu1 %3518  ;;  %3345 = vrot.lane.b32.xlu1 %v3336_v36, %s3914_s2  ;;  %3343 = vrot.lane.b32.xlu2 %v3335_v14, %s3914_s2 }
0x14a7   :  { %3347 = vrot.lane.b32.xlu0 %v3337_v54, %s3914_s2  ;;  %v3522_v45 = vmul.f32 %v6535_v43, %v6521_v49  ;;  %v3521_v4 = vmul.f32 %v6535_v43, %v6509_v3  ;;  %v3523_v18 = vmul.f32 %v6535_v43, %v6519_v9  ;;  %v3524_v42 = vmul.f32 %v6535_v43, %v6523_v39 }
0x14ae   :  { %v3203_v53 = vpop.permute.xlu1 %3202  ;;  %3374 = vrot.lane.b32.xlu1 %v3366_v6, %s3916_s28  ;;  %3349 = vrot.lane.b32.xlu2 %v3338_v62, %s3914_s2  ;;  %s3649_s2 = sshll.u32 %s6669_s11, 4  ;;  %s3650_s2 = int_to_ptr.hbm [resolvable:$true] %s3649_s2 }
0x14af   :  { %v3206_v0 = vsel %vm271_vm5, %v3201_v55, %v3203_v53  ;;  %v3214_v23 = vadd.f32 %v3203_v53, %v3183_v51  ;;  %3376 = vrot.lane.b32.xlu0 %v3367_v15, %s3916_s28 }
0x14b0   :  { %v3213_v29 = vadd.f32 %v3206_v0, %v3182_v35 }
0x14b6   :  { %3380 = vrot.lane.b32.xlu1 %v3369_v31, %s3916_s28  ;;  %3378 = vrot.lane.b32.xlu2 %v3368_v46, %s3916_s28 }
0x14b7   :  { %3405 = vrot.lane.b32.xlu0 %v3397_v27, %s3917_s29 }
0x14be   :  { %3409 = vrot.lane.b32.xlu1 %v3399_v25, %s3917_s29  ;;  %3407 = vrot.lane.b32.xlu2 %v3398_v22, %s3917_s29 }
0x14bf   :  { %3411 = vrot.lane.b32.xlu0 %v3400_v20, %s3917_s29 }
0x14c6   :  { %3438 = vrot.lane.b32.xlu1 %v3429_v17, %s3918_s30  ;;  %3436 = vrot.lane.b32.xlu2 %v3428_v30, %s3918_s30 }
0x14c7   :  { %3440 = vrot.lane.b32.xlu0 %v3430_v12, %s3918_s30 }
0x14ce   :  { %3467 = vrot.lane.b32.xlu1 %v3459_v7, %s3920_s12  ;;  %3442 = vrot.lane.b32.xlu2 %v3431_v63, %s3918_s30 }
0x14cf   :  { %3469 = vrot.lane.b32.xlu0 %v3460_v16, %s3920_s12 }
0x14d0   :  { %v3230_v48 = vpop.permute.xlu2 %3229 }
0x14d6   :  { %3473 = vrot.lane.b32.xlu1 %v3462_v41, %s3920_s12  ;;  %3471 = vrot.lane.b32.xlu2 %v3461_v5, %s3920_s12 }
0x14d7   :  { %3498 = vrot.lane.b32.xlu0 %v3490_v50, %s3922_s13 }
0x14de   :  { %3502 = vrot.lane.b32.xlu1 %v3492_v11, %s3922_s13  ;;  %3500 = vrot.lane.b32.xlu2 %v3491_v47, %s3922_s13 }
0x14df   :  { %3504 = vrot.lane.b32.xlu0 %v3493_v8, %s3922_s13 }
0x14e6   :  { %3531 = vrot.lane.b32.xlu1 %v3522_v45, %s3923_s14  ;;  %3529 = vrot.lane.b32.xlu2 %v3521_v4, %s3923_s14 }
0x14e7   :  { %3533 = vrot.lane.b32.xlu0 %v3523_v18, %s3923_s14 }
0x14e8   :  { %v3259_v28 = vpop.permute.xlu2 %3258  ;;  %v3228_v51 = vpop.permute.xlu0 %3227 }
0x14e9   :  { %v3232_v59 = vpop.permute.xlu1 %3231  ;;  %v3235_v35 = vsel %vm303_vm6, %v3228_v51, %v3230_v48 }
0x14ea   :  { %v3236_v2 = vsel %vm303_vm6, %v3230_v48, %v3232_v59  ;;  %v3242_v52 = vadd.f32 %v3235_v35, %v6499_v61 }
0x14eb   :  { %v3243_v60 = vadd.f32 %v3236_v2, %v6517_v32 }
0x14ee   :  { %3535 = vrot.lane.b32.xlu2 %v3524_v42, %s3923_s14 }
0x14f0   :  { %v3281_v37 = vpop.permute.xlu2 %3280  ;;  %v3234_v57 = vpop.permute.xlu0 %3233 }
0x14f1   :  { %v3237_v44 = vsel %vm303_vm6, %v3232_v59, %v3234_v57  ;;  %v3245_v19 = vadd.f32 %v3234_v57, %v3214_v23  ;;  %v3292_v61 = vmul.f32 %v6509_v3, %v3281_v37  ;;  %v3293_v32 = vmul.f32 %v6521_v49, %v3281_v37 }
0x14f2   :  { %v3244_v24 = vadd.f32 %v3237_v44, %v3213_v29  ;;  %v3295_v6 = vmul.f32 %v6523_v39, %v3281_v37  ;;  %v3294_v62 = vmul.f32 %v6519_v9, %v3281_v37 }
0x14f8   :  { %v3315_v26 = vpop.permute.xlu2 %3314 }
0x1500   :  { %v3261_v40 = vpop.permute.xlu1 %3260  ;;  %v3344_v56 = vpop.permute.xlu2 %3343 }
0x1501   :  { %v3266_v38 = vsel %vm335_vm7, %v3259_v28, %v3261_v40  ;;  %v3263_v1 = vpop.permute.xlu0 %3262 }
0x1502   :  { %v3273_v55 = vadd.f32 %v3266_v38, %v3242_v52  ;;  %v3267_v58 = vsel %vm335_vm7, %v3261_v40, %v3263_v1 }
0x1503   :  { %v3274_v13 = vadd.f32 %v3267_v58, %v3243_v60 }
0x1504   :  { %v3296_v21 = vadd.f32 %v3292_v61, %v3273_v55 }
0x1505   :  { %v3297_v10 = vadd.f32 %v3293_v32, %v3274_v13 }
0x1508   :  { %v3265_v34 = vpop.permute.xlu1 %3264  ;;  %v3350_v54 = vpop.permute.xlu2 %3349 }
0x1509   :  { %v3268_v36 = vsel %vm335_vm7, %v3263_v1, %v3265_v34  ;;  %v3276_v14 = vadd.f32 %v3265_v34, %v3245_v19  ;;  %v3313_v43 = vpop.permute.xlu0 %3312 }
0x150a   :  { %v3275_v15 = vadd.f32 %v3268_v36, %v3244_v24  ;;  %v3320_v3 = vsel %vm111_vm0, %v3313_v43, %v3315_v26 }
0x150b   :  { %v3327_v53 = vadd.f32 %v3320_v3, %v3296_v21  ;;  %v3299_v0 = vadd.f32 %v3295_v6, %v3276_v14 }
0x150c   :  { %v3298_v23 = vadd.f32 %v3294_v62, %v3275_v15 }
0x1510   :  { %v3317_v49 = vpop.permute.xlu1 %3316  ;;  %v3379_v27 = vpop.permute.xlu2 %3378 }
0x1511   :  { %v3321_v29 = vsel %vm111_vm0, %v3315_v26, %v3317_v49  ;;  %v3319_v31 = vpop.permute.xlu0 %3318 }
0x1512   :  { %v3328_v46 = vadd.f32 %v3321_v29, %v3297_v10  ;;  %v3330_v8 = vadd.f32 %v3319_v31, %v3299_v0  ;;  %v3322_v18 = vsel %vm111_vm0, %v3317_v49, %v3319_v31  ;;  %v3549_v29 = vld [vmem:[#allocation7 + $0x2] ss:$4 sm:$0xf]  ;;  %vm3568_vm0 = vcmask 207872  }
0x1513   :  { %v3329_v60 = vadd.f32 %v3322_v18, %v3298_v23 }
0x1514   :  { %v3361_v45 = vadd.f32 %v3350_v54, %v3330_v8 }
0x1518   :  { %v3346_v25 = vpop.permute.xlu1 %3345  ;;  %v3408_v20 = vpop.permute.xlu2 %3407 }
0x1519   :  { %v3348_v22 = vpop.permute.xlu0 %3347  ;;  %v3351_v28 = vsel %vm143_vm1, %v3344_v56, %v3346_v25 }
0x151a   :  { %v3352_v59 = vsel %vm143_vm1, %v3346_v25, %v3348_v22  ;;  %v3353_v35 = vsel %vm143_vm1, %v3348_v22, %v3350_v54  ;;  %v3358_v42 = vadd.f32 %v3351_v28, %v3327_v53 }
0x151b   :  { %v3359_v24 = vadd.f32 %v3352_v59, %v3328_v46  ;;  %v3360_v26 = vadd.f32 %v3353_v35, %v3329_v60 }
0x1520   :  { %v3375_v17 = vpop.permute.xlu1 %3374  ;;  %v3437_v39 = vpop.permute.xlu2 %3436 }
0x1521   :  { %v3377_v30 = vpop.permute.xlu0 %3376 }
0x1522   :  { %v3382_v2 = vsel %vm175_vm2, %v3375_v17, %v3377_v30  ;;  %v3383_v57 = vsel %vm175_vm2, %v3377_v30, %v3379_v27  ;;  %v3551_v17 = vperm.slane %v3549_v29, 0 }
0x1523   :  { %v3389_v40 = vadd.f32 %v3382_v2, %v3358_v42  ;;  %v3390_v58 = vadd.f32 %v3383_v57, %v3359_v24 }
0x1528   :  { %v3381_v12 = vpop.permute.xlu1 %3380  ;;  %v3443_v33 = vpop.permute.xlu2 %3442 }
0x1529   :  { %v3406_v9 = vpop.permute.xlu0 %3405  ;;  %v3392_v51 = vadd.f32 %v3381_v12, %v3361_v45  ;;  %v3384_v44 = vsel %vm175_vm2, %v3379_v27, %v3381_v12 }
0x152a   :  { %v3413_v19 = vsel %vm207_vm3, %v3406_v9, %v3408_v20  ;;  %v3391_v32 = vadd.f32 %v3384_v44, %v3360_v26  ;;  %v3552_v9 = vperm.slane %v3549_v29, 1 }
0x152b   :  { %v3420_v13 = vadd.f32 %v3413_v19, %v3389_v40 }
0x1530   :  { %v3410_v7 = vpop.permute.xlu1 %3409  ;;  %v3472_v41 = vpop.permute.xlu2 %3471 }
0x1531   :  { %v3412_v63 = vpop.permute.xlu0 %3411  ;;  %v3414_v56 = vsel %vm207_vm3, %v3408_v20, %v3410_v7 }
0x1532   :  { %v3423_v52 = vadd.f32 %v3412_v63, %v3392_v51  ;;  %v3415_v1 = vsel %vm207_vm3, %v3410_v7, %v3412_v63  ;;  %v3421_v54 = vadd.f32 %v3414_v56, %v3390_v58 }
0x1533   :  { %v3422_v43 = vadd.f32 %v3415_v1, %v3391_v32 }
0x1534   :  { %v3454_v55 = vadd.f32 %v3443_v33, %v3423_v52 }
0x1538   :  { %v3439_v16 = vpop.permute.xlu1 %3438  ;;  %v3501_v47 = vpop.permute.xlu2 %3500 }
0x1539   :  { %v3441_v5 = vpop.permute.xlu0 %3440  ;;  %v3444_v61 = vsel %vm239_vm4, %v3437_v39, %v3439_v16 }
0x153a   :  { %v3445_v10 = vsel %vm239_vm4, %v3439_v16, %v3441_v5  ;;  %v3446_v34 = vsel %vm239_vm4, %v3441_v5, %v3443_v33  ;;  %v3451_v6 = vadd.f32 %v3444_v61, %v3420_v13  ;;  %v3554_v33 = vperm.slane %v3549_v29, 3 }
0x153b   :  { %v3452_v0 = vadd.f32 %v3445_v10, %v3421_v54  ;;  %v3453_v23 = vadd.f32 %v3446_v34, %v3422_v43  ;;  %vm3639_vm4 = vcmask 211972  }
0x1540   :  { %v3468_v50 = vpop.permute.xlu1 %3467  ;;  %v3530_v37 = vpop.permute.xlu2 %3529 }
0x1541   :  { %v3470_v11 = vpop.permute.xlu0 %3469 }
0x1542   :  { %v3475_v36 = vsel %vm271_vm5, %v3468_v50, %v3470_v11  ;;  %v3476_v62 = vsel %vm271_vm5, %v3470_v11, %v3472_v41 }
0x1543   :  { %v3482_v49 = vadd.f32 %v3475_v36, %v3451_v6  ;;  %v3483_v27 = vadd.f32 %v3476_v62, %v3452_v0  ;;  %v3590_v62 = vld [vmem:[%s6667_s9] sm:$0xf]  ;;  %s3949_s9 = smov [#allocation9]  }
0x1544   :  { %v3603_v0 = vld [vmem:[%s6668_s10] sm:$0xf]  ;;  %s3647_s0 = sshll.u32 %s3949_s9, 4  ;;  %s3648_s0 = int_to_ptr.vmem [resolvable:$true] %s3647_s0 }
0x1548   :  { %v3474_v48 = vpop.permute.xlu1 %3473  ;;  %v3536_v25 = vpop.permute.xlu2 %3535 }
0x1549   :  { %v3499_v4 = vpop.permute.xlu0 %3498  ;;  %v3485_v14 = vadd.f32 %v3474_v48, %v3454_v55  ;;  %v3477_v15 = vsel %vm271_vm5, %v3472_v41, %v3474_v48  ;;  %v3553_v41 = vperm.slane %v3549_v29, 2  ;;  %vm3640_vm5 = vmor %vm3639_vm4, %vm1174_vm8 }
0x154a   :  { %v3506_v3 = vsel %vm303_vm6, %v3499_v4, %v3501_v47  ;;  %v3484_v22 = vadd.f32 %v3477_v15, %v3453_v23 }
0x154b   :  { %v3513_v20 = vadd.f32 %v3506_v3, %v3482_v49 }
0x1550   :  { %v3503_v38 = vpop.permute.xlu1 %3502 }
0x1551   :  { %v3505_v21 = vpop.permute.xlu0 %3504  ;;  %v3507_v31 = vsel %vm303_vm6, %v3501_v47, %v3503_v38 }
0x1552   :  { %v3516_v53 = vadd.f32 %v3505_v21, %v3485_v14  ;;  %v3508_v46 = vsel %vm303_vm6, %v3503_v38, %v3505_v21  ;;  %v3514_v7 = vadd.f32 %v3507_v31, %v3483_v27 }
0x1553   :  { %v3515_v63 = vadd.f32 %v3508_v46, %v3484_v22 }
0x1554   :  { %v6632_v39 = vadd.f32 %v3536_v25, %v3516_v53 }
0x1556   :  { %v3562_v45 = vmul.f32 %v3554_v33, %v6632_v39 }
0x1558   :  { %v3532_v30 = vpop.permute.xlu1 %3531  ;;  %v3569_v24 = vsel %vm3568_vm0, %v3562_v45, 0.0 }
0x1559   :  { %v3537_v12 = vsel %vm335_vm7, %v3530_v37, %v3532_v30  ;;  %v3534_v5 = vpop.permute.xlu0 %3533  ;;  %v3577_v37 = vmul.f32 %v3562_v45, %v6632_v39 }
0x155a   :  { %v3544_v16 = vadd.f32 %v3537_v12, %v3513_v20  ;;  %v3538_v50 = vsel %vm335_vm7, %v3532_v30, %v3534_v5  ;;  %v3539_v11 = vsel %vm335_vm7, %v3534_v5, %v3536_v25 }
0x155b   :  { %v3545_v8 = vadd.f32 %v3538_v50, %v3514_v7  ;;  %v3546_v48 = vadd.f32 %v3539_v11, %v3515_v63  ;;  %v3583_v56 = vsel %vm3568_vm0, %v3577_v37, 0.0 }
0x155c   :  { %v3559_v47 = vmul.f32 %v3551_v17, %v3544_v16 }
0x155d   :  { %v3560_v18 = vmul.f32 %v3552_v9, %v3545_v8  ;;  %v3561_v28 = vmul.f32 %v3553_v41, %v3546_v48 }
0x155e   :  { %v3574_v4 = vmul.f32 %v3559_v47, %v3544_v16  ;;  %v3563_v51 = vsel %vm1174_vm8, %v3559_v47, 0.0 }
0x155f   :  { %v3575_v59 = vmul.f32 %v3560_v18, %v3545_v8  ;;  %v3576_v35 = vmul.f32 %v3561_v28, %v3546_v48  ;;  %v3564_v2 = vsel %vm1174_vm8, %v3560_v18, 0.0  ;;  %v3566_v42 = vsel %vm1174_vm8, %v3561_v28, 0.0 }
0x1560   :  { %v3565_v52 = vadd.f32 %v3564_v2, %v3563_v51  ;;  %v3578_v60 = vsel %vm1174_vm8, %v3574_v4, 0.0 }
0x1561   :  { %v3579_v57 = vsel %vm1174_vm8, %v3575_v59, 0.0  ;;  %v3581_v26 = vsel %vm1174_vm8, %v3576_v35, 0.0 }
0x1562   :  { %v3567_v44 = vadd.f32 %v3566_v42, %v3565_v52  ;;  %v3580_v19 = vadd.f32 %v3579_v57, %v3578_v60 }
0x1564   :  { %v3570_v40 = vadd.f32 %v3569_v24, %v3567_v44  ;;  %v3582_v38 = vadd.f32 %v3581_v26, %v3580_v19 }
0x1566   :  { %3571 = vadd.xlane.f32.xlu1 %v3570_v40  ;;  %v3584_v1 = vadd.f32 %v3583_v56, %v3582_v38 }
0x1568   :  { %3585 = vadd.xlane.f32.xlu0 %v3584_v1 }
0x15d9   :  { %v3572_v61 = vpop.xlane.xlu1 %3571 }
0x15da   :  { %v3573_v55 = vmul.f32 0.005, %v3572_v61 }
0x15db   :  { %v3586_v58 = vpop.xlane.xlu0 %3585 }
0x15dc   :  { %v3588_v32 = vmul.f32 %v3573_v55, %v3573_v55  ;;  %v3587_v13 = vmul.f32 0.005, %v3586_v58 }
0x15de   :  { %v3589_v21 = vsub.f32 %v3587_v13, %v3588_v32 }
0x15e0   :  { %v3591_v10 = vadd.f32 1e-05, %v3589_v21 }
0x15e2   :  { %3822 = vrsqrt.f32 %v3591_v10  ;;  %vm3598_vm2 = vweird.f32 %v3591_v10 }
0x15e8   :  { %v3823_v34 = vpop.eup %3822 }
0x15e9   :  { %v3593_v36 = vmul.f32 %v3823_v34, %v3591_v10  ;;  %vm3599_vm1 = vweird.f32 %v3823_v34 }
0x15ea   :  { %vm3600_vm3 = vmor %vm3598_vm2, %vm3599_vm1 }
0x15eb   :  { %v3594_v14 = vmul.f32 %v3823_v34, %v3593_v36 }
0x15ed   :  { %v3595_v54 = vmul.f32 0.5, %v3594_v14 }
0x15ef   :  { %v3596_v43 = vsub.f32 1.5, %v3595_v54 }
0x15f1   :  { %v3597_v6 = vmul.f32 %v3823_v34, %v3596_v43 }
0x15f3   :  { %v3601_v15 = vsel %vm3600_vm3, %v3823_v34, %v3597_v6 }
0x15f4   :  { %v3602_v3 = vmul.f32 %v3601_v15, %v3590_v62 }
0x15f6   :  { %3608 = vperm.xlu2 %3816, %v3602_v3   ;;  %v3604_v53 = vmul.f32 %v3602_v3, %v3573_v55 }
0x15f8   :  { %v3605_v23 = vsub.f32 %v3603_v0, %v3604_v53 }
0x15fe   :  { %3617 = vperm.xlu2 %3816, %v3605_v23  }
0x1650   :  { %v3609_v49 = vpop.permute.xlu2 %3608 }
0x1651   :  { %v3611_v29 = vmul.f32 %v3609_v49, %v3544_v16  ;;  %v3612_v31 = vmul.f32 %v3609_v49, %v3545_v8  ;;  %v3613_v46 = vmul.f32 %v3609_v49, %v3546_v48  ;;  %v3614_v27 = vmul.f32 %v3609_v49, %v6632_v39 }
0x1658   :  { %v3618_v25 = vpop.permute.xlu2 %3617 }
0x1659   :  { %v3620_v22 = vadd.f32 %v3618_v25, %v3611_v29  ;;  %v3621_v20 = vadd.f32 %v3618_v25, %v3612_v31  ;;  %v3622_v17 = vadd.f32 %v3618_v25, %v3613_v46  ;;  %v3623_v30 = vadd.f32 %v3618_v25, %v3614_v27 }
0x165b   :  { %v3625_v12 = vmax.f32 %v3621_v20, 0.0  ;;  %v3627_v9 = vmax.f32 %v3623_v30, 0.0  ;;  %v3624_v33 = vmax.f32 %v3620_v22, 0.0  ;;  %v3626_v7 = vmax.f32 %v3622_v17, 0.0 }
0x165d   :  { %v3632_v63 = vrot.slane %v3625_v12, 4  ;;  %v3633_v16 = vrot.slane %v3627_v9, 4 }
0x165f   :  { %v3634_v39 = vsel %vm1174_vm8, %v3624_v33, %v3632_v63  ;;  %v3635_v41 = vsel %vm1174_vm8, %v3626_v7, %v3633_v16 }
0x1660   :  { %3638 = vst [vmem:[#allocation9] sm:$0xff] %v3634_v39 }
0x1661   :  { %3641 = vst.msk [vmem:[#allocation9 + $0x8] sm:$0xff] %vm3640_vm5, %v3635_v41 }
0x1662   :  { %3652 = dma.vmem_to_hbm [thread:$0]  %s3648_s0, 256, %s3650_s2, [#allocation6]  }
0x1663   :  { %3901 = dma.done.wait [#allocation6], 256  }
0x1664   :  { %3902 = vsyncadd [#allocation6], 4294967040 }
0x1665   :  { %3657 = vsyncpa [#allocation5], 1 }
0x1666   :  { %3658 = vsyncpa [#allocation8], 1 }
0x1667   :  { %3659 = vsyncpa [#allocation6], 1 }

</bundles_post_ra>
